<compile_context>
chip_gen: v7x
topology: tpu7x:2x2x1
jax: 0.10.0
libtpu: 0.0.40
codegen_flags: <defaults>
</compile_context>

<pallas_src>
import math
import functools

import jax
import jax.numpy as jnp
from jax import lax
from jax.experimental import pallas as pl
from jax.experimental.pallas import tpu as pltpu


# Row indices inside the coalesced (12, d) parameter stack.
_BQ, _BK, _BV, _BO, _LN1W, _LN1B, _B1, _B2, _LN2W, _LN2B, _WP, _BP = range(12)
# Slices inside the stacked (4, d, d) transposed weight matrices.
_WQ, _WO, _W1, _W2 = range(4)


# ----------------------------- Pallas kernel ------------------------------ #
def sakt_kernel(m_ref, e_ref, pos_ref, mask_ref, wstk_ref, wkv_ref, vec_ref,
                p_out_ref, attn_out_ref, *, num_heads):
    Bt, n, d = m_ref.shape
    hd = d // num_heads
    R = Bt * n

    # M = M(x) + P (positional, broadcast over the Bt sequences), E = E(qry).
    # (Bt, n, d) -> (Bt*n, d): n == 8 sublanes, so the merge is tile-aligned.
    M = (m_ref[...] + pos_ref[...][None]).reshape(R, d)            # [R, d]
    E = e_ref[...].reshape(R, d)                                   # [R, d]

    # Q projection (1/sqrt(hd) pre-folded into Wq^T / bq in the wrapper) and
    # ONE fused K/V projection against [Wk^T | Wv^T] (d, 2d).
    Q = jnp.dot(E, wstk_ref[_WQ], preferred_element_type=jnp.float32) + vec_ref[_BQ:_BQ + 1, :]
    KV = jnp.dot(M, wkv_ref[...], preferred_element_type=jnp.float32)
    K = KV[:, :d] + vec_ref[_BK:_BK + 1, :]
    V = KV[:, d:] + vec_ref[_BV:_BV + 1, :]

    Q3 = Q.reshape(Bt, n, d)
    K3 = K.reshape(Bt, n, d)
    V3 = V.reshape(Bt, n, d)

    # Per-head scores (batched over the Bt sequences), stacked along a MAJOR
    # axis so ONE fused softmax pass covers every head and every sequence.
    # TODO(synk): a single head-major (H*Bt, n, hd) relayout would remove the
    # per-head lane slices, but at hd=8 that transpose mixes sublane/major
    # dims which Mosaic does not lower reliably; keep the known-good form.
    s_list = []
    for h in range(num_heads):                                     # static unrolled
        sl = slice(h * hd, (h + 1) * hd)
        s_list.append(jnp.einsum('bqe,bke->bqk', Q3[:, :, sl], K3[:, :, sl],
                                 preferred_element_type=jnp.float32))
    # causal mask bias (precomputed in wrapper): -1e30 where col > row
    s = jnp.stack(s_list, axis=0) + mask_ref[...][None, None]      # (H, Bt, n, n)
    s = s - jnp.max(s, axis=-1, keepdims=True)
    s = jnp.exp(s)
    # divide -> EUP reciprocal (free slot) instead of a VALU Newton expansion
    probs = s * pl.reciprocal(jnp.sum(s, axis=-1, keepdims=True), approx=True)

    # head-averaged attention weights (PyTorch average_attn_weights=True)
    attn_out_ref[...] = jnp.mean(probs, axis=0)                    # (Bt, n, n)

    # context = concat_h(probs_h @ V_h), then ONE output projection
    ctx_parts = [
        jnp.einsum('bqk,bke->bqe', probs[h], V3[:, :, h * hd:(h + 1) * hd],
                   preferred_element_type=jnp.float32)
        for h in range(num_heads)]
    ctx = jnp.concatenate(ctx_parts, axis=-1).reshape(R, d)        # (R, d)
    S = jnp.dot(ctx, wstk_ref[_WO], preferred_element_type=jnp.float32) + vec_ref[_BO:_BO + 1, :]

    def layernorm(x, w, b):
        mu = jnp.mean(x, axis=-1, keepdims=True)
        var = jnp.mean((x - mu) ** 2, axis=-1, keepdims=True)
        return (x - mu) * lax.rsqrt(var + 1e-5) * w + b

    S1 = layernorm(S + E, vec_ref[_LN1W:_LN1W + 1, :], vec_ref[_LN1B:_LN1B + 1, :])

    # FFN: Linear -> ReLU -> (Dropout=id) -> Linear -> (Dropout=id)
    Fh = jnp.maximum(
        jnp.dot(S1, wstk_ref[_W1], preferred_element_type=jnp.float32) + vec_ref[_B1:_B1 + 1, :],
        0.0)
    Ff = jnp.dot(Fh, wstk_ref[_W2], preferred_element_type=jnp.float32) + vec_ref[_B2:_B2 + 1, :]
    F2 = layernorm(Ff + S1, vec_ref[_LN2W:_LN2W + 1, :], vec_ref[_LN2B:_LN2B + 1, :])

    # prediction head, emitted lane-dense as (1, Bt*n):
    # logits = Wp @ F2^T keeps the R rows on the LANE axis (unmasked-ish store).
    logit = jnp.einsum('od,rd->or', vec_ref[_WP:_WP + 1, :], F2,
                       preferred_element_type=jnp.float32) + vec_ref[_BP:_BP + 1, 0:1]
    p_out_ref[...] = jax.nn.sigmoid(logit)                         # (1, R)


# ------------------------------- wrapper ----------------------------------- #
def _tensorcores_per_chip():
    """2 on v7x-class parts (two TensorCores per chip), else 1 (v5e/v6e)."""
    try:
        kind = jax.devices()[0].device_kind.lower()
    except Exception:
        return 1
    return 2 if ("v7" in kind or "7x" in kind) else 1


def sakt_forward(q, r, qry, params, *, num_q, num_heads, block_b=None):
    B, n = q.shape
    d = params["P"].shape[1]
    hd = d // num_heads
    scale = 1.0 / math.sqrt(hd)

    # Generation-aware grid: a multi-step grid only pays off when there is
    # more than one TensorCore to shard it over (v7x); on single-TC chips
    # (v5e/v6e) use one big step (amortizes per-step overhead, fills sublanes).
    if block_b is None:
        ntc = _tensorcores_per_chip()
        if ntc > 1 and B % ntc == 0 and B >= 2 * ntc:
            block_b = B // ntc
        else:
            block_b = B
    if B % block_b != 0:
        block_b = B            # never degrade to tiny blocks for odd/prime B
    grid_b = B // block_b

    # embedding lookups (glue, plain JAX gather)
    x = q + num_q * r                                              # [B, n]
    M_emb = params["M"][x].astype(jnp.float32)                     # [B, n, d]
    E_emb = params["E"][qry].astype(jnp.float32)                   # [B, n, d]

    # precomputed causal-mask bias: torch.triu(ones, diagonal=1) -> -1e30
    row = jnp.arange(n)[:, None]
    col = jnp.arange(n)[None, :]
    mask_bias = jnp.where(col > row, jnp.float32(-1e30), jnp.float32(0.0))   # [n, n]

    # Pre-transposed weights.  The 1/sqrt(hd) score scale is folded into the
    # Q projection; Wk^T and Wv^T are fused into one (d, 2d) matrix so K and V
    # come out of a single MXU pass.
    # TODO(synk): optionally cast matmul operands to bf16 on v6e/v7x for
    # production d; skipped here to hold the 2e-3 f32 tolerance at d=32.
    wstk = jnp.stack([params["Wq"].T * scale, params["Wo"].T,
                      params["W1"].T, params["W2"].T], axis=0)      # (4, d, d)
    wkv = jnp.concatenate([params["Wk"].T, params["Wv"].T], axis=1)  # (d, 2d)
    vec = jnp.concatenate([params["bq"] * scale, params["bk"], params["bv"], params["bo"],
                           params["ln1_w"], params["ln1_b"],
                           params["b1"], params["b2"],
                           params["ln2_w"], params["ln2_b"],
                           params["Wp"],
                           jnp.full((1, d), params["bp"][0, 0], jnp.float32)],
                          axis=0)                                   # (12, d)

    kernel = functools.partial(sakt_kernel, num_heads=num_heads)
    p_blk, attn = pl.pallas_call(
        kernel,
        out_shape=(jax.ShapeDtypeStruct((grid_b, block_b * n), jnp.float32),
                   jax.ShapeDtypeStruct((B, n, n), jnp.float32)),
        grid_spec=pltpu.PrefetchScalarGridSpec(
            num_scalar_prefetch=0,
            grid=(grid_b,),
            in_specs=[
                pl.BlockSpec((block_b, n, d), lambda b: (b, 0, 0)),   # M embedding block
                pl.BlockSpec((block_b, n, d), lambda b: (b, 0, 0)),   # E embedding block
                pl.BlockSpec((n, d), lambda b: (0, 0)),               # positional P (resident)
                pl.BlockSpec((n, n), lambda b: (0, 0)),               # causal mask bias (resident)
                pl.BlockSpec((4, d, d), lambda b: (0, 0, 0)),         # stacked W^T (resident)
                pl.BlockSpec((d, 2 * d), lambda b: (0, 0)),           # fused [Wk^T|Wv^T] (resident)
                pl.BlockSpec((12, d), lambda b: (0, 0)),              # coalesced (1,d) params
            ],
            out_specs=[
                pl.BlockSpec((1, block_b * n), lambda b: (b, 0)),     # p, lane-dense (Bt*n lanes)
                pl.BlockSpec((block_b, n, n), lambda b: (b, 0, 0)),   # attention weights block
            ],
        ),
        compiler_params=pltpu.CompilerParams(dimension_semantics=("parallel",)),
    )(M_emb, E_emb, params["P"], mask_bias, wstk, wkv, vec)

    return p_blk.reshape(B, n), attn            # p: [B, n], attn_weights: [B, n, n]


# -------------------------- plain-JAX reference ---------------------------- #
def sakt_reference(q, r, qry, params, *, num_q, num_heads):
    d = params["P"].shape[1]
    hd = d // num_heads
    x = q + num_q * r
    M = params["M"][x] + params["P"][None]             # [B, n, d]
    E = params["E"][qry]                               # [B, n, d]
    Q = jnp.einsum("bnd,ed->bne", E, params["Wq"]) + params["bq"]
    K = jnp.einsum("bnd,ed->bne", M, params["Wk"]) + params["bk"]
    V = jnp.einsum("bnd,ed->bne", M, params["Wv"]) + params["bv"]
    B, n, _ = Q.shape
    Qh = Q.reshape(B, n, num_heads, hd).transpose(0, 2, 1, 3)
    Kh = K.reshape(B, n, num_heads, hd).transpose(0, 2, 1, 3)
    Vh = V.reshape(B, n, num_heads, hd).transpose(0, 2, 1, 3)
    s = jnp.einsum("bhqe,bhke->bhqk", Qh, Kh) / math.sqrt(hd)
    mask = jnp.triu(jnp.ones((n, n), bool), 1)
    s = jnp.where(mask[None, None], -1e30, s)
    probs = jax.nn.softmax(s, axis=-1)
    attn_w = probs.mean(axis=1)
    ctx = jnp.einsum("bhqk,bhke->bhqe", probs, Vh).transpose(0, 2, 1, 3).reshape(B, n, d)
    S = jnp.einsum("bnd,ed->bne", ctx, params["Wo"]) + params["bo"]

    def ln(x, w, b):
        mu = x.mean(-1, keepdims=True)
        var = ((x - mu) ** 2).mean(-1, keepdims=True)
        return (x - mu) / jnp.sqrt(var + 1e-5) * w + b

    S1 = ln(S + E, params["ln1_w"], params["ln1_b"])
    Fh = jax.nn.relu(jnp.einsum("bnd,ed->bne", S1, params["W1"]) + params["b1"])
    Ff = jnp.einsum("bnd,ed->bne", Fh, params["W2"]) + params["b2"]
    F2 = ln(Ff + S1, params["ln2_w"], params["ln2_b"])
    logit = jnp.einsum("bnd,d->bn", F2, params["Wp"][0]) + params["bp"][0, 0]
    return jax.nn.sigmoid(logit), attn_w


# --------------------------------- main ------------------------------------ #
if __name__ == "__main__":
    num_q, n, d, num_heads, B = 10, 8, 32, 4, 8

    key = jax.random.PRNGKey(0)
    ks = jax.random.split(key, 24)
    normal = lambda k, s, sc: (sc * jax.random.normal(k, s)).astype(jnp.float32)

    params = {
        "M": normal(ks[0], (num_q * 2, d), 0.5),
        "E": normal(ks[1], (num_q, d), 0.5),
        "P": normal(ks[2], (n, d), math.sqrt(2.0 / d)),     # kaiming_normal_
        "Wq": normal(ks[3], (d, d), 0.1), "bq": normal(ks[4], (1, d), 0.05),
        "Wk": normal(ks[5], (d, d), 0.1), "bk": normal(ks[6], (1, d), 0.05),
        "Wv": normal(ks[7], (d, d), 0.1), "bv": normal(ks[8], (1, d), 0.05),
        "Wo": normal(ks[9], (d, d), 0.1), "bo": normal(ks[10], (1, d), 0.05),
        "ln1_w": jnp.ones((1, d), jnp.float32), "ln1_b": jnp.zeros((1, d), jnp.float32),
        "W1": normal(ks[11], (d, d), 0.1), "b1": normal(ks[12], (1, d), 0.05),
        "W2": normal(ks[13], (d, d), 0.1), "b2": normal(ks[14], (1, d), 0.05),
        "ln2_w": jnp.ones((1, d), jnp.float32), "ln2_b": jnp.zeros((1, d), jnp.float32),
        "Wp": normal(ks[15], (1, d), 0.1), "bp": normal(ks[16], (1, 1), 0.05),
    }

    q = jax.random.randint(ks[17], (B, n), 0, num_q, dtype=jnp.int32)
    r = jax.random.randint(ks[18], (B, n), 0, 2, dtype=jnp.int32)
    qry = jax.random.randint(ks[19], (B, n), 0, num_q, dtype=jnp.int32)

    p, attn_w = sakt_forward(q, r, qry, params, num_q=num_q, num_heads=num_heads)
    jax.block_until_ready((p, attn_w))

    p_ref, attn_ref = sakt_reference(q, r, qry, params, num_q=num_q, num_heads=num_heads)
    assert p.shape == (B, n) and attn_w.shape == (B, n, n)
    assert jnp.allclose(p, p_ref, atol=2e-3), "p mismatch vs reference"
    assert jnp.allclose(attn_w, attn_ref, atol=2e-3), "attn_weights mismatch vs reference"

    print("KERNEL_OK")
</pallas_src>

<mosaic_0001>
module attributes {stable_mosaic.version = 11 : i64} {
  func.func @sakt_kernel(%arg0: i32, %arg1: memref<8x8x32xf32, #tpu.memory_space<vmem>>, %arg2: memref<8x8x32xf32, #tpu.memory_space<vmem>>, %arg3: memref<8x32xf32, #tpu.memory_space<vmem>>, %arg4: memref<8x8xf32, #tpu.memory_space<vmem>>, %arg5: memref<4x32x32xf32, #tpu.memory_space<vmem>>, %arg6: memref<32x64xf32, #tpu.memory_space<vmem>>, %arg7: memref<12x32xf32, #tpu.memory_space<vmem>>, %arg8: memref<1x64xf32, #tpu.memory_space<vmem>>, %arg9: memref<8x8x8xf32, #tpu.memory_space<vmem>>) attributes {dimension_semantics = [#tpu.dimension_semantics<parallel>], iteration_bounds = array<i64: 1>, scalar_prefetch = 0 : i64, scratch_operands = 0 : i64, tpu.core_type = #tpu.core_type<tc>, window_params = [{transform_indices = @transform_0, window_bounds = array<i64: 8, 8, 32>}, {transform_indices = @transform_1, window_bounds = array<i64: 8, 8, 32>}, {pipeline_mode = #tpu.pipeline_mode<synchronous>, transform_indices = @transform_2, window_bounds = array<i64: 8, 32>}, {pipeline_mode = #tpu.pipeline_mode<synchronous>, transform_indices = @transform_3, window_bounds = array<i64: 8, 8>}, {pipeline_mode = #tpu.pipeline_mode<synchronous>, transform_indices = @transform_4, window_bounds = array<i64: 4, 32, 32>}, {pipeline_mode = #tpu.pipeline_mode<synchronous>, transform_indices = @transform_5, window_bounds = array<i64: 32, 64>}, {pipeline_mode = #tpu.pipeline_mode<synchronous>, transform_indices = @transform_6, window_bounds = array<i64: 12, 32>}, {transform_indices = @transform_7, window_bounds = array<i64: 1, 64>}, {transform_indices = @transform_8, window_bounds = array<i64: 8, 8, 8>}]} {
    %c0 = arith.constant 0 : index
    %c0_0 = arith.constant 0 : index
    %c0_1 = arith.constant 0 : index
    %0 = vector.load %arg1[%c0, %c0_0, %c0_1] : memref<8x8x32xf32, #tpu.memory_space<vmem>>, vector<8x8x32xf32>
    %c0_2 = arith.constant 0 : index
    %c0_3 = arith.constant 0 : index
    %1 = vector.load %arg3[%c0_2, %c0_3] : memref<8x32xf32, #tpu.memory_space<vmem>>, vector<8x32xf32>
    %2 = vector.shape_cast %1 : vector<8x32xf32> to vector<1x8x32xf32>
    %3 = vector.broadcast %2 : vector<1x8x32xf32> to vector<8x8x32xf32>
    %4 = arith.addf %0, %3 : vector<8x8x32xf32>
    %5 = vector.shape_cast %4 : vector<8x8x32xf32> to vector<64x32xf32>
    %c0_4 = arith.constant 0 : index
    %c0_5 = arith.constant 0 : index
    %c0_6 = arith.constant 0 : index
    %6 = vector.load %arg2[%c0_4, %c0_5, %c0_6] : memref<8x8x32xf32, #tpu.memory_space<vmem>>, vector<8x8x32xf32>
    %7 = vector.shape_cast %6 : vector<8x8x32xf32> to vector<64x32xf32>
    %c0_7 = arith.constant 0 : index
    %c0_8 = arith.constant 0 : index
    %c0_9 = arith.constant 0 : index
    %8 = vector.load %arg5[%c0_7, %c0_8, %c0_9] : memref<4x32x32xf32, #tpu.memory_space<vmem>>, vector<1x32x32xf32>
    %9 = vector.shape_cast %8 : vector<1x32x32xf32> to vector<32x32xf32>
    %cst = arith.constant dense<0.000000e+00> : vector<64x32xf32>
    %10 = tpu.matmul %7, %9, %cst {dimension_numbers = #tpu.dot_dimension_numbers<[1], [0], [0], [1], [0, 0, 1, 1], [], []>} : vector<64x32xf32>, vector<32x32xf32>, vector<64x32xf32> -> vector<64x32xf32>
    %c0_10 = arith.constant 0 : index
    %c0_11 = arith.constant 0 : index
    %11 = vector.load %arg7[%c0_10, %c0_11] : memref<12x32xf32, #tpu.memory_space<vmem>>, vector<1x32xf32>
    %12 = vector.broadcast %11 : vector<1x32xf32> to vector<64x32xf32>
    %13 = arith.addf %10, %12 : vector<64x32xf32>
    %c0_12 = arith.constant 0 : index
    %c0_13 = arith.constant 0 : index
    %14 = vector.load %arg6[%c0_12, %c0_13] : memref<32x64xf32, #tpu.memory_space<vmem>>, vector<32x64xf32>
    %cst_14 = arith.constant dense<0.000000e+00> : vector<64x64xf32>
    %15 = tpu.matmul %5, %14, %cst_14 {dimension_numbers = #tpu.dot_dimension_numbers<[1], [0], [0], [1], [0, 0, 1, 1], [], []>} : vector<64x32xf32>, vector<32x64xf32>, vector<64x64xf32> -> vector<64x64xf32>
    %16 = vector.extract_strided_slice %15 {offsets = [0, 0], sizes = [64, 32], strides = [1, 1]} : vector<64x64xf32> to vector<64x32xf32>
    %c1 = arith.constant 1 : index
    %c0_15 = arith.constant 0 : index
    %17 = vector.load %arg7[%c1, %c0_15] : memref<12x32xf32, #tpu.memory_space<vmem>>, vector<1x32xf32>
    %18 = vector.broadcast %17 : vector<1x32xf32> to vector<64x32xf32>
    %19 = arith.addf %16, %18 : vector<64x32xf32>
    %20 = vector.extract_strided_slice %15 {offsets = [0, 32], sizes = [64, 32], strides = [1, 1]} : vector<64x64xf32> to vector<64x32xf32>
    %c2 = arith.constant 2 : index
    %c0_16 = arith.constant 0 : index
    %21 = vector.load %arg7[%c2, %c0_16] : memref<12x32xf32, #tpu.memory_space<vmem>>, vector<1x32xf32>
    %22 = vector.broadcast %21 : vector<1x32xf32> to vector<64x32xf32>
    %23 = arith.addf %20, %22 : vector<64x32xf32>
    %24 = vector.shape_cast %13 : vector<64x32xf32> to vector<8x8x32xf32>
    %25 = vector.shape_cast %19 : vector<64x32xf32> to vector<8x8x32xf32>
    %26 = vector.shape_cast %23 : vector<64x32xf32> to vector<8x8x32xf32>
    %27 = vector.extract_strided_slice %24 {offsets = [0, 0, 0], sizes = [8, 8, 8], strides = [1, 1, 1]} : vector<8x8x32xf32> to vector<8x8x8xf32>
    %28 = vector.extract_strided_slice %25 {offsets = [0, 0, 0], sizes = [8, 8, 8], strides = [1, 1, 1]} : vector<8x8x32xf32> to vector<8x8x8xf32>
    "tpu.trace_start"() <{level = 10 : i32, message = "bqe,bke->bqk"}> : () -> ()
    %cst_17 = arith.constant dense<0.000000e+00> : vector<8x8x8xf32>
    %29 = tpu.matmul %27, %28, %cst_17 {dimension_numbers = #tpu.dot_dimension_numbers<[2], [2], [1], [1], [0, 0, 0, 1, 1, 1], [0], [0]>} : vector<8x8x8xf32>, vector<8x8x8xf32>, vector<8x8x8xf32> -> vector<8x8x8xf32>
    "tpu.trace_stop"() : () -> ()
    %30 = vector.extract_strided_slice %24 {offsets = [0, 0, 8], sizes = [8, 8, 8], strides = [1, 1, 1]} : vector<8x8x32xf32> to vector<8x8x8xf32>
    %31 = vector.extract_strided_slice %25 {offsets = [0, 0, 8], sizes = [8, 8, 8], strides = [1, 1, 1]} : vector<8x8x32xf32> to vector<8x8x8xf32>
    "tpu.trace_start"() <{level = 10 : i32, message = "bqe,bke->bqk"}> : () -> ()
    %cst_18 = arith.constant dense<0.000000e+00> : vector<8x8x8xf32>
    %32 = tpu.matmul %30, %31, %cst_18 {dimension_numbers = #tpu.dot_dimension_numbers<[2], [2], [1], [1], [0, 0, 0, 1, 1, 1], [0], [0]>} : vector<8x8x8xf32>, vector<8x8x8xf32>, vector<8x8x8xf32> -> vector<8x8x8xf32>
    "tpu.trace_stop"() : () -> ()
    %33 = vector.extract_strided_slice %24 {offsets = [0, 0, 16], sizes = [8, 8, 8], strides = [1, 1, 1]} : vector<8x8x32xf32> to vector<8x8x8xf32>
    %34 = vector.extract_strided_slice %25 {offsets = [0, 0, 16], sizes = [8, 8, 8], strides = [1, 1, 1]} : vector<8x8x32xf32> to vector<8x8x8xf32>
    "tpu.trace_start"() <{level = 10 : i32, message = "bqe,bke->bqk"}> : () -> ()
    %cst_19 = arith.constant dense<0.000000e+00> : vector<8x8x8xf32>
    %35 = tpu.matmul %33, %34, %cst_19 {dimension_numbers = #tpu.dot_dimension_numbers<[2], [2], [1], [1], [0, 0, 0, 1, 1, 1], [0], [0]>} : vector<8x8x8xf32>, vector<8x8x8xf32>, vector<8x8x8xf32> -> vector<8x8x8xf32>
    "tpu.trace_stop"() : () -> ()
    %36 = vector.extract_strided_slice %24 {offsets = [0, 0, 24], sizes = [8, 8, 8], strides = [1, 1, 1]} : vector<8x8x32xf32> to vector<8x8x8xf32>
    %37 = vector.extract_strided_slice %25 {offsets = [0, 0, 24], sizes = [8, 8, 8], strides = [1, 1, 1]} : vector<8x8x32xf32> to vector<8x8x8xf32>
    "tpu.trace_start"() <{level = 10 : i32, message = "bqe,bke->bqk"}> : () -> ()
    %cst_20 = arith.constant dense<0.000000e+00> : vector<8x8x8xf32>
    %38 = tpu.matmul %36, %37, %cst_20 {dimension_numbers = #tpu.dot_dimension_numbers<[2], [2], [1], [1], [0, 0, 0, 1, 1, 1], [0], [0]>} : vector<8x8x8xf32>, vector<8x8x8xf32>, vector<8x8x8xf32> -> vector<8x8x8xf32>
    "tpu.trace_stop"() : () -> ()
    %39 = vector.shape_cast %29 : vector<8x8x8xf32> to vector<1x8x8x8xf32>
    %40 = vector.shape_cast %32 : vector<8x8x8xf32> to vector<1x8x8x8xf32>
    %41 = vector.shape_cast %35 : vector<8x8x8xf32> to vector<1x8x8x8xf32>
    %42 = vector.shape_cast %38 : vector<8x8x8xf32> to vector<1x8x8x8xf32>
    %43 = tpu.concatenate %39, %40, %41, %42 in 0 : vector<1x8x8x8xf32>, vector<1x8x8x8xf32>, vector<1x8x8x8xf32>, vector<1x8x8x8xf32> -> vector<4x8x8x8xf32>
    %c0_21 = arith.constant 0 : index
    %c0_22 = arith.constant 0 : index
    %44 = vector.load %arg4[%c0_21, %c0_22] : memref<8x8xf32, #tpu.memory_space<vmem>>, vector<8x8xf32>
    %45 = vector.shape_cast %44 : vector<8x8xf32> to vector<1x1x8x8xf32>
    %46 = vector.broadcast %45 : vector<1x1x8x8xf32> to vector<4x8x8x8xf32>
    %47 = arith.addf %43, %46 : vector<4x8x8x8xf32>
    %cst_23 = arith.constant dense<0xFF800000> : vector<4x8x8xf32>
    %48 = vector.multi_reduction <maximumf>, %47, %cst_23 [3] : vector<4x8x8x8xf32> to vector<4x8x8xf32>
    %49 = vector.shape_cast %48 : vector<4x8x8xf32> to vector<4x8x8x1xf32>
    %50 = vector.broadcast %49 : vector<4x8x8x1xf32> to vector<4x8x8x8xf32>
    %51 = arith.subf %47, %50 : vector<4x8x8x8xf32>
    %52 = math.exp %51 : vector<4x8x8x8xf32>
    %cst_24 = arith.constant dense<0.000000e+00> : vector<4x8x8xf32>
    %53 = vector.multi_reduction <add>, %52, %cst_24 [3] : vector<4x8x8x8xf32> to vector<4x8x8xf32>
    %54 = vector.shape_cast %53 : vector<4x8x8xf32> to vector<4x8x8x1xf32>
    %55 = tpu.reciprocal %54 {approx = true} : vector<4x8x8x1xf32> -> vector<4x8x8x1xf32>
    %56 = vector.broadcast %55 : vector<4x8x8x1xf32> to vector<4x8x8x8xf32>
    %57 = arith.mulf %52, %56 : vector<4x8x8x8xf32>
    %cst_25 = arith.constant dense<0.000000e+00> : vector<8x8x8xf32>
    %58 = vector.multi_reduction <add>, %57, %cst_25 [0] : vector<4x8x8x8xf32> to vector<8x8x8xf32>
    %cst_26 = arith.constant 4.000000e+00 : f32
    %59 = vector.broadcast %cst_26 : f32 to vector<8x8x8xf32>
    %60 = arith.divf %58, %59 : vector<8x8x8xf32>
    %c0_27 = arith.constant 0 : index
    %c0_28 = arith.constant 0 : index
    %c0_29 = arith.constant 0 : index
    %61 = vector.load %arg9[%c0_27, %c0_28, %c0_29] : memref<8x8x8xf32, #tpu.memory_space<vmem>>, vector<8x8x8xf32>
    tpu.vector_store %arg9[%c0_27, %c0_28, %c0_29], %60 {strides = array<i32>} : memref<8x8x8xf32, #tpu.memory_space<vmem>>, vector<8x8x8xf32>,
    %62 = vector.extract_strided_slice %57 {offsets = [0, 0, 0, 0], sizes = [1, 8, 8, 8], strides = [1, 1, 1, 1]} : vector<4x8x8x8xf32> to vector<1x8x8x8xf32>
    %63 = vector.shape_cast %62 : vector<1x8x8x8xf32> to vector<8x8x8xf32>
    %64 = vector.extract_strided_slice %26 {offsets = [0, 0, 0], sizes = [8, 8, 8], strides = [1, 1, 1]} : vector<8x8x32xf32> to vector<8x8x8xf32>
    "tpu.trace_start"() <{level = 10 : i32, message = "bqk,bke->bqe"}> : () -> ()
    %cst_30 = arith.constant dense<0.000000e+00> : vector<8x8x8xf32>
    %65 = tpu.matmul %63, %64, %cst_30 {dimension_numbers = #tpu.dot_dimension_numbers<[2], [1], [1], [2], [0, 0, 0, 1, 1, 2], [0], [0]>} : vector<8x8x8xf32>, vector<8x8x8xf32>, vector<8x8x8xf32> -> vector<8x8x8xf32>
    "tpu.trace_stop"() : () -> ()
    %66 = vector.extract_strided_slice %57 {offsets = [1, 0, 0, 0], sizes = [1, 8, 8, 8], strides = [1, 1, 1, 1]} : vector<4x8x8x8xf32> to vector<1x8x8x8xf32>
    %67 = vector.shape_cast %66 : vector<1x8x8x8xf32> to vector<8x8x8xf32>
    %68 = vector.extract_strided_slice %26 {offsets = [0, 0, 8], sizes = [8, 8, 8], strides = [1, 1, 1]} : vector<8x8x32xf32> to vector<8x8x8xf32>
    "tpu.trace_start"() <{level = 10 : i32, message = "bqk,bke->bqe"}> : () -> ()
    %cst_31 = arith.constant dense<0.000000e+00> : vector<8x8x8xf32>
    %69 = tpu.matmul %67, %68, %cst_31 {dimension_numbers = #tpu.dot_dimension_numbers<[2], [1], [1], [2], [0, 0, 0, 1, 1, 2], [0], [0]>} : vector<8x8x8xf32>, vector<8x8x8xf32>, vector<8x8x8xf32> -> vector<8x8x8xf32>
    "tpu.trace_stop"() : () -> ()
    %70 = vector.extract_strided_slice %57 {offsets = [2, 0, 0, 0], sizes = [1, 8, 8, 8], strides = [1, 1, 1, 1]} : vector<4x8x8x8xf32> to vector<1x8x8x8xf32>
    %71 = vector.shape_cast %70 : vector<1x8x8x8xf32> to vector<8x8x8xf32>
    %72 = vector.extract_strided_slice %26 {offsets = [0, 0, 16], sizes = [8, 8, 8], strides = [1, 1, 1]} : vector<8x8x32xf32> to vector<8x8x8xf32>
    "tpu.trace_start"() <{level = 10 : i32, message = "bqk,bke->bqe"}> : () -> ()
    %cst_32 = arith.constant dense<0.000000e+00> : vector<8x8x8xf32>
    %73 = tpu.matmul %71, %72, %cst_32 {dimension_numbers = #tpu.dot_dimension_numbers<[2], [1], [1], [2], [0, 0, 0, 1, 1, 2], [0], [0]>} : vector<8x8x8xf32>, vector<8x8x8xf32>, vector<8x8x8xf32> -> vector<8x8x8xf32>
    "tpu.trace_stop"() : () -> ()
    %74 = vector.extract_strided_slice %57 {offsets = [3, 0, 0, 0], sizes = [1, 8, 8, 8], strides = [1, 1, 1, 1]} : vector<4x8x8x8xf32> to vector<1x8x8x8xf32>
    %75 = vector.shape_cast %74 : vector<1x8x8x8xf32> to vector<8x8x8xf32>
    %76 = vector.extract_strided_slice %26 {offsets = [0, 0, 24], sizes = [8, 8, 8], strides = [1, 1, 1]} : vector<8x8x32xf32> to vector<8x8x8xf32>
    "tpu.trace_start"() <{level = 10 : i32, message = "bqk,bke->bqe"}> : () -> ()
    %cst_33 = arith.constant dense<0.000000e+00> : vector<8x8x8xf32>
    %77 = tpu.matmul %75, %76, %cst_33 {dimension_numbers = #tpu.dot_dimension_numbers<[2], [1], [1], [2], [0, 0, 0, 1, 1, 2], [0], [0]>} : vector<8x8x8xf32>, vector<8x8x8xf32>, vector<8x8x8xf32> -> vector<8x8x8xf32>
    "tpu.trace_stop"() : () -> ()
    %78 = tpu.concatenate %65, %69, %73, %77 in 2 : vector<8x8x8xf32>, vector<8x8x8xf32>, vector<8x8x8xf32>, vector<8x8x8xf32> -> vector<8x8x32xf32>
    %79 = vector.shape_cast %78 : vector<8x8x32xf32> to vector<64x32xf32>
    %c1_34 = arith.constant 1 : index
    %c0_35 = arith.constant 0 : index
    %c0_36 = arith.constant 0 : index
    %80 = vector.load %arg5[%c1_34, %c0_35, %c0_36] : memref<4x32x32xf32, #tpu.memory_space<vmem>>, vector<1x32x32xf32>
    %81 = vector.shape_cast %80 : vector<1x32x32xf32> to vector<32x32xf32>
    %cst_37 = arith.constant dense<0.000000e+00> : vector<64x32xf32>
    %82 = tpu.matmul %79, %81, %cst_37 {dimension_numbers = #tpu.dot_dimension_numbers<[1], [0], [0], [1], [0, 0, 1, 1], [], []>} : vector<64x32xf32>, vector<32x32xf32>, vector<64x32xf32> -> vector<64x32xf32>
    %c3 = arith.constant 3 : index
    %c0_38 = arith.constant 0 : index
    %83 = vector.load %arg7[%c3, %c0_38] : memref<12x32xf32, #tpu.memory_space<vmem>>, vector<1x32xf32>
    %84 = vector.broadcast %83 : vector<1x32xf32> to vector<64x32xf32>
    %85 = arith.addf %82, %84 : vector<64x32xf32>
    %86 = arith.addf %85, %7 : vector<64x32xf32>
    %c4 = arith.constant 4 : index
    %c0_39 = arith.constant 0 : index
    %87 = vector.load %arg7[%c4, %c0_39] : memref<12x32xf32, #tpu.memory_space<vmem>>, vector<1x32xf32>
    %c5 = arith.constant 5 : index
    %c0_40 = arith.constant 0 : index
    %88 = vector.load %arg7[%c5, %c0_40] : memref<12x32xf32, #tpu.memory_space<vmem>>, vector<1x32xf32>
    %cst_41 = arith.constant dense<0.000000e+00> : vector<64xf32>
    %89 = vector.multi_reduction <add>, %86, %cst_41 [1] : vector<64x32xf32> to vector<64xf32>
    %90 = vector.shape_cast %89 : vector<64xf32> to vector<64x1xf32>
    %cst_42 = arith.constant 3.200000e+01 : f32
    %91 = vector.broadcast %cst_42 : f32 to vector<64x1xf32>
    %92 = arith.divf %90, %91 : vector<64x1xf32>
    %93 = vector.broadcast %92 : vector<64x1xf32> to vector<64x32xf32>
    %94 = arith.subf %86, %93 : vector<64x32xf32>
    %95 = arith.mulf %94, %94 : vector<64x32xf32>
    %cst_43 = arith.constant dense<0.000000e+00> : vector<64xf32>
    %96 = vector.multi_reduction <add>, %95, %cst_43 [1] : vector<64x32xf32> to vector<64xf32>
    %97 = vector.shape_cast %96 : vector<64xf32> to vector<64x1xf32>
    %cst_44 = arith.constant 3.200000e+01 : f32
    %98 = vector.broadcast %cst_44 : f32 to vector<64x1xf32>
    %99 = arith.divf %97, %98 : vector<64x1xf32>
    %100 = vector.broadcast %92 : vector<64x1xf32> to vector<64x32xf32>
    %101 = arith.subf %86, %100 : vector<64x32xf32>
    %cst_45 = arith.constant 9.99999974E-6 : f32
    %102 = vector.broadcast %cst_45 : f32 to vector<64x1xf32>
    %103 = arith.addf %99, %102 : vector<64x1xf32>
    %104 = math.rsqrt %103 : vector<64x1xf32>
    %105 = vector.broadcast %104 : vector<64x1xf32> to vector<64x32xf32>
    %106 = arith.mulf %101, %105 : vector<64x32xf32>
    %107 = vector.broadcast %87 : vector<1x32xf32> to vector<64x32xf32>
    %108 = arith.mulf %106, %107 : vector<64x32xf32>
    %109 = vector.broadcast %88 : vector<1x32xf32> to vector<64x32xf32>
    %110 = arith.addf %108, %109 : vector<64x32xf32>
    %c2_46 = arith.constant 2 : index
    %c0_47 = arith.constant 0 : index
    %c0_48 = arith.constant 0 : index
    %111 = vector.load %arg5[%c2_46, %c0_47, %c0_48] : memref<4x32x32xf32, #tpu.memory_space<vmem>>, vector<1x32x32xf32>
    %112 = vector.shape_cast %111 : vector<1x32x32xf32> to vector<32x32xf32>
    %cst_49 = arith.constant dense<0.000000e+00> : vector<64x32xf32>
    %113 = tpu.matmul %110, %112, %cst_49 {dimension_numbers = #tpu.dot_dimension_numbers<[1], [0], [0], [1], [0, 0, 1, 1], [], []>} : vector<64x32xf32>, vector<32x32xf32>, vector<64x32xf32> -> vector<64x32xf32>
    %c6 = arith.constant 6 : index
    %c0_50 = arith.constant 0 : index
    %114 = vector.load %arg7[%c6, %c0_50] : memref<12x32xf32, #tpu.memory_space<vmem>>, vector<1x32xf32>
    %115 = vector.broadcast %114 : vector<1x32xf32> to vector<64x32xf32>
    %116 = arith.addf %113, %115 : vector<64x32xf32>
    %cst_51 = arith.constant 0.000000e+00 : f32
    %117 = vector.broadcast %cst_51 : f32 to vector<64x32xf32>
    %118 = arith.maximumf %116, %117 : vector<64x32xf32>
    %c3_52 = arith.constant 3 : index
    %c0_53 = arith.constant 0 : index
    %c0_54 = arith.constant 0 : index
    %119 = vector.load %arg5[%c3_52, %c0_53, %c0_54] : memref<4x32x32xf32, #tpu.memory_space<vmem>>, vector<1x32x32xf32>
    %120 = vector.shape_cast %119 : vector<1x32x32xf32> to vector<32x32xf32>
    %cst_55 = arith.constant dense<0.000000e+00> : vector<64x32xf32>
    %121 = tpu.matmul %118, %120, %cst_55 {dimension_numbers = #tpu.dot_dimension_numbers<[1], [0], [0], [1], [0, 0, 1, 1], [], []>} : vector<64x32xf32>, vector<32x32xf32>, vector<64x32xf32> -> vector<64x32xf32>
    %c7 = arith.constant 7 : index
    %c0_56 = arith.constant 0 : index
    %122 = vector.load %arg7[%c7, %c0_56] : memref<12x32xf32, #tpu.memory_space<vmem>>, vector<1x32xf32>
    %123 = vector.broadcast %122 : vector<1x32xf32> to vector<64x32xf32>
    %124 = arith.addf %121, %123 : vector<64x32xf32>
    %125 = arith.addf %124, %110 : vector<64x32xf32>
    %c8 = arith.constant 8 : index
    %c0_57 = arith.constant 0 : index
    %126 = vector.load %arg7[%c8, %c0_57] : memref<12x32xf32, #tpu.memory_space<vmem>>, vector<1x32xf32>
    %c9 = arith.constant 9 : index
    %c0_58 = arith.constant 0 : index
    %127 = vector.load %arg7[%c9, %c0_58] : memref<12x32xf32, #tpu.memory_space<vmem>>, vector<1x32xf32>
    %cst_59 = arith.constant dense<0.000000e+00> : vector<64xf32>
    %128 = vector.multi_reduction <add>, %125, %cst_59 [1] : vector<64x32xf32> to vector<64xf32>
    %129 = vector.shape_cast %128 : vector<64xf32> to vector<64x1xf32>
    %cst_60 = arith.constant 3.200000e+01 : f32
    %130 = vector.broadcast %cst_60 : f32 to vector<64x1xf32>
    %131 = arith.divf %129, %130 : vector<64x1xf32>
    %132 = vector.broadcast %131 : vector<64x1xf32> to vector<64x32xf32>
    %133 = arith.subf %125, %132 : vector<64x32xf32>
    %134 = arith.mulf %133, %133 : vector<64x32xf32>
    %cst_61 = arith.constant dense<0.000000e+00> : vector<64xf32>
    %135 = vector.multi_reduction <add>, %134, %cst_61 [1] : vector<64x32xf32> to vector<64xf32>
    %136 = vector.shape_cast %135 : vector<64xf32> to vector<64x1xf32>
    %cst_62 = arith.constant 3.200000e+01 : f32
    %137 = vector.broadcast %cst_62 : f32 to vector<64x1xf32>
    %138 = arith.divf %136, %137 : vector<64x1xf32>
    %139 = vector.broadcast %131 : vector<64x1xf32> to vector<64x32xf32>
    %140 = arith.subf %125, %139 : vector<64x32xf32>
    %cst_63 = arith.constant 9.99999974E-6 : f32
    %141 = vector.broadcast %cst_63 : f32 to vector<64x1xf32>
    %142 = arith.addf %138, %141 : vector<64x1xf32>
    %143 = math.rsqrt %142 : vector<64x1xf32>
    %144 = vector.broadcast %143 : vector<64x1xf32> to vector<64x32xf32>
    %145 = arith.mulf %140, %144 : vector<64x32xf32>
    %146 = vector.broadcast %126 : vector<1x32xf32> to vector<64x32xf32>
    %147 = arith.mulf %145, %146 : vector<64x32xf32>
    %148 = vector.broadcast %127 : vector<1x32xf32> to vector<64x32xf32>
    %149 = arith.addf %147, %148 : vector<64x32xf32>
    %c10 = arith.constant 10 : index
    %c0_64 = arith.constant 0 : index
    %150 = vector.load %arg7[%c10, %c0_64] : memref<12x32xf32, #tpu.memory_space<vmem>>, vector<1x32xf32>
    "tpu.trace_start"() <{level = 10 : i32, message = "od,rd->or"}> : () -> ()
    %cst_65 = arith.constant dense<0.000000e+00> : vector<1x64xf32>
    %151 = tpu.matmul %150, %149, %cst_65 {dimension_numbers = #tpu.dot_dimension_numbers<[1], [1], [0], [0], [0, 0, 1, 0], [], []>} : vector<1x32xf32>, vector<64x32xf32>, vector<1x64xf32> -> vector<1x64xf32>
    "tpu.trace_stop"() : () -> ()
    %c11 = arith.constant 11 : index
    %c0_66 = arith.constant 0 : index
    %152 = vector.load %arg7[%c11, %c0_66] : memref<12x32xf32, #tpu.memory_space<vmem>>, vector<1x1xf32>
    %153 = vector.broadcast %152 : vector<1x1xf32> to vector<1x64xf32>
    %154 = arith.addf %151, %153 : vector<1x64xf32>
    %155 = arith.negf %154 : vector<1x64xf32>
    %156 = math.exp %155 : vector<1x64xf32>
    %cst_67 = arith.constant 1.000000e+00 : f32
    %157 = vector.broadcast %cst_67 : f32 to vector<1x64xf32>
    %158 = arith.addf %157, %156 : vector<1x64xf32>
    %159 = arith.divf %157, %158 : vector<1x64xf32>
    %c0_68 = arith.constant 0 : index
    %c0_69 = arith.constant 0 : index
    %160 = vector.load %arg8[%c0_68, %c0_69] : memref<1x64xf32, #tpu.memory_space<vmem>>, vector<1x64xf32>
    tpu.vector_store %arg8[%c0_68, %c0_69], %159 {strides = array<i32>} : memref<1x64xf32, #tpu.memory_space<vmem>>, vector<1x64xf32>,
    return
  }
  func.func @transform_0(%arg0: i32) -> (i32, i32, i32) {
    %c0_i32 = arith.constant 0 : i32
    %c0_i32_0 = arith.constant 0 : i32
    %c0_i32_1 = arith.constant 0 : i32
    return %arg0, %c0_i32, %c0_i32_0 : i32, i32, i32
  }
  func.func @transform_1(%arg0: i32) -> (i32, i32, i32) {
    %c0_i32 = arith.constant 0 : i32
    %c0_i32_0 = arith.constant 0 : i32
    %c0_i32_1 = arith.constant 0 : i32
    return %arg0, %c0_i32, %c0_i32_0 : i32, i32, i32
  }
  func.func @transform_2(%arg0: i32) -> (i32, i32) {
    %c0_i32 = arith.constant 0 : i32
    %c0_i32_0 = arith.constant 0 : i32
    %c0_i32_1 = arith.constant 0 : i32
    return %c0_i32, %c0_i32_0 : i32, i32
  }
  func.func @transform_3(%arg0: i32) -> (i32, i32) {
    %c0_i32 = arith.constant 0 : i32
    %c0_i32_0 = arith.constant 0 : i32
    %c0_i32_1 = arith.constant 0 : i32
    return %c0_i32, %c0_i32_0 : i32, i32
  }
  func.func @transform_4(%arg0: i32) -> (i32, i32, i32) {
    %c0_i32 = arith.constant 0 : i32
    %c0_i32_0 = arith.constant 0 : i32
    %c0_i32_1 = arith.constant 0 : i32
    %c0_i32_2 = arith.constant 0 : i32
    return %c0_i32, %c0_i32_0, %c0_i32_1 : i32, i32, i32
  }
  func.func @transform_5(%arg0: i32) -> (i32, i32) {
    %c0_i32 = arith.constant 0 : i32
    %c0_i32_0 = arith.constant 0 : i32
    %c0_i32_1 = arith.constant 0 : i32
    return %c0_i32, %c0_i32_0 : i32, i32
  }
  func.func @transform_6(%arg0: i32) -> (i32, i32) {
    %c0_i32 = arith.constant 0 : i32
    %c0_i32_0 = arith.constant 0 : i32
    %c0_i32_1 = arith.constant 0 : i32
    return %c0_i32, %c0_i32_0 : i32, i32
  }
  func.func @transform_7(%arg0: i32) -> (i32, i32) {
    %c0_i32 = arith.constant 0 : i32
    %c0_i32_0 = arith.constant 0 : i32
    return %arg0, %c0_i32 : i32, i32
  }
  func.func @transform_8(%arg0: i32) -> (i32, i32, i32) {
    %c0_i32 = arith.constant 0 : i32
    %c0_i32_0 = arith.constant 0 : i32
    %c0_i32_1 = arith.constant 0 : i32
    return %arg0, %c0_i32, %c0_i32_0 : i32, i32, i32
  }
}

</mosaic_0001>

<bundles_post_ra>
// kernel: tpu_custom_call.1
= control target key start
LH: loop header
LB: loop body
LE: loop exit
PB: predicated region body
PF: predicated region fallthrough
CT: control target
= control target key end

     0   :  { %14 = vsyncpa [#allocation3], 0  ;;  %s9552_s0 = inlined_call_operand.hbm [shape: f32[8,8,32], index: 0, kind: input, shape index: {}]   ;;  %s9553_s1 = inlined_call_operand.hbm [shape: f32[8,8,32], index: 1, kind: input, shape index: {}]   ;;  %s9554_s2 = inlined_call_operand.hbm [shape: f32[8,32], index: 2, kind: input, shape index: {}]   ;;  %s9555_s3 = inlined_call_operand.hbm [shape: f32[8,8], index: 3, kind: input, shape index: {}]   ;;  %s9556_s4 = inlined_call_operand.hbm [shape: f32[4,32,32], index: 4, kind: input, shape index: {}]   ;;  %s9557_s5 = inlined_call_operand.hbm [shape: f32[32,64], index: 5, kind: input, shape index: {}]   ;;  %s9558_s6 = inlined_call_operand.vmem [shape: f32[12,32], index: 6, kind: input, shape index: {}]   ;;  %s9559_s7 = inlined_call_operand.hbm [shape: f32[1,64], index: 7, kind: output, shape index: {0}]   ;;  %s9560_s8 = inlined_call_operand.hbm [shape: f32[8,8,8], index: 8, kind: output, shape index: {1}]  }
   0x1   :  { %15 = vsyncpa [#allocation6], 0 }
   0x2   :  { %16 = vsyncpa [#allocation9], 0 }
   0x3   :  { %17 = vsyncpa [#allocation12], 0 }
   0x4   :  { %18 = vsyncpa [#allocation4], 0 }
   0x5   :  { %19 = vsyncpa [#allocation15], 0  ;;  %s8018_s27 = smov [#allocation5]   ;;  %s8019_s29 = smov [#allocation8]  }
   0x6   :  { %s37_s28 = sshll.u32 %s8018_s27, 4  ;;  %s60_s30 = sshll.u32 %s8019_s29, 4  ;;  %s38_s28 = int_to_ptr.vmem [resolvable:$true] %s37_s28  ;;  %s61_s30 = int_to_ptr.vmem [resolvable:$true] %s60_s30 }
   0x7   :  { %s7830_s11 = scalar_lea.hbm %s9553_s1, 1024 }
   0x8   :  { %p7831_p0 = scmp.ne.s32.totalorder %s9553_s1, %s7830_s11  ;;  %p7834_p1 = scmp.lt.u32.totalorder %s7830_s11, %s9553_s1 }
   0xa   :  { %p7836_p2 = pnand %p7834_p1, %p7831_p0 }
   0xc   :  { %7839 = shalt.err (!%p7836_p2)
}
   0xd   :  { %s7840_s16 = scalar_lea.vmem %s38_s28, 1024  ;;  %p7845_p4 = scmp.lt.s32.totalorder %s38_s28, %s38_s28 }
   0xe   :  { %p7841_p3 = scmp.ne.s32.totalorder %s38_s28, %s7840_s16  ;;  %p7846_p5 = scmp.lt.s32.totalorder %s7840_s16, %s7840_s16 }
  0x10   :  { %p7847_p6 = por %p7846_p5, %p7845_p4 }
  0x12   :  { %p7848_p7 = pnand %p7847_p6, %p7841_p3 }
  0x14   :  { %7851 = shalt.err (!%p7848_p7)
}
  0x15   :  { %s8020_s17 = smov 128   ;;  %s8021_s18 = smov 8  }
  0x16   :  { %43 = dma.hbm_to_vmem [thread:$0]  %s9553_s1, 1024, %s38_s28, [#allocation6], %s8020_s17, %s8020_s17, %s8021_s18  }
  0x17   :  { %s7852_s23 = scalar_lea.hbm %s9555_s3, 128 }
  0x18   :  { %p7853_p8 = scmp.ne.s32.totalorder %s9555_s3, %s7852_s23  ;;  %p7856_p9 = scmp.lt.u32.totalorder %s7852_s23, %s9555_s3 }
  0x1a   :  { %p7858_p10 = pnand %p7856_p9, %p7853_p8 }
  0x1c   :  { %7861 = shalt.err (!%p7858_p10)
}
  0x1d   :  { %s7862_s29 = scalar_lea.vmem %s61_s30, 128  ;;  %p7867_p12 = scmp.lt.s32.totalorder %s61_s30, %s61_s30 }
  0x1e   :  { %p7863_p11 = scmp.ne.s32.totalorder %s61_s30, %s7862_s29  ;;  %p7868_p13 = scmp.lt.s32.totalorder %s7862_s29, %s7862_s29 }
  0x20   :  { %p7869_p0 = por %p7868_p13, %p7867_p12 }
  0x22   :  { %p7870_p1 = pnand %p7869_p0, %p7863_p11 }
  0x24   :  { %7873 = shalt.err (!%p7870_p1)
}
  0x25   :  { %63 = dma.hbm_to_vmem [thread:$0]  %s9555_s3, 128, %s61_s30, [#allocation9]  }
  0x26   :  { %s8022_s9 = smov [#allocation2]   ;;  %s8023_s11 = smov [#allocation7]  }
  0x27   :  { %s25_s10 = sshll.u32 %s8022_s9, 4  ;;  %s50_s12 = sshll.u32 %s8023_s11, 4  ;;  %s26_s10 = int_to_ptr.vmem [resolvable:$true] %s25_s10  ;;  %s51_s12 = int_to_ptr.vmem [resolvable:$true] %s50_s12 }
  0x28   :  { %s7874_s15 = scalar_lea.hbm %s9552_s0, 1024 }
  0x29   :  { %p7875_p2 = scmp.ne.s32.totalorder %s9552_s0, %s7874_s15  ;;  %p7878_p3 = scmp.lt.u32.totalorder %s7874_s15, %s9552_s0 }
  0x2b   :  { %p7880_p4 = pnand %p7878_p3, %p7875_p2 }
  0x2d   :  { %7883 = shalt.err (!%p7880_p4)
}
  0x2e   :  { %s7884_s3 = scalar_lea.vmem %s26_s10, 1024  ;;  %p7889_p6 = scmp.lt.s32.totalorder %s26_s10, %s26_s10 }
  0x2f   :  { %p7885_p5 = scmp.ne.s32.totalorder %s26_s10, %s7884_s3  ;;  %p7890_p7 = scmp.lt.s32.totalorder %s7884_s3, %s7884_s3 }
  0x31   :  { %p7891_p8 = por %p7890_p7, %p7889_p6 }
  0x33   :  { %p7892_p9 = pnand %p7891_p8, %p7885_p5 }
  0x35   :  { %7895 = shalt.err (!%p7892_p9)
}
  0x36   :  { %31 = dma.hbm_to_vmem [thread:$0]  %s9552_s0, 1024, %s26_s10, [#allocation3], %s8020_s17, %s8020_s17, %s8021_s18  }
  0x37   :  { %s7896_s25 = scalar_lea.hbm %s9554_s2, 128 }
  0x38   :  { %p7897_p10 = scmp.ne.s32.totalorder %s9554_s2, %s7896_s25  ;;  %p7900_p11 = scmp.lt.u32.totalorder %s7896_s25, %s9554_s2 }
  0x3a   :  { %p7902_p12 = pnand %p7900_p11, %p7897_p10 }
  0x3c   :  { %7905 = shalt.err (!%p7902_p12)
}
  0x3d   :  { %s7906_s28 = scalar_lea.vmem %s51_s12, 128  ;;  %p7911_p0 = scmp.lt.s32.totalorder %s51_s12, %s51_s12 }
  0x3e   :  { %p7907_p13 = scmp.ne.s32.totalorder %s51_s12, %s7906_s28  ;;  %p7912_p1 = scmp.lt.s32.totalorder %s7906_s28, %s7906_s28 }
  0x40   :  { %p7913_p2 = por %p7912_p1, %p7911_p0 }
  0x42   :  { %p7914_p3 = pnand %p7913_p2, %p7907_p13 }
  0x44   :  { %7917 = shalt.err (!%p7914_p3)
}
  0x45   :  { %53 = dma.hbm_to_vmem [thread:$0]  %s9554_s2, 128, %s51_s12, [#allocation6]  }
  0x46   :  { %s8024_s10 = smov [#allocation10]   ;;  %s8025_s13 = smov [#allocation11]  }
  0x47   :  { %s69_s11 = sshll.u32 %s8024_s10, 4  ;;  %s81_s14 = sshll.u32 %s8025_s13, 4  ;;  %s70_s11 = int_to_ptr.vmem [resolvable:$true] %s69_s11  ;;  %s8141_s14 = int_to_ptr.vmem [resolvable:$true] %s81_s14 }
  0x48   :  { %s7918_s19 = scalar_lea.hbm %s9556_s4, 2048 }
  0x49   :  { %p7919_p4 = scmp.ne.s32.totalorder %s9556_s4, %s7918_s19  ;;  %p7922_p5 = scmp.lt.u32.totalorder %s7918_s19, %s9556_s4 }
  0x4b   :  { %p7924_p6 = pnand %p7922_p5, %p7919_p4 }
  0x4d   :  { %7927 = shalt.err (!%p7924_p6)
}
  0x4e   :  { %s7928_s2 = scalar_lea.vmem %s70_s11, 2048  ;;  %p7933_p8 = scmp.lt.s32.totalorder %s70_s11, %s70_s11 }
  0x4f   :  { %p7929_p7 = scmp.ne.s32.totalorder %s70_s11, %s7928_s2  ;;  %p7934_p9 = scmp.lt.s32.totalorder %s7928_s2, %s7928_s2 }
  0x51   :  { %p7935_p10 = por %p7934_p9, %p7933_p8 }
  0x53   :  { %p7936_p11 = pnand %p7935_p10, %p7929_p7 }
  0x55   :  { %7939 = shalt.err (!%p7936_p11)
}
  0x56   :  { %75 = dma.hbm_to_vmem [thread:$0]  %s9556_s4, 2048, %s70_s11, [#allocation9], %s8020_s17, %s8020_s17, %s8021_s18  }
  0x57   :  { %s7940_s25 = scalar_lea.hbm %s9557_s5, 512 }
  0x58   :  { %p7941_p12 = scmp.ne.s32.totalorder %s9557_s5, %s7940_s25  ;;  %p7944_p13 = scmp.lt.u32.totalorder %s7940_s25, %s9557_s5 }
  0x5a   :  { %p7946_p0 = pnand %p7944_p13, %p7941_p12 }
  0x5c   :  { %7949 = shalt.err (!%p7946_p0)
}
  0x5d   :  { %s7950_s28 = scalar_lea.vmem %s8141_s14, 512  ;;  %p7955_p2 = scmp.lt.s32.totalorder %s8141_s14, %s8141_s14 }
  0x5e   :  { %p7951_p1 = scmp.ne.s32.totalorder %s8141_s14, %s7950_s28  ;;  %p7956_p3 = scmp.lt.s32.totalorder %s7950_s28, %s7950_s28 }
  0x60   :  { %p7957_p4 = por %p7956_p3, %p7955_p2 }
  0x62   :  { %p7958_p5 = pnand %p7957_p4, %p7951_p1 }
  0x64   :  { %7961 = shalt.err (!%p7958_p5)
}
  0x65   :  { %87 = dma.hbm_to_vmem [thread:$0]  %s9557_s5, 512, %s8141_s14, [#allocation12], %s8020_s17, %s8020_s17, %s8021_s18  }
  0x66   :  { %8006 = dma.done.wait [#allocation3], 1024  }
  0x67   :  { %8007 = vsyncadd [#allocation3], 4294966272 }
  0x68   :  { %8008 = dma.done.wait [#allocation6], 1152  }
  0x69   :  { %8009 = vsyncadd [#allocation6], 4294966144 }
  0x6a   :  { %8010 = dma.done.wait [#allocation9], 2176  }
  0x6b   :  { %8011 = vsyncadd [#allocation9], 4294965120 }
  0x6c   :  { %8012 = dma.done.wait [#allocation12], 512  }
  0x6d   :  { %8013 = vsyncadd [#allocation12], 4294966784  ;;  %v133_v0 = vld [vmem:[#allocation10] sm:$0xff]  ;;  %v134_v1 = vld [vmem:[#allocation10 + $0x8] sm:$0xff]  ;;  %vm142_vm0 = vcmask 261120   ;;  %v9561_v37 = vmov 0.0  }
  0x6e   :  { %v272_v2 = vld [vmem:[#allocation11] sm:$0xff]  ;;  %v7576_v3 = vpack.c.bf16 %v134_v1, %v133_v0  ;;  %v273_v4 = vld [vmem:[#allocation11 + $0x8] sm:$0xff]  ;;  %v135_v5 = vld [vmem:[#allocation10 + $0x10] sm:$0xff]  ;;  %vm8027_vm1 = vmmov 0   ;;  %vm435_vm2 = vcmask 64512   ;;  %s8028_s13 = smov 120  }
  0x6f   :  { %v136_v6 = vld [vmem:[#allocation10 + $0x18] sm:$0xff]  ;;  %v7584_v7 = vpack.c.bf16 %v273_v4, %v272_v2  ;;  %v274_v9 = vld [vmem:[#allocation11 + $0x10] sm:$0xff]  ;;  %v110_v17 = vld [vmem:[#allocation2 + $0x10] sm:$0xff]  ;;  %s8029_s14 = smov 112   ;;  %s8030_s15 = smov 104   ;;  %vm5918_vm3 = vcmask 130048  }
  0x70   :  { %v7580_v8 = vpack.c.bf16 %v136_v6, %v135_v5  ;;  %v275_v10 = vld [vmem:[#allocation11 + $0x18] sm:$0xff]  ;;  %v125_v11 = vld [vmem:[#allocation5] sm:$0xff]  ;;  %7577 = vmatprep.subr.bf16.mxu0 %v7576_v3  ;;  %v111_v21 = vld [vmem:[#allocation2 + $0x18] sm:$0xff]  ;;  %s8031_s20 = smov 32   ;;  %s8032_s21 = smov 96   ;;  %vm5927_vm4 = vcmask 195584  }
  0x71   :  { %v7588_v12 = vpack.c.bf16 %v275_v10, %v274_v9  ;;  %7145 = vmatprep.mubr.msk.f32.mxu0 %vm142_vm0, %v125_v11  ;;  %v108_v13 = vld [vmem:[#allocation2] sm:$0xff]  ;;  %7585 = vmatprep.subr.bf16.mxu1 %v7584_v7  ;;  %v109_v16 = vld [vmem:[#allocation2 + $0x8] sm:$0xff]  ;;  %v127_v22 = vld [vmem:[#allocation5 + $0x10] sm:$0xff]  ;;  %s8033_s3 = smov 88   ;;  %s8034_s30 = smov 80  }
  0x72   :  { %v116_v14 = vld [vmem:[#allocation7] sm:$0xff]  ;;  %7579 = vmatpush3.bf16.msra.mxu0 %v7576_v3  ;;  %7587 = vmatpush3.bf16.msra.mxu1 %v7584_v7  ;;  %v126_v18 = vld [vmem:[#allocation5 + $0x8] sm:$0xff]  ;;  %v128_v25 = vld [vmem:[#allocation5 + $0x18] sm:$0xff]  ;;  %s8035_s2 = smov 72   ;;  %s8036_s12 = smov 16  }
  0x73   :  { %v117_v15 = vadd.f32 %v116_v14, %v108_v13  ;;  %7581 = vmatprep.subr.bf16.mxu0 %v7580_v8  ;;  %7589 = vmatprep.subr.bf16.mxu1 %v7588_v12  ;;  %v118_v19 = vadd.f32 %v116_v14, %v109_v16  ;;  %v119_v20 = vadd.f32 %v116_v14, %v110_v17  ;;  %v112_v23 = vld [vmem:[#allocation2 + $0x20] sm:$0xff]  ;;  %v113_v27 = vld [vmem:[#allocation2 + $0x28] sm:$0xff]  ;;  %v114_v29 = vld [vmem:[#allocation2 + $0x30] sm:$0xff]  ;;  %s8037_s22 = smov 24   ;;  %s8040_s19 = smov [#allocation14]  }
  0x74   :  { %v120_v24 = vadd.f32 %v116_v14, %v111_v21  ;;  %v121_v26 = vadd.f32 %v116_v14, %v112_v23  ;;  %v129_v28 = vld [vmem:[#allocation5 + $0x20] sm:$0xff]  ;;  %v122_v30 = vadd.f32 %v116_v14, %v113_v27  ;;  %v130_v31 = vld [vmem:[#allocation5 + $0x28] sm:$0xff]  ;;  %v123_v32 = vadd.f32 %v116_v14, %v114_v29  ;;  %v115_v33 = vld [vmem:[#allocation2 + $0x38] sm:$0xff] }
  0x75   :  { %7165 = vmatprep.mubr.msk.f32.mxu1 %vm142_vm0, %v117_v15  ;;  %v131_v34 = vld [vmem:[#allocation5 + $0x30] sm:$0xff]  ;;  %v124_v35 = vadd.f32 %v116_v14, %v115_v33  ;;  %v132_v36 = vld [vmem:[#allocation5 + $0x38] sm:$0xff]  ;;  %v8203_v38 = vld [vmem:[%s9558_s6] ss:$0 sm:$0xff] }
  0x76   :  { %7583 = vmatpush3.bf16.msra.mxu0 %v7580_v8  ;;  %7591 = vmatpush3.bf16.msra.mxu1 %v7588_v12  ;;  %v6801_v39 = vld [vmem:[%s9558_s6 + $0x1] ss:$0 sm:$0xff]  ;;  %v6802_v8 = vld [vmem:[%s9558_s6 + $0x2] ss:$0 sm:$0xff]  ;;  %vm9494_vm5 = vmpackc.low %vm142_vm0, %vm142_vm0 }
  0x77   :  { %7182 = vmatprep.subr.mxu1 %v9561_v37  ;;  %7177 = vmatprep.subr.mxu0 %v9561_v37 }
  0x79   :  { %7146 = vmatmul.mubr.msk.f32.vlgmr.msra.gmra.mrb[0].mxu0 %vm142_vm0, %v126_v18  ;;  %7166 = vmatmul.mubr.msk.f32.vlgmr.msra.gmra.mrb[0].mxu1 %vm142_vm0, %v118_v19 }
  0x7a   :  { %7148 = vmatprep.mubr.msk.f32.mxu0 %vm142_vm0, %v127_v22  ;;  %7168 = vmatprep.mubr.msk.f32.mxu1 %vm142_vm0, %v119_v20 }
  0x7d   :  { %7149 = vmatmul.mubr.msk.f32.gmra.mrb[2].mxu0 %vm142_vm0, %v128_v25  ;;  %7169 = vmatmul.mubr.msk.f32.gmra.mrb[2].mxu1 %vm142_vm0, %v120_v24 }
  0x7e   :  { %7151 = vmatprep.mubr.msk.f32.mxu0 %vm142_vm0, %v129_v28  ;;  %7171 = vmatprep.mubr.msk.f32.mxu1 %vm142_vm0, %v121_v26 }
  0x81   :  { %7152 = vmatmul.mubr.msk.f32.gmra.mrb[4].mxu0 %vm142_vm0, %v130_v31  ;;  %7172 = vmatmul.mubr.msk.f32.gmra.mrb[4].mxu1 %vm142_vm0, %v122_v30 }
  0x82   :  { %7154 = vmatprep.mubr.msk.f32.mxu0 %vm142_vm0, %v131_v34  ;;  %7174 = vmatprep.mubr.msk.f32.mxu1 %vm142_vm0, %v123_v32 }
  0x85   :  { %7155 = vmatmul.mubr.msk.f32.gmra.mrb[6].mxu0 %vm142_vm0, %v132_v36  ;;  %7175 = vmatmul.mubr.msk.f32.gmra.mrb[6].mxu1 %vm142_vm0, %v124_v35 }
  0x86   :  { %7184 = vmatprep.mubr.msk.f32.mxu1 %vm8027_vm1, %v9561_v37  ;;  %7179 = vmatprep.mubr.msk.f32.mxu0 %vm8027_vm1, %v9561_v37 }
 0x14c   :  { %v7147_v40 = vpop.f32.mrb[0].mxu0  ;;  %v8211_v42 = vpop.f32.mrb[0].mxu1 }
 0x14d   :  { %v8209_v41 = vadd.f32 %v7147_v40, %v8203_v38  ;;  %v233_v43 = vpop.f32.mrb[1].mxu0  ;;  %v8214_v44 = vadd.f32 %v8211_v42, %v6801_v39  ;;  %v8216_v45 = vpop.f32.mrb[1].mxu1 }
 0x14e   :  { %v8219_v46 = vadd.f32 %v6801_v39, %v8216_v45  ;;  %v8233_v50 = vadd.f32 %v8203_v38, %v233_v43 }
 0x14f   :  { %1122 = vrot.lane.b32.xlu1 %v8209_v41, %s8028_s13  ;;  %1124 = vrot.lane.b32.xlu0 %v8214_v44, %s8028_s13 }
 0x150   :  { %7183 = vmatpush3.xpose.msk.msra.mxu1 %vm435_vm2, %v8214_v44  ;;  %v7150_v47 = vpop.f32.mrb[2].mxu0  ;;  %7178 = vmatpush3.xpose.msk.msra.mxu0 %vm435_vm2, %v8219_v46  ;;  %v8229_v48 = vpop.f32.mrb[2].mxu1 }
 0x151   :  { %7192 = vmatprep.subr.mxu1 %v9561_v37  ;;  %v243_v49 = vpop.f32.mrb[3].mxu0  ;;  %v8236_v51 = vadd.f32 %v8229_v48, %v6801_v39  ;;  %v8238_v52 = vpop.f32.mrb[3].mxu1  ;;  %7187 = vmatprep.subr.mxu0 %v9561_v37  ;;  %v8256_v56 = vadd.f32 %v7150_v47, %v8203_v38 }
 0x152   :  { %v8246_v53 = vadd.f32 %v6801_v39, %v8238_v52  ;;  %v8253_v54 = vadd.f32 %v8203_v38, %v243_v49 }
 0x153   :  { %7185 = vmatmul.mubr.msk.f32.vlgmr.msra.gmra.mrb[8].mxu1 %vm435_vm2, %v8209_v41  ;;  %1748 = vrot.lane.b32.xlu1 %v8214_v44, %s8029_s14 }
 0x154   :  { %1046 = vrot.lane.b32.xlu0 %v8219_v46, %s8028_s13  ;;  %7180 = vmatmul.mubr.msk.f32.vlgmr.msra.gmra.mrb[8].mxu0 %vm435_vm2, %v8233_v50  ;;  %v7153_v55 = vpop.f32.mrb[4].mxu0  ;;  %v8262_v57 = vpop.f32.mrb[4].mxu1 }
 0x155   :  { %7193 = vmatpush3.xpose.msk.msra.mxu1 %vm435_vm2, %v8236_v51  ;;  %7188 = vmatpush3.xpose.msk.msra.mxu0 %vm435_vm2, %v8246_v53  ;;  %v253_v58 = vpop.f32.mrb[5].mxu0  ;;  %v8269_v59 = vadd.f32 %v8262_v57, %v6801_v39  ;;  %v8271_v60 = vpop.f32.mrb[5].mxu1  ;;  %v8286_v63 = vadd.f32 %v7153_v55, %v8203_v38 }
 0x156   :  { %7189 = vmatprep.mubr.msk.f32.mxu0 %vm8027_vm1, %v9561_v37  ;;  %7194 = vmatprep.mubr.msk.f32.mxu1 %vm8027_vm1, %v9561_v37  ;;  %v8276_v61 = vadd.f32 %v6801_v39, %v8271_v60  ;;  %v8290_v0 = vadd.f32 %v8203_v38, %v253_v58 }
 0x157   :  { %1746 = vrot.lane.b32.xlu1 %v8209_v41, %s8029_s14  ;;  %7197 = vmatprep.subr.mxu0 %v9561_v37 }
 0x158   :  { %1670 = vrot.lane.b32.xlu0 %v8219_v46, %s8029_s14  ;;  %7190 = vmatmul.mubr.msk.f32.vlgmr.msra.gmra.mrb[10].mxu0 %vm435_vm2, %v8253_v54  ;;  %v7156_v62 = vpop.f32.mrb[6].mxu0  ;;  %v8292_v1 = vpop.f32.mrb[6].mxu1 }
 0x159   :  { %7195 = vmatmul.mubr.msk.f32.vlgmr.msra.gmra.mrb[10].mxu1 %vm435_vm2, %v8256_v56  ;;  %7202 = vmatprep.subr.mxu1 %v9561_v37  ;;  %v263_v2 = vpop.f32.mrb[7].mxu0  ;;  %v8298_v3 = vpop.f32.mrb[7].mxu1  ;;  %v417_v4 = vadd.f32 %v8292_v1, %v6801_v39  ;;  %v269_v6 = vadd.f32 %v7156_v62, %v8203_v38 }
 0x15a   :  { %7203 = vmatpush3.xpose.msk.msra.mxu1 %vm435_vm2, %v8269_v59  ;;  %7198 = vmatpush3.xpose.msk.msra.mxu0 %vm435_vm2, %v8276_v61  ;;  %v416_v5 = vadd.f32 %v6801_v39, %v8298_v3  ;;  %v264_v7 = vadd.f32 %v8203_v38, %v263_v2 }
 0x15b   :  { %1044 = vrot.lane.b32.xlu1 %v8233_v50, %s8028_s13  ;;  %7199 = vmatprep.mubr.msk.f32.mxu0 %vm8027_vm1, %v9561_v37 }
 0x15c   :  { %1668 = vrot.lane.b32.xlu0 %v8233_v50, %s8029_s14  ;;  %7204 = vmatprep.mubr.msk.f32.mxu1 %vm8027_vm1, %v9561_v37 }
 0x15d   :  { %7200 = vmatmul.mubr.msk.f32.vlgmr.msra.gmra.mrb[12].mxu0 %vm435_vm2, %v8290_v0  ;;  %7205 = vmatmul.mubr.msk.f32.vlgmr.msra.gmra.mrb[12].mxu1 %vm435_vm2, %v8286_v63 }
 0x15e   :  { %7207 = vmatprep.subr.mxu0 %v9561_v37  ;;  %7212 = vmatprep.subr.mxu1 %v9561_v37 }
 0x15f   :  { %1280 = vrot.lane.b32.xlu1 %v8236_v51, %s8028_s13  ;;  %7213 = vmatpush3.xpose.msk.msra.mxu1 %vm435_vm2, %v417_v4 }
 0x160   :  { %1202 = vrot.lane.b32.xlu0 %v8246_v53, %s8028_s13  ;;  %7208 = vmatpush3.xpose.msk.msra.mxu0 %vm435_vm2, %v416_v5 }
 0x161   :  { %7209 = vmatprep.mubr.msk.f32.mxu0 %vm8027_vm1, %v9561_v37  ;;  %7214 = vmatprep.mubr.msk.f32.mxu1 %vm8027_vm1, %v9561_v37 }
 0x162   :  { %7215 = vmatmul.mubr.msk.f32.vlgmr.msra.gmra.mrb[14].mxu1 %vm435_vm2, %v269_v6  ;;  %7222 = vmatprep.subr.mxu1 %v9561_v37 }
 0x163   :  { %1278 = vrot.lane.b32.xlu1 %v8256_v56, %s8028_s13  ;;  %7210 = vmatmul.mubr.msk.f32.vlgmr.msra.gmra.mrb[14].mxu0 %vm435_vm2, %v264_v7 }
 0x164   :  { %1200 = vrot.lane.b32.xlu0 %v8253_v54, %s8028_s13  ;;  %7224 = vmatprep.mubr.msk.f32.mxu1 %vm8027_vm1, %v9561_v37 }
 0x165   :  { %7217 = vmatprep.subr.mxu0 %v9561_v37  ;;  %7219 = vmatprep.mubr.msk.f32.mxu0 %vm8027_vm1, %v9561_v37 }
 0x167   :  { %1904 = vrot.lane.b32.xlu1 %v8236_v51, %s8029_s14 }
 0x168   :  { %1826 = vrot.lane.b32.xlu0 %v8246_v53, %s8029_s14 }
 0x16b   :  { %1902 = vrot.lane.b32.xlu1 %v8256_v56, %s8029_s14 }
 0x16c   :  { %1824 = vrot.lane.b32.xlu0 %v8253_v54, %s8029_s14 }
 0x16f   :  { %1436 = vrot.lane.b32.xlu1 %v8269_v59, %s8028_s13 }
 0x170   :  { %1358 = vrot.lane.b32.xlu0 %v8276_v61, %s8028_s13 }
 0x173   :  { %1434 = vrot.lane.b32.xlu1 %v8286_v63, %s8028_s13 }
 0x174   :  { %1356 = vrot.lane.b32.xlu0 %v8290_v0, %s8028_s13 }
 0x177   :  { %2060 = vrot.lane.b32.xlu1 %v8269_v59, %s8029_s14 }
 0x178   :  { %1982 = vrot.lane.b32.xlu0 %v8276_v61, %s8029_s14 }
 0x17b   :  { %1592 = vrot.lane.b32.xlu1 %v417_v4, %s8028_s13 }
 0x17c   :  { %1514 = vrot.lane.b32.xlu0 %v416_v5, %s8028_s13 }
 0x17f   :  { %1590 = vrot.lane.b32.xlu1 %v269_v6, %s8028_s13 }
 0x180   :  { %1512 = vrot.lane.b32.xlu0 %v264_v7, %s8028_s13 }
 0x183   :  { %2058 = vrot.lane.b32.xlu1 %v8286_v63, %s8029_s14 }
 0x184   :  { %1980 = vrot.lane.b32.xlu0 %v8290_v0, %s8029_s14 }
 0x187   :  { %2216 = vrot.lane.b32.xlu1 %v417_v4, %s8029_s14 }
 0x188   :  { %2294 = vrot.lane.b32.xlu0 %v8219_v46, %s8030_s15 }
 0x18b   :  { %2214 = vrot.lane.b32.xlu1 %v269_v6, %s8029_s14 }
 0x18c   :  { %2138 = vrot.lane.b32.xlu0 %v416_v5, %s8029_s14 }
 0x18f   :  { %2372 = vrot.lane.b32.xlu1 %v8214_v44, %s8030_s15 }
 0x190   :  { %2136 = vrot.lane.b32.xlu0 %v264_v7, %s8029_s14 }
 0x193   :  { %2370 = vrot.lane.b32.xlu1 %v8209_v41, %s8030_s15 }
 0x194   :  { %2292 = vrot.lane.b32.xlu0 %v8233_v50, %s8030_s15 }
 0x197   :  { %2528 = vrot.lane.b32.xlu1 %v8236_v51, %s8030_s15 }
 0x198   :  { %2450 = vrot.lane.b32.xlu0 %v8246_v53, %s8030_s15 }
 0x19b   :  { %2526 = vrot.lane.b32.xlu1 %v8256_v56, %s8030_s15 }
 0x19c   :  { %2448 = vrot.lane.b32.xlu0 %v8253_v54, %s8030_s15 }
 0x19f   :  { %2684 = vrot.lane.b32.xlu1 %v8269_v59, %s8030_s15 }
 0x1a0   :  { %2606 = vrot.lane.b32.xlu0 %v8276_v61, %s8030_s15 }
 0x1a3   :  { %2682 = vrot.lane.b32.xlu1 %v8286_v63, %s8030_s15 }
 0x1a4   :  { %2604 = vrot.lane.b32.xlu0 %v8290_v0, %s8030_s15 }
 0x1a7   :  { %2840 = vrot.lane.b32.xlu1 %v417_v4, %s8030_s15 }
 0x1a8   :  { %2762 = vrot.lane.b32.xlu0 %v416_v5, %s8030_s15 }
 0x1ab   :  { %2838 = vrot.lane.b32.xlu1 %v269_v6, %s8030_s15 }
 0x1ac   :  { %2760 = vrot.lane.b32.xlu0 %v264_v7, %s8030_s15 }
 0x1af   :  { %424 = vrot.lane.b32.xlu1 %v6802_v8, %s8031_s20  ;;  %s6765_s20 = sshll.u32 %s8040_s19, 4  ;;  %s6766_s20 = int_to_ptr.vmem [resolvable:$true] %s6765_s20 }
 0x1b0   :  { %p7967_p7 = scmp.lt.s32.totalorder %s6766_s20, %s6766_s20 }
 0x1c1   :  { %v1123_v9 = vpop.permute.xlu1 %1122  ;;  %v1125_v10 = vpop.permute.xlu0 %1124 }
 0x1c2   :  { %7223 = vmatpush3.xpose.msk.msra.mxu1 %vm435_vm2, %v1125_v10 }
 0x1c3   :  { %7232 = vmatprep.subr.mxu1 %v9561_v37 }
 0x1c5   :  { %v1749_v11 = vpop.permute.xlu1 %1748  ;;  %7225 = vmatmul.mubr.msk.f32.vlgmr.msra.gmra.mrb[16].mxu1 %vm435_vm2, %v1123_v9 }
 0x1c6   :  { %v1047_v12 = vpop.permute.xlu0 %1046  ;;  %7234 = vmatprep.mubr.msk.f32.mxu1 %vm8027_vm1, %v9561_v37 }
 0x1c7   :  { %7218 = vmatpush3.xpose.msk.msra.mxu0 %vm435_vm2, %v1047_v12 }
 0x1c8   :  { %7227 = vmatprep.subr.mxu0 %v9561_v37 }
 0x1c9   :  { %v1747_v13 = vpop.permute.xlu1 %1746 }
 0x1ca   :  { %v1671_v14 = vpop.permute.xlu0 %1670 }
 0x1cd   :  { %v1045_v15 = vpop.permute.xlu1 %1044 }
 0x1ce   :  { %v1669_v16 = vpop.permute.xlu0 %1668  ;;  %7220 = vmatmul.mubr.msk.f32.vlgmr.msra.gmra.mrb[16].mxu0 %vm435_vm2, %v1045_v15 }
 0x1cf   :  { %7229 = vmatprep.mubr.msk.f32.mxu0 %vm8027_vm1, %v9561_v37 }
 0x1d1   :  { %v1281_v17 = vpop.permute.xlu1 %1280 }
 0x1d2   :  { %v1203_v18 = vpop.permute.xlu0 %1202  ;;  %7233 = vmatpush3.xpose.msk.msra.mxu1 %vm435_vm2, %v1281_v17 }
 0x1d3   :  { %7228 = vmatpush3.xpose.msk.msra.mxu0 %vm435_vm2, %v1203_v18  ;;  %7242 = vmatprep.subr.mxu1 %v9561_v37 }
 0x1d4   :  { %7237 = vmatprep.subr.mxu0 %v9561_v37 }
 0x1d5   :  { %v1279_v19 = vpop.permute.xlu1 %1278 }
 0x1d6   :  { %v1201_v20 = vpop.permute.xlu0 %1200  ;;  %7235 = vmatmul.mubr.msk.f32.vlgmr.msra.gmra.mrb[18].mxu1 %vm435_vm2, %v1279_v19 }
 0x1d7   :  { %7230 = vmatmul.mubr.msk.f32.vlgmr.msra.gmra.mrb[18].mxu0 %vm435_vm2, %v1201_v20  ;;  %7244 = vmatprep.mubr.msk.f32.mxu1 %vm8027_vm1, %v9561_v37 }
 0x1d8   :  { %7239 = vmatprep.mubr.msk.f32.mxu0 %vm8027_vm1, %v9561_v37 }
 0x1d9   :  { %v1905_v21 = vpop.permute.xlu1 %1904 }
 0x1da   :  { %v1827_v22 = vpop.permute.xlu0 %1826 }
 0x1dd   :  { %v1903_v23 = vpop.permute.xlu1 %1902 }
 0x1de   :  { %v1825_v24 = vpop.permute.xlu0 %1824 }
 0x1e1   :  { %v1437_v25 = vpop.permute.xlu1 %1436 }
 0x1e2   :  { %v1359_v26 = vpop.permute.xlu0 %1358  ;;  %7243 = vmatpush3.xpose.msk.msra.mxu1 %vm435_vm2, %v1437_v25 }
 0x1e3   :  { %7238 = vmatpush3.xpose.msk.msra.mxu0 %vm435_vm2, %v1359_v26  ;;  %7252 = vmatprep.subr.mxu1 %v9561_v37 }
 0x1e4   :  { %7247 = vmatprep.subr.mxu0 %v9561_v37 }
 0x1e5   :  { %v1435_v27 = vpop.permute.xlu1 %1434 }
 0x1e6   :  { %v1357_v28 = vpop.permute.xlu0 %1356  ;;  %7245 = vmatmul.mubr.msk.f32.vlgmr.msra.gmra.mrb[20].mxu1 %vm435_vm2, %v1435_v27 }
 0x1e7   :  { %7240 = vmatmul.mubr.msk.f32.vlgmr.msra.gmra.mrb[20].mxu0 %vm435_vm2, %v1357_v28  ;;  %7254 = vmatprep.mubr.msk.f32.mxu1 %vm8027_vm1, %v9561_v37 }
 0x1e8   :  { %7249 = vmatprep.mubr.msk.f32.mxu0 %vm8027_vm1, %v9561_v37 }
 0x1e9   :  { %v2061_v29 = vpop.permute.xlu1 %2060 }
 0x1ea   :  { %v1983_v30 = vpop.permute.xlu0 %1982 }
 0x1ed   :  { %v1593_v31 = vpop.permute.xlu1 %1592 }
 0x1ee   :  { %v1515_v32 = vpop.permute.xlu0 %1514  ;;  %7253 = vmatpush3.xpose.msk.msra.mxu1 %vm435_vm2, %v1593_v31 }
 0x1ef   :  { %7248 = vmatpush3.xpose.msk.msra.mxu0 %vm435_vm2, %v1515_v32  ;;  %7262 = vmatprep.subr.mxu1 %v9561_v37 }
 0x1f0   :  { %7257 = vmatprep.subr.mxu0 %v9561_v37 }
 0x1f1   :  { %v1591_v33 = vpop.permute.xlu1 %1590 }
 0x1f2   :  { %v1513_v34 = vpop.permute.xlu0 %1512  ;;  %7255 = vmatmul.mubr.msk.f32.vlgmr.msra.gmra.mrb[22].mxu1 %vm435_vm2, %v1591_v33 }
 0x1f3   :  { %7250 = vmatmul.mubr.msk.f32.vlgmr.msra.gmra.mrb[22].mxu0 %vm435_vm2, %v1513_v34  ;;  %7263 = vmatpush3.xpose.msk.msra.mxu1 %vm435_vm2, %v1749_v11 }
 0x1f4   :  { %7258 = vmatpush3.xpose.msk.msra.mxu0 %vm435_vm2, %v1671_v14  ;;  %7264 = vmatprep.mubr.msk.f32.mxu1 %vm8027_vm1, %v9561_v37 }
 0x1f5   :  { %v2059_v35 = vpop.permute.xlu1 %2058  ;;  %7272 = vmatprep.subr.mxu1 %v9561_v37  ;;  %7259 = vmatprep.mubr.msk.f32.mxu0 %vm8027_vm1, %v9561_v37 }
 0x1f6   :  { %v1981_v36 = vpop.permute.xlu0 %1980  ;;  %7267 = vmatprep.subr.mxu0 %v9561_v37  ;;  %7265 = vmatmul.mubr.msk.f32.vlgmr.msra.gmra.mrb[24].mxu1 %vm435_vm2, %v1747_v13 }
 0x1f7   :  { %7260 = vmatmul.mubr.msk.f32.vlgmr.msra.gmra.mrb[24].mxu0 %vm435_vm2, %v1669_v16  ;;  %7273 = vmatpush3.xpose.msk.msra.mxu1 %vm435_vm2, %v1905_v21 }
 0x1f8   :  { %7268 = vmatpush3.xpose.msk.msra.mxu0 %vm435_vm2, %v1827_v22  ;;  %7274 = vmatprep.mubr.msk.f32.mxu1 %vm8027_vm1, %v9561_v37 }
 0x1f9   :  { %v2217_v38 = vpop.permute.xlu1 %2216  ;;  %7282 = vmatprep.subr.mxu1 %v9561_v37  ;;  %7269 = vmatprep.mubr.msk.f32.mxu0 %vm8027_vm1, %v9561_v37 }
 0x1fa   :  { %v2295_v39 = vpop.permute.xlu0 %2294  ;;  %7277 = vmatprep.subr.mxu0 %v9561_v37  ;;  %7275 = vmatmul.mubr.msk.f32.vlgmr.msra.gmra.mrb[26].mxu1 %vm435_vm2, %v1903_v23 }
 0x1fb   :  { %7270 = vmatmul.mubr.msk.f32.vlgmr.msra.gmra.mrb[26].mxu0 %vm435_vm2, %v1825_v24  ;;  %7283 = vmatpush3.xpose.msk.msra.mxu1 %vm435_vm2, %v2061_v29 }
 0x1fc   :  { %7278 = vmatpush3.xpose.msk.msra.mxu0 %vm435_vm2, %v1983_v30  ;;  %7284 = vmatprep.mubr.msk.f32.mxu1 %vm8027_vm1, %v9561_v37 }
 0x1fd   :  { %v2215_v40 = vpop.permute.xlu1 %2214  ;;  %7292 = vmatprep.subr.mxu1 %v9561_v37  ;;  %7279 = vmatprep.mubr.msk.f32.mxu0 %vm8027_vm1, %v9561_v37 }
 0x1fe   :  { %v2139_v41 = vpop.permute.xlu0 %2138  ;;  %7287 = vmatprep.subr.mxu0 %v9561_v37  ;;  %7285 = vmatmul.mubr.msk.f32.vlgmr.msra.gmra.mrb[28].mxu1 %vm435_vm2, %v2059_v35 }
 0x1ff   :  { %7280 = vmatmul.mubr.msk.f32.vlgmr.msra.gmra.mrb[28].mxu0 %vm435_vm2, %v1981_v36  ;;  %7293 = vmatpush3.xpose.msk.msra.mxu1 %vm435_vm2, %v2217_v38 }
 0x200   :  { %7288 = vmatpush3.xpose.msk.msra.mxu0 %vm435_vm2, %v2139_v41  ;;  %7294 = vmatprep.mubr.msk.f32.mxu1 %vm8027_vm1, %v9561_v37 }
 0x201   :  { %v2373_v43 = vpop.permute.xlu1 %2372  ;;  %7302 = vmatprep.subr.mxu1 %v9561_v37  ;;  %7289 = vmatprep.mubr.msk.f32.mxu0 %vm8027_vm1, %v9561_v37 }
 0x202   :  { %v2137_v44 = vpop.permute.xlu0 %2136  ;;  %7297 = vmatprep.subr.mxu0 %v9561_v37  ;;  %7295 = vmatmul.mubr.msk.f32.vlgmr.msra.gmra.mrb[30].mxu1 %vm435_vm2, %v2215_v40 }
 0x203   :  { %7290 = vmatmul.mubr.msk.f32.vlgmr.msra.gmra.mrb[30].mxu0 %vm435_vm2, %v2137_v44  ;;  %7303 = vmatpush3.xpose.msk.msra.mxu1 %vm435_vm2, %v2373_v43 }
 0x204   :  { %7298 = vmatpush3.xpose.msk.msra.mxu0 %vm435_vm2, %v2295_v39  ;;  %7304 = vmatprep.mubr.msk.f32.mxu1 %vm8027_vm1, %v9561_v37 }
 0x205   :  { %v2371_v46 = vpop.permute.xlu1 %2370  ;;  %7299 = vmatprep.mubr.msk.f32.mxu0 %vm8027_vm1, %v9561_v37  ;;  %7312 = vmatprep.subr.mxu1 %v9561_v37 }
 0x206   :  { %v2293_v47 = vpop.permute.xlu0 %2292  ;;  %7305 = vmatmul.mubr.msk.f32.vlgmr.msra.gmra.mrb[32].mxu1 %vm435_vm2, %v2371_v46  ;;  %7307 = vmatprep.subr.mxu0 %v9561_v37 }
 0x207   :  { %7300 = vmatmul.mubr.msk.f32.vlgmr.msra.gmra.mrb[32].mxu0 %vm435_vm2, %v2293_v47  ;;  %7314 = vmatprep.mubr.msk.f32.mxu1 %vm8027_vm1, %v9561_v37 }
 0x208   :  { %7309 = vmatprep.mubr.msk.f32.mxu0 %vm8027_vm1, %v9561_v37 }
 0x209   :  { %v2529_v49 = vpop.permute.xlu1 %2528 }
 0x20a   :  { %v2451_v50 = vpop.permute.xlu0 %2450  ;;  %7313 = vmatpush3.xpose.msk.msra.mxu1 %vm435_vm2, %v2529_v49 }
 0x20b   :  { %7308 = vmatpush3.xpose.msk.msra.mxu0 %vm435_vm2, %v2451_v50  ;;  %7322 = vmatprep.subr.mxu1 %v9561_v37 }
 0x20c   :  { %7317 = vmatprep.subr.mxu0 %v9561_v37 }
 0x20d   :  { %v2527_v51 = vpop.permute.xlu1 %2526 }
 0x20e   :  { %v2449_v53 = vpop.permute.xlu0 %2448  ;;  %7315 = vmatmul.mubr.msk.f32.vlgmr.msra.gmra.mrb[34].mxu1 %vm435_vm2, %v2527_v51 }
 0x20f   :  { %7310 = vmatmul.mubr.msk.f32.vlgmr.msra.gmra.mrb[34].mxu0 %vm435_vm2, %v2449_v53  ;;  %7324 = vmatprep.mubr.msk.f32.mxu1 %vm8027_vm1, %v9561_v37 }
 0x210   :  { %7319 = vmatprep.mubr.msk.f32.mxu0 %vm8027_vm1, %v9561_v37 }
 0x211   :  { %v2685_v54 = vpop.permute.xlu1 %2684 }
 0x212   :  { %v2607_v55 = vpop.permute.xlu0 %2606  ;;  %7323 = vmatpush3.xpose.msk.msra.mxu1 %vm435_vm2, %v2685_v54 }
 0x213   :  { %7318 = vmatpush3.xpose.msk.msra.mxu0 %vm435_vm2, %v2607_v55  ;;  %7332 = vmatprep.subr.mxu1 %v9561_v37 }
 0x214   :  { %7327 = vmatprep.subr.mxu0 %v9561_v37 }
 0x215   :  { %v2683_v56 = vpop.permute.xlu1 %2682 }
 0x216   :  { %v2605_v58 = vpop.permute.xlu0 %2604  ;;  %7325 = vmatmul.mubr.msk.f32.vlgmr.msra.gmra.mrb[36].mxu1 %vm435_vm2, %v2683_v56 }
 0x217   :  { %7320 = vmatmul.mubr.msk.f32.vlgmr.msra.gmra.mrb[36].mxu0 %vm435_vm2, %v2605_v58  ;;  %7334 = vmatprep.mubr.msk.f32.mxu1 %vm8027_vm1, %v9561_v37 }
 0x218   :  { %7329 = vmatprep.mubr.msk.f32.mxu0 %vm8027_vm1, %v9561_v37 }
 0x219   :  { %v2841_v59 = vpop.permute.xlu1 %2840 }
 0x21a   :  { %v2763_v61 = vpop.permute.xlu0 %2762  ;;  %7333 = vmatpush3.xpose.msk.msra.mxu1 %vm435_vm2, %v2841_v59 }
 0x21b   :  { %7328 = vmatpush3.xpose.msk.msra.mxu0 %vm435_vm2, %v2763_v61  ;;  %7342 = vmatprep.subr.mxu1 %v9561_v37 }
 0x21c   :  { %7337 = vmatprep.subr.mxu0 %v9561_v37 }
 0x21d   :  { %v2839_v62 = vpop.permute.xlu1 %2838 }
 0x21e   :  { %v2761_v63 = vpop.permute.xlu0 %2760  ;;  %7335 = vmatmul.mubr.msk.f32.vlgmr.msra.gmra.mrb[38].mxu1 %vm435_vm2, %v2839_v62 }
 0x21f   :  { %7330 = vmatmul.mubr.msk.f32.vlgmr.msra.gmra.mrb[38].mxu0 %vm435_vm2, %v2761_v63  ;;  %7344 = vmatprep.mubr.msk.f32.mxu1 %vm8027_vm1, %v9561_v37 }
 0x220   :  { %7339 = vmatprep.mubr.msk.f32.mxu0 %vm8027_vm1, %v9561_v37 }
 0x221   :  { %v425_v0 = vpop.permute.xlu1 %424 }
 0x222   :  { %v427_v2 = vadd.f32 %v425_v0, %v8216_v45  ;;  %v428_v4 = vadd.f32 %v8211_v42, %v425_v0  ;;  %v429_v6 = vadd.f32 %v425_v0, %v8238_v52  ;;  %v8513_v7 = vadd.f32 %v8229_v48, %v425_v0 }
 0x223   :  { %v8519_v42 = vadd.f32 %v425_v0, %v8271_v60  ;;  %v8522_v45 = vadd.f32 %v8262_v57, %v425_v0  ;;  %v8529_v13 = vadd.f32 %v8292_v1, %v425_v0  ;;  %v8538_v1 = vadd.f32 %v425_v0, %v8298_v3  ;;  %v8551_v3 = vld [vmem:[#allocation8] sm:$0xff] }
 0x224   :  { %3375 = vrot.lane.b32.xlu1 %v427_v2, %s8032_s21  ;;  %3452 = vrot.lane.b32.xlu0 %v428_v4, %s8032_s21 }
 0x226   :  { %v584_v5 = vpop.f32.mrb[8].mxu1 }
 0x227   :  { %v508_v8 = vpop.f32.mrb[8].mxu0  ;;  %v7186_v9 = vpop.f32.mrb[9].mxu1  ;;  %v8567_v25 = vadd.f32 %v8551_v3, %v584_v5 }
 0x228   :  { %v7181_v10 = vpop.f32.mrb[9].mxu0  ;;  %3529 = vrot.lane.b32.xlu1 %v429_v6, %s8032_s21  ;;  %3606 = vrot.lane.b32.xlu0 %v8513_v7, %s8032_s21  ;;  %v8554_v20 = vadd.f32 %v8551_v3, %v508_v8 }
 0x229   :  { %v2952_v29 = vsel %vm435_vm2, %v8567_v25, -inf }
 0x22a   :  { %v2949_v22 = vsel %vm435_vm2, %v8554_v20, -inf }
 0x22b   :  { %v660_v11 = vpop.f32.mrb[10].mxu0 }
 0x22c   :  { %3683 = vrot.lane.b32.xlu1 %v8519_v42, %s8032_s21  ;;  %3760 = vrot.lane.b32.xlu0 %v8522_v45, %s8032_s21  ;;  %v736_v48 = vpop.f32.mrb[10].mxu1  ;;  %v7191_v52 = vpop.f32.mrb[11].mxu0  ;;  %v8562_v23 = vadd.f32 %v8551_v3, %v660_v11 }
 0x22d   :  { %v7196_v12 = vpop.f32.mrb[11].mxu1  ;;  %v8557_v21 = vadd.f32 %v8551_v3, %v736_v48 }
 0x22e   :  { %v2955_v27 = vsel %vm435_vm2, %v8562_v23, -inf }
 0x22f   :  { %v2958_v24 = vsel %vm435_vm2, %v8557_v21, -inf }
 0x230   :  { %3990 = vrot.lane.b32.xlu1 %v427_v2, %s8033_s3  ;;  %3914 = vrot.lane.b32.xlu0 %v8529_v13, %s8032_s21  ;;  %v812_v57 = vpop.f32.mrb[12].mxu0  ;;  %v888_v60 = vpop.f32.mrb[12].mxu1 }
 0x231   :  { %v7201_v14 = vpop.f32.mrb[13].mxu0  ;;  %v7206_v15 = vpop.f32.mrb[13].mxu1  ;;  %v8570_v26 = vadd.f32 %v8551_v3, %v888_v60  ;;  %v8575_v28 = vadd.f32 %v8551_v3, %v812_v57 }
 0x233   :  { %v2964_v31 = vsel %vm435_vm2, %v8570_v26, -inf  ;;  %v2961_v33 = vsel %vm435_vm2, %v8575_v28, -inf }
 0x234   :  { %4142 = vrot.lane.b32.xlu1 %v429_v6, %s8033_s3  ;;  %4066 = vrot.lane.b32.xlu0 %v428_v4, %s8033_s3 }
 0x235   :  { %v1040_v16 = vpop.f32.mrb[14].mxu1 }
 0x236   :  { %v964_v17 = vpop.f32.mrb[14].mxu0  ;;  %v7216_v18 = vpop.f32.mrb[15].mxu1  ;;  %v8580_v30 = vadd.f32 %v8551_v3, %v1040_v16 }
 0x237   :  { %v7211_v19 = vpop.f32.mrb[15].mxu0  ;;  %v8585_v32 = vadd.f32 %v8551_v3, %v964_v17 }
 0x238   :  { %4294 = vrot.lane.b32.xlu1 %v8519_v42, %s8033_s3  ;;  %4218 = vrot.lane.b32.xlu0 %v8513_v7, %s8033_s3  ;;  %v2970_v34 = vsel %vm435_vm2, %v8580_v30, -inf }
 0x239   :  { %v2967_v35 = vsel %vm435_vm2, %v8585_v32, -inf }
 0x23c   :  { %4522 = vrot.lane.b32.xlu1 %v8529_v13, %s8033_s3  ;;  %4370 = vrot.lane.b32.xlu0 %v8522_v45, %s8033_s3 }
 0x240   :  { %3837 = vrot.lane.b32.xlu1 %v8538_v1, %s8032_s21  ;;  %4598 = vrot.lane.b32.xlu0 %v427_v2, %s8034_s30  ;;  %s7962_s21 = scalar_lea.vmem %s6766_s20, 1024 }
 0x241   :  { %p7963_p6 = scmp.ne.s32.totalorder %s6766_s20, %s7962_s21  ;;  %p7968_p8 = scmp.lt.s32.totalorder %s7962_s21, %s7962_s21 }
 0x243   :  { %p7969_p9 = por %p7968_p8, %p7967_p7 }
 0x244   :  { %4446 = vrot.lane.b32.xlu1 %v8538_v1, %s8033_s3  ;;  %4750 = vrot.lane.b32.xlu0 %v429_v6, %s8034_s30 }
 0x245   :  { %p7970_p10 = pnand %p7969_p9, %p7963_p6 }
 0x248   :  { %4674 = vrot.lane.b32.xlu1 %v428_v4, %s8034_s30  ;;  %4902 = vrot.lane.b32.xlu0 %v8519_v42, %s8034_s30 }
 0x24c   :  { %4826 = vrot.lane.b32.xlu1 %v8513_v7, %s8034_s30  ;;  %5054 = vrot.lane.b32.xlu0 %v8538_v1, %s8034_s30 }
 0x250   :  { %4978 = vrot.lane.b32.xlu1 %v8522_v45, %s8034_s30  ;;  %5206 = vrot.lane.b32.xlu0 %v427_v2, %s8035_s2 }
 0x254   :  { %5130 = vrot.lane.b32.xlu1 %v8529_v13, %s8034_s30  ;;  %5358 = vrot.lane.b32.xlu0 %v429_v6, %s8035_s2 }
 0x258   :  { %5282 = vrot.lane.b32.xlu1 %v428_v4, %s8035_s2 }
 0x273   :  { %2950 = vmax.xlane.f32.xlu0 %v2949_v22 }
 0x277   :  { %2959 = vmax.xlane.f32.xlu0 %v2958_v24 }
 0x27b   :  { %2956 = vmax.xlane.f32.xlu0 %v2955_v27 }
 0x27c   :  { %2953 = vmax.xlane.f32.xlu1 %v2952_v29 }
 0x27f   :  { %2965 = vmax.xlane.f32.xlu0 %v2964_v31 }
 0x280   :  { %2962 = vmax.xlane.f32.xlu1 %v2961_v33 }
 0x283   :  { %2971 = vmax.xlane.f32.xlu0 %v2970_v34 }
 0x284   :  { %2968 = vmax.xlane.f32.xlu1 %v2967_v35 }
 0x296   :  { %v3376_v36 = vpop.permute.xlu1 %3375  ;;  %v3453_v38 = vpop.permute.xlu0 %3452 }
 0x297   :  { %7338 = vmatpush3.msra.mxu0 %v3376_v36  ;;  %7343 = vmatpush3.msra.mxu1 %v3453_v38 }
 0x298   :  { %7352 = vmatprep.subr.mxu1 %v9561_v37  ;;  %7347 = vmatprep.subr.mxu0 %v9561_v37  ;;  %v1196_v39 = vpop.f32.mrb[16].mxu1 }
 0x299   :  { %v8596_v40 = vadd.f32 %v8551_v3, %v1196_v39  ;;  %v7226_v41 = vpop.f32.mrb[17].mxu1 }
 0x29a   :  { %v8618_v2 = vpop.permute.xlu1 %3529  ;;  %v8625_v8 = vpop.permute.xlu0 %3606 }
 0x29b   :  { %v2976_v43 = vsel %vm435_vm2, %v8596_v40, -inf }
 0x29c   :  { %2977 = vmax.xlane.f32.xlu0 %v2976_v43 }
 0x29e   :  { %v8629_v10 = vpop.permute.xlu1 %3683  ;;  %v8631_v11 = vpop.permute.xlu0 %3760 }
 0x2a1   :  { %v1118_v44 = vpop.f32.mrb[16].mxu0 }
 0x2a2   :  { %v8601_v46 = vadd.f32 %v8551_v3, %v1118_v44  ;;  %v7221_v47 = vpop.f32.mrb[17].mxu0  ;;  %v8636_v60 = vpop.permute.xlu1 %3990 }
 0x2a3   :  { %v8643_v17 = vpop.permute.xlu0 %3914 }
 0x2a4   :  { %v2973_v49 = vsel %vm435_vm2, %v8601_v46, -inf }
 0x2a5   :  { %2974 = vmax.xlane.f32.xlu1 %v2973_v49 }
 0x2a6   :  { %v8655_v34 = vpop.permute.xlu1 %4142 }
 0x2a7   :  { %v8662_v43 = vpop.permute.xlu0 %4066 }
 0x2a9   :  { %v1352_v50 = vpop.f32.mrb[18].mxu1 }
 0x2aa   :  { %v1274_v51 = vpop.f32.mrb[18].mxu0  ;;  %v8606_v53 = vadd.f32 %v8551_v3, %v1352_v50  ;;  %v7236_v55 = vpop.f32.mrb[19].mxu1 }
 0x2ab   :  { %v8609_v54 = vadd.f32 %v8551_v3, %v1274_v51  ;;  %v7231_v56 = vpop.f32.mrb[19].mxu0 }
 0x2ac   :  { %v2982_v58 = vsel %vm435_vm2, %v8606_v53, -inf }
 0x2ad   :  { %2983 = vmax.xlane.f32.xlu0 %v2982_v58  ;;  %v2979_v59 = vsel %vm435_vm2, %v8609_v54, -inf }
 0x2ae   :  { %2980 = vmax.xlane.f32.xlu1 %v2979_v59  ;;  %v8674_v59 = vpop.permute.xlu1 %4294 }
 0x2b9   :  { %v1508_v61 = vpop.f32.mrb[20].mxu1 }
 0x2ba   :  { %v1430_v62 = vpop.f32.mrb[20].mxu0  ;;  %v8616_v63 = vadd.f32 %v8551_v3, %v1508_v61  ;;  %v7246_v0 = vpop.f32.mrb[21].mxu1 }
 0x2bb   :  { %v8621_v4 = vadd.f32 %v8551_v3, %v1430_v62  ;;  %v7241_v5 = vpop.f32.mrb[21].mxu0 }
 0x2bc   :  { %v2988_v6 = vsel %vm435_vm2, %v8616_v63, -inf  ;;  %v8681_v5 = vpop.permute.xlu0 %4218 }
 0x2bd   :  { %2989 = vmax.xlane.f32.xlu0 %v2988_v6  ;;  %v2985_v9 = vsel %vm435_vm2, %v8621_v4, -inf }
 0x2be   :  { %2986 = vmax.xlane.f32.xlu1 %v2985_v9 }
 0x2c5   :  { %v1664_v48 = vpop.f32.mrb[22].mxu1 }
 0x2c6   :  { %v1586_v52 = vpop.f32.mrb[22].mxu0  ;;  %v8634_v12 = vadd.f32 %v8551_v3, %v1664_v48  ;;  %v7256_v57 = vpop.f32.mrb[23].mxu1 }
 0x2c7   :  { %v8639_v14 = vadd.f32 %v8551_v3, %v1586_v52  ;;  %v7251_v15 = vpop.f32.mrb[23].mxu0 }
 0x2c8   :  { %v2994_v16 = vsel %vm435_vm2, %v8634_v12, -inf }
 0x2c9   :  { %v1820_v18 = vpop.f32.mrb[24].mxu1  ;;  %2995 = vmax.xlane.f32.xlu0 %v2994_v16  ;;  %v2991_v19 = vsel %vm435_vm2, %v8639_v14, -inf }
 0x2ca   :  { %v8648_v22 = vadd.f32 %v8551_v3, %v1820_v18  ;;  %2992 = vmax.xlane.f32.xlu1 %v2991_v19  ;;  %v1742_v24 = vpop.f32.mrb[24].mxu0  ;;  %v7266_v27 = vpop.f32.mrb[25].mxu1 }
 0x2cb   :  { %v8651_v29 = vadd.f32 %v8551_v3, %v1742_v24  ;;  %v7261_v31 = vpop.f32.mrb[25].mxu0  ;;  %v8693_v19 = vpop.permute.xlu1 %4522 }
 0x2cc   :  { %v3000_v33 = vsel %vm435_vm2, %v8648_v22, -inf }
 0x2cd   :  { %v1976_v35 = vpop.f32.mrb[26].mxu1  ;;  %3001 = vmax.xlane.f32.xlu0 %v3000_v33  ;;  %v2997_v36 = vsel %vm435_vm2, %v8651_v29, -inf }
 0x2ce   :  { %v8660_v38 = vadd.f32 %v8551_v3, %v1976_v35  ;;  %2998 = vmax.xlane.f32.xlu1 %v2997_v36  ;;  %v1898_v39 = vpop.f32.mrb[26].mxu0  ;;  %v7276_v41 = vpop.f32.mrb[27].mxu1 }
 0x2cf   :  { %v8665_v44 = vadd.f32 %v8551_v3, %v1898_v39  ;;  %v7271_v47 = vpop.f32.mrb[27].mxu0  ;;  %v8700_v36 = vpop.permute.xlu0 %4370 }
 0x2d0   :  { %v3006_v49 = vsel %vm435_vm2, %v8660_v38, -inf }
 0x2d1   :  { %v2132_v50 = vpop.f32.mrb[28].mxu1  ;;  %3007 = vmax.xlane.f32.xlu0 %v3006_v49  ;;  %v3003_v51 = vsel %vm435_vm2, %v8665_v44, -inf }
 0x2d2   :  { %v8672_v55 = vadd.f32 %v8551_v3, %v2132_v50  ;;  %3004 = vmax.xlane.f32.xlu1 %v3003_v51  ;;  %v2054_v56 = vpop.f32.mrb[28].mxu0  ;;  %v7286_v58 = vpop.f32.mrb[29].mxu1 }
 0x2d3   :  { %v8677_v61 = vadd.f32 %v8551_v3, %v2054_v56  ;;  %v7281_v62 = vpop.f32.mrb[29].mxu0  ;;  %v8709_v50 = vpop.permute.xlu1 %3837 }
 0x2d4   :  { %v3012_v0 = vsel %vm435_vm2, %v8672_v55, -inf  ;;  %v8711_v51 = vpop.permute.xlu0 %4598 }
 0x2d5   :  { %v2288_v6 = vpop.f32.mrb[30].mxu1  ;;  %3013 = vmax.xlane.f32.xlu0 %v3012_v0  ;;  %v3009_v9 = vsel %vm435_vm2, %v8677_v61, -inf  ;;  %9563 = vst [vmem:[#allocation22_spill] sm:$0xff] %v8711_v51 }
 0x2d6   :  { %v8686_v48 = vadd.f32 %v8551_v3, %v2288_v6  ;;  %3010 = vmax.xlane.f32.xlu1 %v3009_v9  ;;  %v2210_v52 = vpop.f32.mrb[30].mxu0  ;;  %v7296_v57 = vpop.f32.mrb[31].mxu1 }
 0x2d7   :  { %v8689_v15 = vadd.f32 %v8551_v3, %v2210_v52  ;;  %v7291_v16 = vpop.f32.mrb[31].mxu0  ;;  %v8721_v57 = vpop.permute.xlu1 %4446 }
 0x2d8   :  { %v3018_v18 = vsel %vm435_vm2, %v8686_v48, -inf  ;;  %v8723_v16 = vpop.permute.xlu0 %4750 }
 0x2d9   :  { %v2444_v24 = vpop.f32.mrb[32].mxu1  ;;  %3019 = vmax.xlane.f32.xlu0 %v3018_v18  ;;  %v3015_v27 = vsel %vm435_vm2, %v8689_v15, -inf  ;;  %9564 = vst [vmem:[#allocation23_spill] sm:$0xff] %v8723_v16 }
 0x2da   :  { %v8698_v31 = vadd.f32 %v8551_v3, %v2444_v24  ;;  %3016 = vmax.xlane.f32.xlu1 %v3015_v27  ;;  %v2366_v33 = vpop.f32.mrb[32].mxu0  ;;  %v7306_v35 = vpop.f32.mrb[33].mxu1 }
 0x2db   :  { %v8703_v39 = vadd.f32 %v8551_v3, %v2366_v33  ;;  %v7301_v41 = vpop.f32.mrb[33].mxu0 }
 0x2dc   :  { %v3024_v47 = vsel %vm435_vm2, %v8698_v31, -inf  ;;  %v8730_v41 = vpop.permute.xlu1 %4674 }
 0x2dd   :  { %3025 = vmax.xlane.f32.xlu0 %v3024_v47  ;;  %v3021_v49 = vsel %vm435_vm2, %v8703_v39, -inf  ;;  %9565 = vst [vmem:[#allocation24_spill] sm:$0xff] %v8730_v41 }
 0x2de   :  { %3022 = vmax.xlane.f32.xlu1 %v3021_v49 }
 0x2e1   :  { %v2600_v56 = vpop.f32.mrb[34].mxu1 }
 0x2e2   :  { %v2522_v58 = vpop.f32.mrb[34].mxu0  ;;  %v8714_v62 = vadd.f32 %v8551_v3, %v2600_v56  ;;  %v7316_v0 = vpop.f32.mrb[35].mxu1 }
 0x2e3   :  { %v7311_v6 = vpop.f32.mrb[35].mxu0  ;;  %v8717_v9 = vadd.f32 %v8551_v3, %v2522_v58  ;;  %v8737_v58 = vpop.permute.xlu0 %4902 }
 0x2e4   :  { %v3030_v52 = vsel %vm435_vm2, %v8714_v62, -inf  ;;  %9566 = vst [vmem:[#allocation25_spill] sm:$0xff] %v8737_v58  ;;  %v8743_v6 = vpop.permute.xlu1 %4826 }
 0x2e5   :  { %3031 = vmax.xlane.f32.xlu0 %v3030_v52  ;;  %v3027_v18 = vsel %vm435_vm2, %v8717_v9, -inf  ;;  %9567 = vst [vmem:[#allocation26_spill] sm:$0xff] %v8743_v6 }
 0x2e9   :  { %v2756_v24 = vpop.f32.mrb[36].mxu1  ;;  %3028 = vmax.xlane.f32.xlu0 %v3027_v18 }
 0x2ea   :  { %v8728_v27 = vadd.f32 %v8551_v3, %v2756_v24  ;;  %v2678_v33 = vpop.f32.mrb[36].mxu0  ;;  %v7326_v35 = vpop.f32.mrb[37].mxu1 }
 0x2eb   :  { %v7321_v47 = vpop.f32.mrb[37].mxu0  ;;  %v8733_v49 = vadd.f32 %v8551_v3, %v2678_v33  ;;  %v8745_v33 = vpop.permute.xlu0 %5054 }
 0x2ec   :  { %v3036_v56 = vsel %vm435_vm2, %v8728_v27, -inf  ;;  %9568 = vst [vmem:[#allocation27_spill] sm:$0xff] %v8745_v33  ;;  %v8747_v47 = vpop.permute.xlu1 %4978 }
 0x2ed   :  { %3037 = vmax.xlane.f32.xlu0 %v3036_v56  ;;  %v3033_v0 = vsel %vm435_vm2, %v8733_v49, -inf  ;;  %9569 = vst [vmem:[#allocation28_spill] sm:$0xff] %v8747_v47 }
 0x2ef   :  { %5434 = vrot.lane.b32.xlu1 %v8513_v7, %s8035_s2  ;;  %v8749_v37 = vpop.permute.xlu0 %5206 }
 0x2f0   :  { %9570 = vst [vmem:[#allocation29_spill] sm:$0xff] %v8749_v37  ;;  %v8751_v56 = vpop.permute.xlu1 %5130 }
 0x2f1   :  { %v2912_v52 = vpop.f32.mrb[38].mxu1  ;;  %3034 = vmax.xlane.f32.xlu0 %v3033_v0  ;;  %9571 = vst [vmem:[#allocation30_spill] sm:$0xff] %v8751_v56 }
 0x2f2   :  { %v2834_v18 = vpop.f32.mrb[38].mxu0  ;;  %v7336_v24 = vpop.f32.mrb[39].mxu1 }
 0x2f3   :  { %v7331_v35 = vpop.f32.mrb[39].mxu0  ;;  %v8753_v58 = vpop.permute.xlu0 %5358 }
 0x2f4   :  { %9572 = vst [vmem:[#allocation31_spill] sm:$0xff] %v8753_v58  ;;  %v8755_v16 = vpop.permute.xlu1 %5282  ;;  %v8760_v35 = vadd.f32 %v8551_v3, %v2834_v18 }
 0x2f5   :  { %9573 = vst [vmem:[#allocation32_spill] sm:$0xff] %v8755_v16 }
 0x2f6   :  { %v3039_v58 = vsel %vm435_vm2, %v8760_v35, -inf }
 0x300   :  { %v2951_v7 = vpop.xlane.xlu0 %2950 }
 0x301   :  { %v3045_v24 = vsub.f32 %v8554_v20, %v2951_v7 }
 0x303   :  { %v3077_v37 = vmul.f32 1.442695, %v3045_v24 }
 0x304   :  { %v2960_v51 = vpop.xlane.xlu0 %2959 }
 0x305   :  { %v3048_v56 = vsub.f32 %v8557_v21, %v2960_v51 }
 0x307   :  { %v3083_v16 = vmul.f32 1.442695, %v3048_v56 }
 0x308   :  { %v2957_v33 = vpop.xlane.xlu0 %2956 }
 0x309   :  { %v2954_v6 = vpop.xlane.xlu1 %2953  ;;  %v3047_v47 = vsub.f32 %v8562_v23, %v2957_v33 }
 0x30a   :  { %v3046_v0 = vsub.f32 %v8567_v25, %v2954_v6 }
 0x30b   :  { %v3081_v20 = vmul.f32 1.442695, %v3047_v47 }
 0x30c   :  { %v3079_v41 = vmul.f32 1.442695, %v3046_v0  ;;  %v2966_v25 = vpop.xlane.xlu0 %2965 }
 0x30d   :  { %v3050_v18 = vsub.f32 %v8570_v26, %v2966_v25  ;;  %v2963_v7 = vpop.xlane.xlu1 %2962 }
 0x30e   :  { %7658 = vpow2.f32 %v3079_v41  ;;  %v8770_v41 = vadd.f32 %v8551_v3, %v2912_v52  ;;  %v3049_v51 = vsub.f32 %v8575_v28, %v2963_v7 }
 0x30f   :  { %7660 = vpow2.f32 %v3077_v37  ;;  %v3087_v37 = vmul.f32 1.442695, %v3050_v18 }
 0x310   :  { %7662 = vpow2.f32 %v3083_v16  ;;  %v2972_v23 = vpop.xlane.xlu0 %2971  ;;  %v3085_v26 = vmul.f32 1.442695, %v3049_v51 }
 0x311   :  { %7664 = vpow2.f32 %v3081_v20  ;;  %v3052_v3 = vsub.f32 %v8580_v30, %v2972_v23  ;;  %v2969_v52 = vpop.xlane.xlu1 %2968 }
 0x312   :  { %7666 = vpow2.f32 %v3087_v37  ;;  %v3051_v56 = vsub.f32 %v8585_v32, %v2969_v52 }
 0x313   :  { %3040 = vmax.xlane.f32.xlu1 %v3039_v58  ;;  %v3042_v58 = vsel %vm435_vm2, %v8770_v41, -inf  ;;  %7668 = vpow2.f32 %v3085_v26  ;;  %v3091_v28 = vmul.f32 1.442695, %v3052_v3 }
 0x314   :  { %v3089_v25 = vmul.f32 1.442695, %v3051_v56 }
 0x315   :  { %7670 = vpow2.f32 %v3091_v28 }
 0x316   :  { %7672 = vpow2.f32 %v3089_v25 }
 0x318   :  { %v8766_v6 = vpop.eup %7658 }
 0x319   :  { %v3144_v21 = vsel %vm435_vm2, %v8766_v6, 0.0  ;;  %v8777_v16 = vpop.eup %7660 }
 0x31a   :  { %3145 = vadd.xlane.f32.xlu0 %v3144_v21  ;;  %v3141_v33 = vsel %vm435_vm2, %v8777_v16, 0.0  ;;  %v8782_v47 = vpop.eup %7662 }
 0x31b   :  { %v3150_v0 = vsel %vm435_vm2, %v8782_v47, 0.0  ;;  %v8787_v24 = vpop.eup %7664 }
 0x31c   :  { %v3147_v30 = vsel %vm435_vm2, %v8787_v24, 0.0  ;;  %v8791_v20 = vpop.eup %7666 }
 0x31d   :  { %v3156_v32 = vsel %vm435_vm2, %v8791_v20, 0.0  ;;  %v8796_v37 = vpop.eup %7668 }
 0x31e   :  { %3043 = vmax.xlane.f32.xlu0 %v3042_v58  ;;  %v3153_v51 = vsel %vm435_vm2, %v8796_v37, 0.0 }
 0x31f   :  { %v8800_v23 = vpop.eup %7670 }
 0x320   :  { %v8805_v52 = vpop.eup %7672 }
 0x322   :  { %3142 = vadd.xlane.f32.xlu0 %v3141_v33  ;;  %v3159_v33 = vsel %vm435_vm2, %v8805_v52, 0.0 }
 0x326   :  { %3151 = vadd.xlane.f32.xlu0 %v3150_v0 }
 0x329   :  { %v2978_v18 = vpop.xlane.xlu0 %2977 }
 0x32a   :  { %3148 = vadd.xlane.f32.xlu0 %v3147_v30  ;;  %v3054_v7 = vsub.f32 %v8596_v40, %v2978_v18  ;;  %v3162_v40 = vsel %vm435_vm2, %v8800_v23, 0.0 }
 0x32c   :  { %v3095_v21 = vmul.f32 1.442695, %v3054_v7 }
 0x32e   :  { %3157 = vadd.xlane.f32.xlu0 %v3156_v32  ;;  %7674 = vpow2.f32 %v3095_v21 }
 0x332   :  { %v2975_v58 = vpop.xlane.xlu1 %2974  ;;  %3154 = vadd.xlane.f32.xlu0 %v3153_v51 }
 0x333   :  { %v3053_v26 = vsub.f32 %v8601_v46, %v2975_v58 }
 0x335   :  { %v3093_v3 = vmul.f32 1.442695, %v3053_v26 }
 0x336   :  { %3163 = vadd.xlane.f32.xlu0 %v3162_v40 }
 0x337   :  { %7676 = vpow2.f32 %v3093_v3 }
 0x338   :  { %v8809_v28 = vpop.eup %7674 }
 0x339   :  { %v3168_v18 = vsel %vm435_vm2, %v8809_v28, 0.0 }
 0x33a   :  { %v2984_v56 = vpop.xlane.xlu0 %2983  ;;  %3160 = vadd.xlane.f32.xlu0 %v3159_v33 }
 0x33b   :  { %v3056_v0 = vsub.f32 %v8606_v53, %v2984_v56  ;;  %v2981_v25 = vpop.xlane.xlu1 %2980 }
 0x33c   :  { %v3055_v46 = vsub.f32 %v8609_v54, %v2981_v25 }
 0x33d   :  { %v3099_v30 = vmul.f32 1.442695, %v3056_v0 }
 0x33e   :  { %v3097_v7 = vmul.f32 1.442695, %v3055_v46  ;;  %3169 = vadd.xlane.f32.xlu0 %v3168_v18 }
 0x33f   :  { %7678 = vpow2.f32 %v3099_v30 }
 0x340   :  { %7680 = vpow2.f32 %v3097_v7 }
 0x341   :  { %v8815_v21 = vpop.eup %7676 }
 0x342   :  { %v3165_v32 = vsel %vm435_vm2, %v8815_v21, 0.0 }
 0x343   :  { %3166 = vadd.xlane.f32.xlu1 %v3165_v32 }
 0x349   :  { %v8819_v51 = vpop.eup %7678 }
 0x34a   :  { %v8821_v53 = vpop.eup %7680  ;;  %v2990_v58 = vpop.xlane.xlu0 %2989  ;;  %v3174_v54 = vsel %vm435_vm2, %v8819_v51, 0.0 }
 0x34b   :  { %v3058_v26 = vsub.f32 %v8616_v63, %v2990_v58  ;;  %v2987_v3 = vpop.xlane.xlu1 %2986  ;;  %3175 = vadd.xlane.f32.xlu0 %v3174_v54  ;;  %v3171_v40 = vsel %vm435_vm2, %v8821_v53, 0.0 }
 0x34c   :  { %v3057_v33 = vsub.f32 %v8621_v4, %v2987_v3  ;;  %3172 = vadd.xlane.f32.xlu1 %v3171_v40 }
 0x34d   :  { %v3103_v56 = vmul.f32 1.442695, %v3058_v26 }
 0x34e   :  { %v3101_v0 = vmul.f32 1.442695, %v3057_v33 }
 0x34f   :  { %7682 = vpow2.f32 %v3103_v56 }
 0x350   :  { %7684 = vpow2.f32 %v3101_v0 }
 0x356   :  { %v2996_v25 = vpop.xlane.xlu0 %2995 }
 0x357   :  { %v3060_v46 = vsub.f32 %v8634_v12, %v2996_v25  ;;  %v2993_v30 = vpop.xlane.xlu1 %2992 }
 0x358   :  { %v3059_v18 = vsub.f32 %v8639_v14, %v2993_v30 }
 0x359   :  { %v8831_v7 = vpop.eup %7682  ;;  %v3107_v63 = vmul.f32 1.442695, %v3060_v46 }
 0x35a   :  { %v8833_v32 = vpop.eup %7684  ;;  %v3105_v58 = vmul.f32 1.442695, %v3059_v18  ;;  %v3002_v54 = vpop.xlane.xlu0 %3001  ;;  %v3180_v4 = vsel %vm435_vm2, %v8831_v7, 0.0 }
 0x35b   :  { %7686 = vpow2.f32 %v3107_v63  ;;  %v3062_v26 = vsub.f32 %v8648_v22, %v3002_v54  ;;  %v2999_v3 = vpop.xlane.xlu1 %2998  ;;  %3181 = vadd.xlane.f32.xlu0 %v3180_v4  ;;  %v3177_v12 = vsel %vm435_vm2, %v8833_v32, 0.0 }
 0x35c   :  { %7688 = vpow2.f32 %v3105_v58  ;;  %v3061_v14 = vsub.f32 %v8651_v29, %v2999_v3  ;;  %3178 = vadd.xlane.f32.xlu1 %v3177_v12 }
 0x35d   :  { %v3111_v40 = vmul.f32 1.442695, %v3062_v26 }
 0x35e   :  { %v3109_v33 = vmul.f32 1.442695, %v3061_v14  ;;  %v3008_v56 = vpop.xlane.xlu0 %3007 }
 0x35f   :  { %7690 = vpow2.f32 %v3111_v40  ;;  %v3064_v0 = vsub.f32 %v8660_v38, %v3008_v56  ;;  %v3005_v25 = vpop.xlane.xlu1 %3004 }
 0x360   :  { %7692 = vpow2.f32 %v3109_v33  ;;  %v3063_v46 = vsub.f32 %v8665_v44, %v3005_v25 }
 0x361   :  { %v3115_v22 = vmul.f32 1.442695, %v3064_v0 }
 0x362   :  { %v3113_v30 = vmul.f32 1.442695, %v3063_v46  ;;  %v3014_v18 = vpop.xlane.xlu0 %3013 }
 0x363   :  { %7694 = vpow2.f32 %v3115_v22  ;;  %v3066_v63 = vsub.f32 %v8672_v55, %v3014_v18  ;;  %v3011_v58 = vpop.xlane.xlu1 %3010 }
 0x364   :  { %7696 = vpow2.f32 %v3113_v30  ;;  %v3065_v29 = vsub.f32 %v8677_v61, %v3011_v58 }
 0x365   :  { %v8845_v54 = vpop.eup %7686  ;;  %v3119_v4 = vmul.f32 1.442695, %v3066_v63 }
 0x366   :  { %v8847_v26 = vpop.eup %7688  ;;  %v3117_v38 = vmul.f32 1.442695, %v3065_v29  ;;  %v3020_v3 = vpop.xlane.xlu0 %3019  ;;  %v3186_v44 = vsel %vm435_vm2, %v8845_v54, 0.0 }
 0x367   :  { %7698 = vpow2.f32 %v3119_v4  ;;  %v3068_v12 = vsub.f32 %v8686_v48, %v3020_v3  ;;  %v3017_v14 = vpop.xlane.xlu1 %3016  ;;  %3187 = vadd.xlane.f32.xlu0 %v3186_v44  ;;  %v3183_v55 = vsel %vm435_vm2, %v8847_v26, 0.0 }
 0x368   :  { %7700 = vpow2.f32 %v3117_v38  ;;  %v3067_v61 = vsub.f32 %v8689_v15, %v3017_v14  ;;  %3184 = vadd.xlane.f32.xlu1 %v3183_v55 }
 0x369   :  { %v8855_v40 = vpop.eup %7690  ;;  %v3123_v33 = vmul.f32 1.442695, %v3068_v12 }
 0x36a   :  { %v8857_v56 = vpop.eup %7692  ;;  %v3121_v0 = vmul.f32 1.442695, %v3067_v61  ;;  %v3026_v25 = vpop.xlane.xlu0 %3025  ;;  %v3192_v46 = vsel %vm435_vm2, %v8855_v40, 0.0 }
 0x36b   :  { %7702 = vpow2.f32 %v3123_v33  ;;  %v3070_v48 = vsub.f32 %v8698_v31, %v3026_v25  ;;  %v3023_v22 = vpop.xlane.xlu1 %3022  ;;  %3193 = vadd.xlane.f32.xlu0 %v3192_v46  ;;  %v3189_v30 = vsel %vm435_vm2, %v8857_v56, 0.0 }
 0x36c   :  { %7704 = vpow2.f32 %v3121_v0  ;;  %v3069_v15 = vsub.f32 %v8703_v39, %v3023_v22  ;;  %3190 = vadd.xlane.f32.xlu1 %v3189_v30 }
 0x36d   :  { %v8865_v18 = vpop.eup %7694  ;;  %v3127_v63 = vmul.f32 1.442695, %v3070_v48 }
 0x36e   :  { %v8867_v58 = vpop.eup %7696  ;;  %v3125_v29 = vmul.f32 1.442695, %v3069_v15  ;;  %v3198_v4 = vsel %vm435_vm2, %v8865_v18, 0.0 }
 0x36f   :  { %7706 = vpow2.f32 %v3127_v63  ;;  %3199 = vadd.xlane.f32.xlu0 %v3198_v4  ;;  %v3195_v31 = vsel %vm435_vm2, %v8867_v58, 0.0 }
 0x370   :  { %7708 = vpow2.f32 %v3125_v29  ;;  %3196 = vadd.xlane.f32.xlu1 %v3195_v31 }
 0x371   :  { %v8873_v38 = vpop.eup %7698 }
 0x372   :  { %v8875_v39 = vpop.eup %7700  ;;  %v3032_v3 = vpop.xlane.xlu0 %3031  ;;  %v3204_v44 = vsel %vm435_vm2, %v8873_v38, 0.0 }
 0x373   :  { %v3072_v12 = vsub.f32 %v8714_v62, %v3032_v3  ;;  %3205 = vadd.xlane.f32.xlu0 %v3204_v44  ;;  %v3201_v14 = vsel %vm435_vm2, %v8875_v39, 0.0 }
 0x374   :  { %3202 = vadd.xlane.f32.xlu1 %v3201_v14 }
 0x375   :  { %v8882_v55 = vpop.eup %7702  ;;  %v3131_v61 = vmul.f32 1.442695, %v3072_v12  ;;  %v8912_v12 = vpop.permute.xlu1 %5434 }
 0x376   :  { %v8884_v33 = vpop.eup %7704  ;;  %v3029_v0 = vpop.xlane.xlu0 %3028  ;;  %v3210_v25 = vsel %vm435_vm2, %v8882_v55, 0.0 }
 0x377   :  { %7710 = vpow2.f32 %v3131_v61  ;;  %v3071_v46 = vsub.f32 %v8717_v9, %v3029_v0  ;;  %3211 = vadd.xlane.f32.xlu0 %v3210_v25  ;;  %v3207_v62 = vsel %vm435_vm2, %v8884_v33, 0.0 }
 0x378   :  { %3208 = vadd.xlane.f32.xlu1 %v3207_v62 }
 0x379   :  { %v8891_v48 = vpop.eup %7706  ;;  %v3129_v22 = vmul.f32 1.442695, %v3071_v46 }
 0x37a   :  { %v8893_v30 = vpop.eup %7708  ;;  %v3216_v15 = vsel %vm435_vm2, %v8891_v48, 0.0  ;;  %v3038_v3 = vpop.xlane.xlu0 %3037 }
 0x37b   :  { %7712 = vpow2.f32 %v3129_v22  ;;  %3217 = vadd.xlane.f32.xlu0 %v3216_v15  ;;  %v3213_v63 = vsel %vm435_vm2, %v8893_v30, 0.0  ;;  %v3074_v44 = vsub.f32 %v8728_v27, %v3038_v3 }
 0x37c   :  { %3214 = vadd.xlane.f32.xlu1 %v3213_v63 }
 0x37d   :  { %v3135_v61 = vmul.f32 1.442695, %v3074_v44 }
 0x37e   :  { %v3035_v14 = vpop.xlane.xlu0 %3034 }
 0x37f   :  { %v3073_v0 = vsub.f32 %v8733_v49, %v3035_v14 }
 0x381   :  { %v8899_v9 = vpop.eup %7710  ;;  %v3133_v62 = vmul.f32 1.442695, %v3073_v0 }
 0x382   :  { %v3222_v29 = vsel %vm435_vm2, %v8899_v9, 0.0 }
 0x383   :  { %3223 = vadd.xlane.f32.xlu1 %v3222_v29 }
 0x385   :  { %v8903_v4 = vpop.eup %7712 }
 0x386   :  { %v3219_v31 = vsel %vm435_vm2, %v8903_v4, 0.0 }
 0x387   :  { %3220 = vadd.xlane.f32.xlu0 %v3219_v31 }
 0x394   :  { %5586 = vrot.lane.b32.xlu1 %v8522_v45, %s8035_s2 }
 0x39d   :  { %5510 = vrot.lane.b32.xlu0 %v8519_v42, %s8035_s2 }
 0x3a0   :  { %v3041_v25 = vpop.xlane.xlu1 %3040 }
 0x3a1   :  { %v3075_v22 = vsub.f32 %v8760_v35, %v3041_v25  ;;  %v9574_v35 = vmov 0.0  }
 0x3a3   :  { %v3137_v42 = vmul.f32 1.442695, %v3075_v22 }
 0x3a7   :  { %v3146_v46 = vpop.xlane.xlu0 %3145 }
 0x3a8   :  { %7714 = vrcp.f32 %v3146_v46 }
 0x3a9   :  { %7716 = vpow2.f32 %v3135_v61 }
 0x3aa   :  { %7718 = vpow2.f32 %v3133_v62 }
 0x3ab   :  { %v3044_v45 = vpop.xlane.xlu0 %3043 }
 0x3ac   :  { %v3076_v15 = vsub.f32 %v8770_v41, %v3044_v45 }
 0x3ae   :  { %v3139_v63 = vmul.f32 1.442695, %v3076_v15 }
 0x3af   :  { %v3143_v27 = vpop.xlane.xlu0 %3142 }
 0x3b0   :  { %7720 = vpow2.f32 %v3139_v63 }
 0x3b1   :  { %7722 = vrcp.f32 %v3143_v27 }
 0x3b2   :  { %v7715_v29 = vpop.eup %7714  ;;  %7724 = vpow2.f32 %v3137_v42 }
 0x3b3   :  { %v3152_v31 = vpop.xlane.xlu0 %3151  ;;  %v8918_v49 = vmul.f32 %v7715_v29, %v8766_v6  ;;  %v8920_v3 = vpop.eup %7716 }
 0x3b4   :  { %7726 = vrcp.f32 %v3152_v31  ;;  %v3228_v44 = vsel %vm435_vm2, %v8920_v3, 0.0  ;;  %v8930_v14 = vpop.eup %7718 }
 0x3b5   :  { %7345 = vmatmul.mubr.msk.f32.vlgmr.msra.gmra.mrb[40].mxu1 %vm435_vm2, %v8918_v49 }
 0x3b6   :  { %7353 = vmatpush3.msra.mxu1 %v8625_v8  ;;  %7354 = vmatprep.mubr.msk.f32.mxu1 %vm8027_vm1, %v9574_v35  ;;  %v3225_v8 = vsel %vm435_vm2, %v8930_v14, 0.0 }
 0x3b7   :  { %v3149_v41 = vpop.xlane.xlu0 %3148  ;;  %7362 = vmatprep.subr.mxu1 %v9574_v35 }
 0x3b8   :  { %7728 = vrcp.f32 %v3149_v41  ;;  %3229 = vadd.xlane.f32.xlu1 %v3228_v44 }
 0x3ba   :  { %v8932_v6 = vpop.eup %7720 }
 0x3bb   :  { %v7723_v61 = vpop.eup %7722  ;;  %v3158_v0 = vpop.xlane.xlu0 %3157  ;;  %v3234_v25 = vsel %vm435_vm2, %v8932_v6, 0.0 }
 0x3bc   :  { %v8938_v46 = vpop.eup %7724  ;;  %7730 = vrcp.f32 %v3158_v0  ;;  %3226 = vadd.xlane.f32.xlu0 %v3225_v8  ;;  %3235 = vadd.xlane.f32.xlu1 %v3234_v25  ;;  %v8941_v62 = vmul.f32 %v7723_v61, %v8777_v16 }
 0x3bd   :  { %v3231_v42 = vsel %vm435_vm2, %v8938_v46, 0.0 }
 0x3be   :  { %v7727_v22 = vpop.eup %7726  ;;  %7340 = vmatmul.mubr.msk.f32.vlgmr.msra.gmra.mrb[40].mxu0 %vm435_vm2, %v8941_v62 }
 0x3bf   :  { %v8946_v45 = vmul.f32 %v7727_v22, %v8782_v47  ;;  %7348 = vmatpush3.msra.mxu0 %v8618_v2  ;;  %v3155_v15 = vpop.xlane.xlu0 %3154  ;;  %7349 = vmatprep.mubr.msk.f32.mxu0 %vm8027_vm1, %v9574_v35 }
 0x3c0   :  { %7732 = vrcp.f32 %v3155_v15  ;;  %3232 = vadd.xlane.f32.xlu0 %v3231_v42  ;;  %7357 = vmatprep.subr.mxu0 %v9574_v35 }
 0x3c1   :  { %7355 = vmatmul.mubr.msk.f32.vlgmr.msra.gmra.mrb[42].mxu1 %vm435_vm2, %v8946_v45 }
 0x3c2   :  { %v7729_v16 = vpop.eup %7728  ;;  %7363 = vmatpush3.msra.mxu1 %v8631_v11  ;;  %7364 = vmatprep.mubr.msk.f32.mxu1 %vm8027_vm1, %v9574_v35 }
 0x3c3   :  { %v8960_v2 = vmul.f32 %v7729_v16, %v8787_v24  ;;  %v3164_v47 = vpop.xlane.xlu0 %3163  ;;  %7372 = vmatprep.subr.mxu1 %v9574_v35 }
 0x3c4   :  { %7734 = vrcp.f32 %v3164_v47 }
 0x3c5   :  { %7350 = vmatmul.mubr.msk.f32.vlgmr.msra.gmra.mrb[42].mxu0 %vm435_vm2, %v8960_v2 }
 0x3c6   :  { %v7731_v63 = vpop.eup %7730  ;;  %7358 = vmatpush3.msra.mxu0 %v8629_v10  ;;  %7359 = vmatprep.mubr.msk.f32.mxu0 %vm8027_vm1, %v9574_v35 }
 0x3c7   :  { %v8969_v11 = vmul.f32 %v7731_v63, %v8791_v20  ;;  %v3161_v27 = vpop.xlane.xlu0 %3160  ;;  %7367 = vmatprep.subr.mxu0 %v9574_v35 }
 0x3c8   :  { %7736 = vrcp.f32 %v3161_v27 }
 0x3c9   :  { %7365 = vmatmul.mubr.msk.f32.vlgmr.msra.gmra.mrb[44].mxu1 %vm435_vm2, %v8969_v11  ;;  %v3336_v8 = vsel %vm435_vm2, %v8969_v11, 0.0 }
 0x3ca   :  { %v7733_v24 = vpop.eup %7732  ;;  %7373 = vmatpush3.msra.mxu1 %v8643_v17  ;;  %7374 = vmatprep.mubr.msk.f32.mxu1 %vm8027_vm1, %v9574_v35 }
 0x3cb   :  { %v8978_v10 = vmul.f32 %v7733_v24, %v8796_v37  ;;  %v3170_v29 = vpop.xlane.xlu0 %3169  ;;  %7382 = vmatprep.subr.mxu1 %v9574_v35 }
 0x3cc   :  { %7738 = vrcp.f32 %v3170_v29 }
 0x3cd   :  { %7360 = vmatmul.mubr.msk.f32.vlgmr.msra.gmra.mrb[44].mxu0 %vm435_vm2, %v8978_v10  ;;  %5738 = vrot.lane.b32.xlu1 %v8529_v13, %s8035_s2  ;;  %v3329_v22 = vsel %vm435_vm2, %v8978_v10, 0.0 }
 0x3ce   :  { %v7735_v20 = vpop.eup %7734  ;;  %7368 = vmatpush3.msra.mxu0 %v8709_v50  ;;  %7369 = vmatprep.mubr.msk.f32.mxu0 %vm8027_vm1, %v9574_v35 }
 0x3cf   :  { %v8989_v17 = vmul.f32 %v7735_v20, %v8800_v23  ;;  %7377 = vmatprep.subr.mxu0 %v9574_v35 }
 0x3d0   :  { %v3167_v37 = vpop.xlane.xlu1 %3166 }
 0x3d1   :  { %7740 = vrcp.f32 %v3167_v37  ;;  %7375 = vmatmul.mubr.msk.f32.vlgmr.msra.gmra.mrb[46].mxu1 %vm435_vm2, %v8989_v17  ;;  %v3350_v29 = vsel %vm435_vm2, %v8989_v17, 0.0 }
 0x3d2   :  { %v7737_v31 = vpop.eup %7736  ;;  %7383 = vmatpush3.msra.mxu1 %v8662_v43  ;;  %7384 = vmatprep.mubr.msk.f32.mxu1 %vm8027_vm1, %v9574_v35 }
 0x3d3   :  { %v8998_v13 = vmul.f32 %v7737_v31, %v8805_v52  ;;  %7392 = vmatprep.subr.mxu1 %v9574_v35 }
 0x3d5   :  { %7370 = vmatmul.mubr.msk.f32.vlgmr.msra.gmra.mrb[46].mxu0 %vm435_vm2, %v8998_v13  ;;  %v3343_v31 = vsel %vm435_vm2, %v8998_v13, 0.0 }
 0x3d6   :  { %v7739_v50 = vpop.eup %7738  ;;  %7378 = vmatpush3.msra.mxu0 %v8636_v60  ;;  %5662 = vrot.lane.b32.xlu0 %v8538_v1, %s8035_s2 }
 0x3d7   :  { %v9007_v23 = vmul.f32 %v7739_v50, %v8809_v28  ;;  %7379 = vmatprep.mubr.msk.f32.mxu0 %vm8027_vm1, %v9574_v35  ;;  %7387 = vmatprep.subr.mxu0 %v9574_v35 }
 0x3d8   :  { %v3176_v43 = vpop.xlane.xlu0 %3175 }
 0x3d9   :  { %7742 = vrcp.f32 %v3176_v43  ;;  %v3173_v52 = vpop.xlane.xlu1 %3172  ;;  %7385 = vmatmul.mubr.msk.f32.vlgmr.msra.gmra.mrb[48].mxu1 %vm435_vm2, %v9007_v23 }
 0x3da   :  { %7744 = vrcp.f32 %v3173_v52  ;;  %7393 = vmatpush3.msra.mxu1 %v8681_v5  ;;  %7394 = vmatprep.mubr.msk.f32.mxu1 %vm8027_vm1, %v9574_v35 }
 0x3db   :  { %v7741_v1 = vpop.eup %7740  ;;  %7402 = vmatprep.subr.mxu1 %v9574_v35 }
 0x3dc   :  { %v9019_v60 = vmul.f32 %v7741_v1, %v8815_v21  ;;  %v9576_v1 = vld [vmem:[#allocation22_spill] sm:$0xff] }
 0x3de   :  { %7380 = vmatmul.mubr.msk.f32.vlgmr.msra.gmra.mrb[48].mxu0 %vm435_vm2, %v9019_v60 }
 0x3df   :  { %7388 = vmatpush3.msra.mxu0 %v8655_v34  ;;  %7389 = vmatprep.mubr.msk.f32.mxu0 %vm8027_vm1, %v9574_v35 }
 0x3e0   :  { %7397 = vmatprep.subr.mxu0 %v9574_v35 }
 0x3e3   :  { %v7743_v5 = vpop.eup %7742 }
 0x3e4   :  { %v7745_v28 = vpop.eup %7744  ;;  %v9028_v41 = vmul.f32 %v7743_v5, %v8819_v51 }
 0x3e5   :  { %v9031_v44 = vmul.f32 %v7745_v28, %v8821_v53 }
 0x3e6   :  { %7395 = vmatmul.mubr.msk.f32.vlgmr.msra.gmra.mrb[50].mxu1 %vm435_vm2, %v9028_v41 }
 0x3e7   :  { %7390 = vmatmul.mubr.msk.f32.vlgmr.msra.gmra.mrb[50].mxu0 %vm435_vm2, %v9031_v44  ;;  %7403 = vmatpush3.msra.mxu1 %v8700_v36 }
 0x3e8   :  { %7398 = vmatpush3.msra.mxu0 %v8674_v59  ;;  %v3182_v34 = vpop.xlane.xlu0 %3181  ;;  %7399 = vmatprep.mubr.msk.f32.mxu0 %vm8027_vm1, %v9574_v35 }
 0x3e9   :  { %7746 = vrcp.f32 %v3182_v34  ;;  %v3179_v21 = vpop.xlane.xlu1 %3178  ;;  %7404 = vmatprep.mubr.msk.f32.mxu1 %vm8027_vm1, %v9574_v35  ;;  %7407 = vmatprep.subr.mxu0 %v9574_v35  ;;  %v9577_v34 = vld [vmem:[#allocation26_spill] sm:$0xff] }
 0x3ea   :  { %7748 = vrcp.f32 %v3179_v21  ;;  %7412 = vmatprep.subr.mxu1 %v9574_v35 }
 0x3f3   :  { %v7747_v51 = vpop.eup %7746 }
 0x3f4   :  { %v7749_v53 = vpop.eup %7748  ;;  %v3282_v36 = vmul.f32 %v7747_v51, %v8831_v7  ;;  %v3188_v61 = vpop.xlane.xlu0 %3187  ;;  %v9578_v51 = vld [vmem:[#allocation23_spill] sm:$0xff] }
 0x3f5   :  { %v3281_v59 = vmul.f32 %v7749_v53, %v8833_v32  ;;  %7750 = vrcp.f32 %v3188_v61  ;;  %v3185_v0 = vpop.xlane.xlu1 %3184 }
 0x3f6   :  { %v3337_v25 = vsel %vm435_vm2, %v3282_v36, 0.0  ;;  %7752 = vrcp.f32 %v3185_v0  ;;  %7405 = vmatmul.mubr.msk.f32.vlgmr.msra.gmra.mrb[52].mxu1 %vm435_vm2, %v3282_v36 }
 0x3f7   :  { %v9053_v15 = vadd.f32 %v3337_v25, %v3336_v8  ;;  %v3330_v7 = vsel %vm435_vm2, %v3281_v59, 0.0  ;;  %7400 = vmatmul.mubr.msk.f32.vlgmr.msra.gmra.mrb[52].mxu0 %vm435_vm2, %v3281_v59  ;;  %7413 = vmatpush3.msra.mxu1 %v8693_v19  ;;  %v9579_v59 = vld [vmem:[#allocation28_spill] sm:$0xff]  ;;  %v9580_v8 = vld [vmem:[#allocation25_spill] sm:$0xff] }
 0x3f8   :  { %v9058_v32 = vadd.f32 %v3330_v7, %v3329_v22  ;;  %7408 = vmatpush3.msra.mxu0 %v8721_v57  ;;  %v3194_v42 = vpop.xlane.xlu0 %3193  ;;  %7409 = vmatprep.mubr.msk.f32.mxu0 %vm8027_vm1, %v9574_v35 }
 0x3f9   :  { %7754 = vrcp.f32 %v3194_v42  ;;  %v3191_v16 = vpop.xlane.xlu1 %3190  ;;  %7414 = vmatprep.mubr.msk.f32.mxu1 %vm8027_vm1, %v9574_v35  ;;  %7417 = vmatprep.subr.mxu0 %v9574_v35 }
 0x3fa   :  { %7756 = vrcp.f32 %v3191_v16  ;;  %7422 = vmatprep.subr.mxu1 %v9574_v35 }
 0x3fc   :  { %v3200_v47 = vpop.xlane.xlu0 %3199 }
 0x3fd   :  { %7758 = vrcp.f32 %v3200_v47  ;;  %v3197_v19 = vpop.xlane.xlu1 %3196  ;;  %v3309_v47 = vsel %vm435_vm2, %v9007_v23, 0.0  ;;  %v3301_v23 = vsel %vm435_vm2, %v8941_v62, 0.0  ;;  %v9583_v62 = vld [vmem:[#allocation32_spill] sm:$0xff] }
 0x3fe   :  { %7760 = vrcp.f32 %v3197_v19 }
 0x3ff   :  { %v7751_v63 = vpop.eup %7750 }
 0x400   :  { %v7753_v57 = vpop.eup %7752  ;;  %v3284_v11 = vmul.f32 %v7751_v63, %v8845_v54  ;;  %v3206_v27 = vpop.xlane.xlu0 %3205 }
 0x401   :  { %v3283_v24 = vmul.f32 %v7753_v57, %v8847_v26  ;;  %7762 = vrcp.f32 %v3206_v27  ;;  %v3203_v10 = vpop.xlane.xlu1 %3202  ;;  %v9575_v26 = vld [vmem:[#allocation24_spill] sm:$0xff]  ;;  %v9582_v57 = vld [vmem:[#allocation27_spill] sm:$0xff] }
 0x402   :  { %v3351_v20 = vsel %vm435_vm2, %v3284_v11, 0.0  ;;  %7764 = vrcp.f32 %v3203_v10  ;;  %7415 = vmatmul.mubr.msk.f32.vlgmr.msra.gmra.mrb[54].mxu1 %vm435_vm2, %v3284_v11 }
 0x403   :  { %v7755_v37 = vpop.eup %7754  ;;  %v9075_v50 = vadd.f32 %v3351_v20, %v3350_v29  ;;  %v3344_v54 = vsel %vm435_vm2, %v3283_v24, 0.0  ;;  %7410 = vmatmul.mubr.msk.f32.vlgmr.msra.gmra.mrb[54].mxu0 %vm435_vm2, %v3283_v24  ;;  %7423 = vmatpush3.msra.mxu1 %v9575_v26  ;;  %v9584_v26 = vld [vmem:[#allocation29_spill] sm:$0xff] }
 0x404   :  { %v7757_v43 = vpop.eup %7756  ;;  %v9080_v52 = vadd.f32 %v3344_v54, %v3343_v31  ;;  %v3286_v17 = vmul.f32 %v7755_v37, %v8855_v40  ;;  %7418 = vmatpush3.msra.mxu0 %v9576_v1  ;;  %v3212_v5 = vpop.xlane.xlu0 %3211  ;;  %7419 = vmatprep.mubr.msk.f32.mxu0 %vm8027_vm1, %v9574_v35 }
 0x405   :  { %v3285_v13 = vmul.f32 %v7757_v43, %v8857_v56  ;;  %7766 = vrcp.f32 %v3212_v5  ;;  %v3209_v28 = vpop.xlane.xlu1 %3208  ;;  %7424 = vmatprep.mubr.msk.f32.mxu1 %vm8027_vm1, %v9574_v35  ;;  %7427 = vmatprep.subr.mxu0 %v9574_v35 }
 0x406   :  { %7768 = vrcp.f32 %v3209_v28  ;;  %7432 = vmatprep.subr.mxu1 %v9574_v35  ;;  %7425 = vmatmul.mubr.msk.f32.vlgmr.msra.gmra.mrb[56].mxu1 %vm435_vm2, %v3286_v17  ;;  %v9585_v28 = vld [vmem:[#allocation31_spill] sm:$0xff] }
 0x407   :  { %v7759_v40 = vpop.eup %7758  ;;  %7420 = vmatmul.mubr.msk.f32.vlgmr.msra.gmra.mrb[56].mxu0 %vm435_vm2, %v3285_v13  ;;  %7433 = vmatpush3.msra.mxu1 %v9577_v34  ;;  %v3304_v10 = vsel %vm435_vm2, %v3285_v13, 0.0  ;;  %v3322_v34 = vsel %vm435_vm2, %v8946_v45, 0.0  ;;  %v3315_v45 = vsel %vm435_vm2, %v8960_v2, 0.0 }
 0x408   :  { %v7761_v21 = vpop.eup %7760  ;;  %v9095_v56 = vmul.f32 %v7759_v40, %v8865_v18  ;;  %7428 = vmatpush3.msra.mxu0 %v9578_v51  ;;  %v3218_v53 = vpop.xlane.xlu0 %3217  ;;  %7429 = vmatprep.mubr.msk.f32.mxu0 %vm8027_vm1, %v9574_v35 }
 0x409   :  { %v9101_v36 = vmul.f32 %v7761_v21, %v8867_v58  ;;  %7770 = vrcp.f32 %v3218_v53  ;;  %v3215_v61 = vpop.xlane.xlu1 %3214  ;;  %7434 = vmatprep.mubr.msk.f32.mxu1 %vm8027_vm1, %v9574_v35  ;;  %7437 = vmatprep.subr.mxu0 %v9574_v35  ;;  %v3316_v53 = vsel %vm435_vm2, %v9031_v44, 0.0 }
 0x40a   :  { %7772 = vrcp.f32 %v3215_v61  ;;  %7442 = vmatprep.subr.mxu1 %v9574_v35  ;;  %7435 = vmatmul.mubr.msk.f32.vlgmr.msra.gmra.mrb[58].mxu1 %vm435_vm2, %v9095_v56 }
 0x40b   :  { %v7763_v18 = vpop.eup %7762  ;;  %7430 = vmatmul.mubr.msk.f32.vlgmr.msra.gmra.mrb[58].mxu0 %vm435_vm2, %v9101_v36  ;;  %7443 = vmatpush3.msra.mxu1 %v9579_v59 }
 0x40c   :  { %v7765_v58 = vpop.eup %7764  ;;  %v3290_v0 = vmul.f32 %v7763_v18, %v8873_v38  ;;  %7438 = vmatpush3.msra.mxu0 %v9580_v8  ;;  %7439 = vmatprep.mubr.msk.f32.mxu0 %vm8027_vm1, %v9574_v35  ;;  %v3317_v8 = vadd.f32 %v3316_v53, %v3315_v45 }
 0x40d   :  { %v3289_v25 = vmul.f32 %v7765_v58, %v8875_v39  ;;  %7444 = vmatprep.mubr.msk.f32.mxu1 %vm8027_vm1, %v9574_v35  ;;  %7447 = vmatprep.subr.mxu0 %v9574_v35  ;;  %v9581_v39 = vld [vmem:[#allocation30_spill] sm:$0xff] }
 0x40e   :  { %v3339_v22 = vsel %vm435_vm2, %v3290_v0, 0.0  ;;  %7452 = vmatprep.subr.mxu1 %v9574_v35  ;;  %7445 = vmatmul.mubr.msk.f32.vlgmr.msra.gmra.mrb[60].mxu1 %vm435_vm2, %v3290_v0 }
 0x40f   :  { %v7767_v7 = vpop.eup %7766  ;;  %v9124_v38 = vadd.f32 %v3339_v22, %v9053_v15  ;;  %v3332_v42 = vsel %vm435_vm2, %v3289_v25, 0.0  ;;  %7440 = vmatmul.mubr.msk.f32.vlgmr.msra.gmra.mrb[60].mxu0 %vm435_vm2, %v3289_v25  ;;  %7453 = vmatpush3.msra.mxu1 %v9581_v39  ;;  %v3302_v15 = vsel %vm435_vm2, %v9019_v60, 0.0 }
 0x410   :  { %v7769_v16 = vpop.eup %7768  ;;  %v9132_v19 = vadd.f32 %v3332_v42, %v9058_v32  ;;  %v3292_v63 = vmul.f32 %v7767_v7, %v8882_v55  ;;  %7448 = vmatpush3.msra.mxu0 %v9582_v57  ;;  %v3224_v11 = vpop.xlane.xlu1 %3223  ;;  %7449 = vmatprep.mubr.msk.f32.mxu0 %vm8027_vm1, %v9574_v35  ;;  %v3308_v55 = vsel %vm435_vm2, %v8918_v49, 0.0  ;;  %v3311_v32 = vsel %vm435_vm2, %v3286_v17, 0.0 }
 0x411   :  { %v3291_v27 = vmul.f32 %v7769_v16, %v8884_v33  ;;  %7774 = vrcp.f32 %v3224_v11  ;;  %7454 = vmatprep.mubr.msk.f32.mxu1 %vm8027_vm1, %v9574_v35  ;;  %7457 = vmatprep.subr.mxu0 %v9574_v35  ;;  %v3310_v60 = vadd.f32 %v3309_v47, %v3308_v55  ;;  %v3303_v37 = vadd.f32 %v3302_v15, %v3301_v23 }
 0x412   :  { %v3353_v24 = vsel %vm435_vm2, %v3292_v63, 0.0  ;;  %7462 = vmatprep.subr.mxu1 %v9574_v35  ;;  %7455 = vmatmul.mubr.msk.f32.vlgmr.msra.gmra.mrb[62].mxu1 %vm435_vm2, %v3292_v63 }
 0x413   :  { %v7771_v33 = vpop.eup %7770  ;;  %v9154_v29 = vadd.f32 %v3353_v24, %v9075_v50  ;;  %v3346_v49 = vsel %vm435_vm2, %v3291_v27, 0.0  ;;  %7450 = vmatmul.mubr.msk.f32.vlgmr.msra.gmra.mrb[62].mxu0 %vm435_vm2, %v3291_v27  ;;  %7463 = vmatpush3.msra.mxu1 %v9583_v62  ;;  %v3312_v50 = vadd.f32 %v3311_v32, %v3310_v60  ;;  %v3305_v1 = vadd.f32 %v3304_v10, %v3303_v37 }
 0x414   :  { %v7773_v20 = vpop.eup %7772  ;;  %v9160_v31 = vadd.f32 %v3346_v49, %v9080_v52  ;;  %v3294_v54 = vmul.f32 %v7771_v33, %v8891_v48  ;;  %7458 = vmatpush3.msra.mxu0 %v9584_v26  ;;  %v3221_v43 = vpop.xlane.xlu0 %3220  ;;  %7459 = vmatprep.mubr.msk.f32.mxu0 %vm8027_vm1, %v9574_v35 }
 0x415   :  { %v3293_v17 = vmul.f32 %v7773_v20, %v8893_v30  ;;  %7776 = vrcp.f32 %v3221_v43  ;;  %7464 = vmatprep.mubr.msk.f32.mxu1 %vm8027_vm1, %v9574_v35  ;;  %7467 = vmatprep.subr.mxu0 %v9574_v35  ;;  %v3323_v30 = vsel %vm435_vm2, %v9028_v41, 0.0  ;;  %v5587_v58 = vpop.permute.xlu1 %5586 }
 0x416   :  { %v3313_v52 = vsel %vm435_vm2, %v3294_v54, 0.0  ;;  %7472 = vmatprep.subr.mxu1 %v9574_v35  ;;  %7465 = vmatmul.mubr.msk.f32.vlgmr.msra.gmra.mrb[64].mxu1 %vm435_vm2, %v3294_v54  ;;  %v3324_v51 = vadd.f32 %v3323_v30, %v3322_v34 }
 0x417   :  { %v3314_v48 = vadd.f32 %v3313_v52, %v3312_v50  ;;  %v3306_v5 = vsel %vm435_vm2, %v3293_v17, 0.0  ;;  %7460 = vmatmul.mubr.msk.f32.vlgmr.msra.gmra.mrb[64].mxu0 %vm435_vm2, %v3293_v17  ;;  %7473 = vmatpush3.msra.mxu1 %v8912_v12  ;;  %v3325_v12 = vsel %vm435_vm2, %v9095_v56, 0.0  ;;  %v3318_v56 = vsel %vm435_vm2, %v9101_v36, 0.0 }
 0x418   :  { %v3307_v13 = vadd.f32 %v3306_v5, %v3305_v1  ;;  %7468 = vmatpush3.msra.mxu0 %v9585_v28  ;;  %7474 = vmatprep.mubr.msk.f32.mxu1 %vm8027_vm1, %v9574_v35  ;;  %v3326_v18 = vadd.f32 %v3325_v12, %v3324_v51  ;;  %v3319_v2 = vadd.f32 %v3318_v56, %v3317_v8  ;;  %v5511_v22 = vpop.permute.xlu0 %5510  ;;  %v5937_v8 = vld [vmem:[#allocation10 + $0x20] sm:$0xff] }
 0x419   :  { %v3359_v40 = vmul.f32 0.25, %v3314_v48  ;;  %7482 = vmatprep.subr.mxu1 %v9574_v35  ;;  %7469 = vmatprep.mubr.msk.f32.mxu0 %vm8027_vm1, %v9574_v35 }
 0x41a   :  { %v3358_v21 = vmul.f32 0.25, %v3307_v13  ;;  %7477 = vmatprep.subr.mxu0 %v9574_v35 }
 0x41b   :  { %v7775_v41 = vpop.eup %7774  ;;  %3367 = vst.msk [vmem:[#allocation14 + $0x8] sm:$0xff] %vm435_vm2, %v3359_v40 }
 0x41c   :  { %3366 = vst.msk [vmem:[#allocation14] sm:$0xff] %vm435_vm2, %v3358_v21  ;;  %v3296_v61 = vmul.f32 %v7775_v41, %v8899_v9 }
 0x41e   :  { %v3327_v59 = vsel %vm435_vm2, %v3296_v61, 0.0  ;;  %7475 = vmatmul.mubr.msk.f32.vlgmr.msra.gmra.mrb[66].mxu1 %vm435_vm2, %v3296_v61 }
 0x41f   :  { %v7777_v0 = vpop.eup %7776  ;;  %v3328_v25 = vadd.f32 %v3327_v59, %v3326_v18  ;;  %7483 = vmatpush3.msra.mxu1 %v5587_v58  ;;  %7484 = vmatprep.mubr.msk.f32.mxu1 %vm8027_vm1, %v9574_v35 }
 0x420   :  { %v3295_v9 = vmul.f32 %v7777_v0, %v8903_v4  ;;  %7492 = vmatprep.subr.mxu1 %v9574_v35 }
 0x421   :  { %v3361_v44 = vmul.f32 0.25, %v3328_v25  ;;  %v5938_v25 = vld [vmem:[#allocation10 + $0x28] sm:$0xff] }
 0x422   :  { %v3320_v36 = vsel %vm435_vm2, %v3295_v9, 0.0  ;;  %7470 = vmatmul.mubr.msk.f32.vlgmr.msra.gmra.mrb[66].mxu0 %vm435_vm2, %v3295_v9  ;;  %v5939_v9 = vld [vmem:[#allocation10 + $0x30] sm:$0xff] }
 0x423   :  { %3369 = vst.msk [vmem:[#allocation14 + $0x18] sm:$0xff] %vm435_vm2, %v3361_v44  ;;  %v3321_v7 = vadd.f32 %v3320_v36, %v3319_v2  ;;  %7478 = vmatpush3.msra.mxu0 %v5511_v22  ;;  %7479 = vmatprep.mubr.msk.f32.mxu0 %vm8027_vm1, %v9574_v35  ;;  %v7592_v2 = vpack.c.bf16 %v5938_v25, %v5937_v8  ;;  %v5940_v44 = vld [vmem:[#allocation10 + $0x38] sm:$0xff] }
 0x424   :  { %7487 = vmatprep.subr.mxu0 %v9574_v35  ;;  %v7596_v36 = vpack.c.bf16 %v5940_v44, %v5939_v9 }
 0x425   :  { %v3360_v42 = vmul.f32 0.25, %v3321_v7 }
 0x427   :  { %3368 = vst.msk [vmem:[#allocation14 + $0x10] sm:$0xff] %vm435_vm2, %v3360_v42 }
 0x445   :  { %v3230_v4 = vpop.xlane.xlu1 %3229 }
 0x446   :  { %7778 = vrcp.f32 %v3230_v4 }
 0x449   :  { %v3227_v39 = vpop.xlane.xlu0 %3226  ;;  %v3236_v16 = vpop.xlane.xlu1 %3235 }
 0x44a   :  { %7780 = vrcp.f32 %v3227_v39 }
 0x44b   :  { %7782 = vrcp.f32 %v3236_v16 }
 0x44d   :  { %v3233_v47 = vpop.xlane.xlu0 %3232  ;;  %v5739_v15 = vpop.permute.xlu1 %5738 }
 0x44e   :  { %7784 = vrcp.f32 %v3233_v47 }
 0x450   :  { %v7779_v63 = vpop.eup %7778 }
 0x451   :  { %v3298_v57 = vmul.f32 %v7779_v63, %v8920_v3  ;;  %v5663_v60 = vpop.permute.xlu0 %5662 }
 0x453   :  { %v3341_v11 = vsel %vm435_vm2, %v3298_v57, 0.0  ;;  %7485 = vmatmul.mubr.msk.f32.vlgmr.msra.gmra.mrb[68].mxu1 %vm435_vm2, %v3298_v57 }
 0x454   :  { %v7781_v27 = vpop.eup %7780  ;;  %v3342_v55 = vadd.f32 %v3341_v11, %v9124_v38  ;;  %7493 = vmatpush3.msra.mxu1 %v5739_v15  ;;  %7494 = vmatprep.mubr.msk.f32.mxu1 %vm8027_vm1, %v9574_v35 }
 0x455   :  { %v7783_v23 = vpop.eup %7782  ;;  %v3297_v32 = vmul.f32 %v7781_v27, %v8930_v14 }
 0x456   :  { %v3363_v24 = vmul.f32 0.25, %v3342_v55  ;;  %v3300_v33 = vmul.f32 %v7783_v23, %v8932_v6 }
 0x457   :  { %v3334_v3 = vsel %vm435_vm2, %v3297_v32, 0.0  ;;  %7480 = vmatmul.mubr.msk.f32.vlgmr.msra.gmra.mrb[68].mxu0 %vm435_vm2, %v3297_v32 }
 0x458   :  { %v7785_v10 = vpop.eup %7784  ;;  %3371 = vst.msk [vmem:[#allocation14 + $0x28] sm:$0xff] %vm435_vm2, %v3363_v24  ;;  %v3335_v38 = vadd.f32 %v3334_v3, %v9132_v19  ;;  %v3355_v49 = vsel %vm435_vm2, %v3300_v33, 0.0  ;;  %7488 = vmatpush3.msra.mxu0 %v5663_v60  ;;  %7495 = vmatmul.mubr.msk.f32.vlgmr.msra.gmra.mrb[70].mxu1 %vm435_vm2, %v3300_v33 }
 0x459   :  { %v3356_v14 = vadd.f32 %v3355_v49, %v9154_v29  ;;  %v3299_v62 = vmul.f32 %v7785_v10, %v8938_v46  ;;  %7489 = vmatprep.mubr.msk.f32.mxu0 %vm8027_vm1, %v9574_v35  ;;  %7593 = vmatprep.subr.bf16.mxu0 %v7592_v2 }
 0x45a   :  { %v3362_v6 = vmul.f32 0.25, %v3335_v38 }
 0x45b   :  { %v3365_v20 = vmul.f32 0.25, %v3356_v14  ;;  %v3348_v37 = vsel %vm435_vm2, %v3299_v62, 0.0  ;;  %7490 = vmatmul.mubr.msk.f32.vlgmr.msra.gmra.mrb[70].mxu0 %vm435_vm2, %v3299_v62 }
 0x45c   :  { %3370 = vst.msk [vmem:[#allocation14 + $0x20] sm:$0xff] %vm435_vm2, %v3362_v6  ;;  %v3349_v19 = vadd.f32 %v3348_v37, %v9160_v31  ;;  %7595 = vmatpush3.bf16.msra.mxu0 %v7592_v2 }
 0x45d   :  { %3373 = vst.msk [vmem:[#allocation14 + $0x38] sm:$0xff] %vm435_vm2, %v3365_v20  ;;  %7597 = vmatprep.subr.bf16.mxu0 %v7596_v36 }
 0x45e   :  { %v3364_v54 = vmul.f32 0.25, %v3349_v19 }
 0x460   :  { %3372 = vst.msk [vmem:[#allocation14 + $0x30] sm:$0xff] %vm435_vm2, %v3364_v54  ;;  %7599 = vmatpush3.bf16.msra.mxu0 %v7596_v36 }
 0x488   :  { %v9235_v29 = vpop.f32.mrb[40].mxu1 }
 0x489   :  { %v7346_v46 = vpop.f32.mrb[41].mxu1 }
 0x491   :  { %v9237_v26 = vpop.f32.mrb[40].mxu0 }
 0x492   :  { %v7341_v43 = vpop.f32.mrb[41].mxu0 }
 0x494   :  { %v9239_v50 = vpop.f32.mrb[42].mxu1 }
 0x495   :  { %v7356_v17 = vpop.f32.mrb[43].mxu1 }
 0x498   :  { %v9241_v1 = vpop.f32.mrb[42].mxu0 }
 0x499   :  { %v7351_v52 = vpop.f32.mrb[43].mxu0 }
 0x49c   :  { %v9243_v48 = vpop.f32.mrb[44].mxu1 }
 0x49d   :  { %v7366_v31 = vpop.f32.mrb[45].mxu1 }
 0x4a0   :  { %v9245_v5 = vpop.f32.mrb[44].mxu0 }
 0x4a1   :  { %v7361_v30 = vpop.f32.mrb[45].mxu0 }
 0x4a4   :  { %v9247_v13 = vpop.f32.mrb[46].mxu1 }
 0x4a5   :  { %v7376_v28 = vpop.f32.mrb[47].mxu1 }
 0x4a8   :  { %v9249_v40 = vpop.f32.mrb[46].mxu0 }
 0x4a9   :  { %v7371_v34 = vpop.f32.mrb[47].mxu0 }
 0x4ac   :  { %v4138_v12 = vpop.f32.mrb[48].mxu1 }
 0x4ad   :  { %v7386_v21 = vpop.f32.mrb[49].mxu1  ;;  %5824 = vrot.lane.b32.xlu1 %v4138_v12, %s8021_s18 }
 0x4b1   :  { %v4062_v41 = vpop.f32.mrb[48].mxu0 }
 0x4b2   :  { %5822 = vrot.lane.b32.xlu0 %v4062_v41, %s8021_s18  ;;  %v7381_v51 = vpop.f32.mrb[49].mxu0 }
 0x4b9   :  { %v4290_v53 = vpop.f32.mrb[50].mxu1 }
 0x4ba   :  { %v4214_v61 = vpop.f32.mrb[50].mxu0  ;;  %v7396_v18 = vpop.f32.mrb[51].mxu1  ;;  %5828 = vrot.lane.b32.xlu1 %v4290_v53, %s8021_s18 }
 0x4bb   :  { %5826 = vrot.lane.b32.xlu0 %v4214_v61, %s8021_s18  ;;  %v7391_v45 = vpop.f32.mrb[51].mxu0 }
 0x4c9   :  { %v4442_v56 = vpop.f32.mrb[52].mxu1 }
 0x4ca   :  { %v4366_v59 = vpop.f32.mrb[52].mxu0  ;;  %v7406_v58 = vpop.f32.mrb[53].mxu1  ;;  %5832 = vrot.lane.b32.xlu1 %v4442_v56, %s8021_s18 }
 0x4cb   :  { %5830 = vrot.lane.b32.xlu0 %v4366_v59, %s8021_s18  ;;  %v7401_v0 = vpop.f32.mrb[53].mxu0 }
 0x4d5   :  { %v4594_v22 = vpop.f32.mrb[54].mxu1 }
 0x4d6   :  { %v4518_v7 = vpop.f32.mrb[54].mxu0  ;;  %v7416_v42 = vpop.f32.mrb[55].mxu1 }
 0x4d7   :  { %v7411_v4 = vpop.f32.mrb[55].mxu0 }
 0x4d9   :  { %v4746_v39 = vpop.f32.mrb[56].mxu1 }
 0x4da   :  { %v4670_v16 = vpop.f32.mrb[56].mxu0  ;;  %v7426_v47 = vpop.f32.mrb[57].mxu1  ;;  %5856 = vrot.lane.b32.xlu1 %v4746_v39, %s8036_s12 }
 0x4db   :  { %5854 = vrot.lane.b32.xlu0 %v4670_v16, %s8036_s12  ;;  %v7421_v63 = vpop.f32.mrb[57].mxu0 }
 0x4dd   :  { %v4898_v57 = vpop.f32.mrb[58].mxu1 }
 0x4de   :  { %v4822_v11 = vpop.f32.mrb[58].mxu0  ;;  %v7436_v15 = vpop.f32.mrb[59].mxu1  ;;  %5860 = vrot.lane.b32.xlu1 %v4898_v57, %s8036_s12 }
 0x4df   :  { %5858 = vrot.lane.b32.xlu0 %v4822_v11, %s8036_s12  ;;  %v7431_v27 = vpop.f32.mrb[59].mxu0 }
 0x4e1   :  { %v5050_v55 = vpop.f32.mrb[60].mxu1 }
 0x4e2   :  { %v4974_v23 = vpop.f32.mrb[60].mxu0  ;;  %v7446_v32 = vpop.f32.mrb[61].mxu1 }
 0x4e3   :  { %v7441_v24 = vpop.f32.mrb[61].mxu0 }
 0x4e5   :  { %v5202_v33 = vpop.f32.mrb[62].mxu1 }
 0x4e6   :  { %v5126_v3 = vpop.f32.mrb[62].mxu0  ;;  %v7456_v60 = vpop.f32.mrb[63].mxu1 }
 0x4e7   :  { %v7451_v10 = vpop.f32.mrb[63].mxu0 }
 0x4e9   :  { %v5354_v38 = vpop.f32.mrb[64].mxu1 }
 0x4ea   :  { %v5278_v49 = vpop.f32.mrb[64].mxu0  ;;  %v7466_v14 = vpop.f32.mrb[65].mxu1  ;;  %5888 = vrot.lane.b32.xlu1 %v5354_v38, %s8037_s22 }
 0x4eb   :  { %5886 = vrot.lane.b32.xlu0 %v5278_v49, %s8037_s22  ;;  %v7461_v62 = vpop.f32.mrb[65].mxu0 }
 0x4ee   :  { %5864 = vrot.lane.b32.xlu1 %v5050_v55, %s8036_s12 }
 0x4ef   :  { %5862 = vrot.lane.b32.xlu0 %v4974_v23, %s8036_s12 }
 0x4f1   :  { %v5506_v6 = vpop.f32.mrb[66].mxu1 }
 0x4f2   :  { %5892 = vrot.lane.b32.xlu1 %v5506_v6, %s8037_s22  ;;  %v7476_v20 = vpop.f32.mrb[67].mxu1 }
 0x4f5   :  { %v5430_v37 = vpop.f32.mrb[66].mxu0 }
 0x4f6   :  { %5836 = vrot.lane.b32.xlu1 %v4594_v22, %s8021_s18  ;;  %5890 = vrot.lane.b32.xlu0 %v5430_v37, %s8037_s22  ;;  %v7471_v19 = vpop.f32.mrb[67].mxu0  ;;  %v7822_v37 = vld [vmem:[#allocation5 + $0x8] sm:$0xff] }
 0x4fa   :  { %5834 = vrot.lane.b32.xlu0 %v4518_v7, %s8021_s18 }
 0x51f   :  { %v5825_v34 = vpop.permute.xlu1 %5824 }
 0x520   :  { %v5911_v0 = vsel %vm435_vm2, %v9235_v29, %v5825_v34  ;;  %v7824_v34 = vld [vmem:[#allocation5 + $0x10] sm:$0xff] }
 0x524   :  { %v5823_v12 = vpop.permute.xlu0 %5822 }
 0x525   :  { %v5910_v8 = vsel %vm435_vm2, %v9237_v26, %v5823_v12 }
 0x526   :  { %v5658_v54 = vpop.f32.mrb[68].mxu1 }
 0x527   :  { %5896 = vrot.lane.b32.xlu1 %v5658_v54, %s8037_s22  ;;  %v7486_v46 = vpop.f32.mrb[69].mxu1  ;;  %v7823_v54 = vld [vmem:[#allocation5] sm:$0xff] }
 0x52a   :  { %v5582_v43 = vpop.f32.mrb[68].mxu0 }
 0x52b   :  { %v5810_v17 = vpop.f32.mrb[70].mxu1  ;;  %5868 = vrot.lane.b32.xlu1 %v5202_v33, %s8036_s12  ;;  %5894 = vrot.lane.b32.xlu0 %v5582_v43, %s8037_s22  ;;  %v7481_v52 = vpop.f32.mrb[69].mxu0 }
 0x52c   :  { %v7496_v31 = vpop.f32.mrb[71].mxu1  ;;  %v5829_v21 = vpop.permute.xlu1 %5828 }
 0x52d   :  { %v5827_v41 = vpop.permute.xlu0 %5826  ;;  %v5913_v7 = vsel %vm435_vm2, %v9239_v50, %v5829_v21  ;;  %v7825_v21 = vld [vmem:[#allocation5 + $0x18] sm:$0xff] }
 0x52e   :  { %v5734_v30 = vpop.f32.mrb[70].mxu0  ;;  %v5912_v29 = vsel %vm435_vm2, %v9241_v1, %v5827_v41 }
 0x52f   :  { %5900 = vrot.lane.b32.xlu1 %v5810_v17, %s8037_s22  ;;  %5866 = vrot.lane.b32.xlu0 %v5126_v3, %s8036_s12  ;;  %v7491_v28 = vpop.f32.mrb[71].mxu0 }
 0x533   :  { %5898 = vrot.lane.b32.xlu0 %v5734_v30, %s8037_s22 }
 0x53c   :  { %v5833_v51 = vpop.permute.xlu1 %5832 }
 0x53d   :  { %v5915_v53 = vsel %vm435_vm2, %v9243_v48, %v5833_v51  ;;  %v5831_v61 = vpop.permute.xlu0 %5830 }
 0x53e   :  { %v5914_v18 = vsel %vm435_vm2, %v9245_v5, %v5831_v61 }
 0x54c   :  { %v5857_v45 = vpop.permute.xlu1 %5856 }
 0x54d   :  { %v5855_v56 = vpop.permute.xlu0 %5854  ;;  %v5920_v25 = vsel %vm5918_vm3, %v5911_v0, %v5857_v45  ;;  %v7827_v0 = vld [vmem:[#allocation5 + $0x20] sm:$0xff] }
 0x54e   :  { %v5919_v48 = vsel %vm5918_vm3, %v5910_v8, %v5855_v56 }
 0x550   :  { %v5861_v59 = vpop.permute.xlu1 %5860 }
 0x551   :  { %v5859_v58 = vpop.permute.xlu0 %5858  ;;  %v5922_v39 = vsel %vm5918_vm3, %v5913_v7, %v5861_v59  ;;  %v7826_v59 = vld [vmem:[#allocation5 + $0x28] sm:$0xff] }
 0x552   :  { %v5921_v42 = vsel %vm5918_vm3, %v5912_v29, %v5859_v58  ;;  %v7829_v29 = vld [vmem:[#allocation5 + $0x30] sm:$0xff] }
 0x55c   :  { %v5889_v9 = vpop.permute.xlu1 %5888 }
 0x55d   :  { %v5929_v2 = vsel %vm5927_vm4, %v5920_v25, %v5889_v9  ;;  %v5887_v5 = vpop.permute.xlu0 %5886 }
 0x55e   :  { %v5928_v44 = vsel %vm5927_vm4, %v5919_v48, %v5887_v5 }
 0x55f   :  { %7505 = vmatprep.mubr.msk.f32.mxu0 %vm142_vm0, %v5928_v44 }
 0x560   :  { %7506 = vmatmul.mubr.msk.f32.vlgmr.msra.gmra.mrb[72].mxu0 %vm142_vm0, %v5929_v2  ;;  %v5865_v36 = vpop.permute.xlu1 %5864 }
 0x561   :  { %v5863_v22 = vpop.permute.xlu0 %5862  ;;  %v5924_v50 = vsel %vm5918_vm3, %v5915_v53, %v5865_v36  ;;  %v7828_v36 = vld [vmem:[#allocation5 + $0x38] sm:$0xff] }
 0x562   :  { %v5923_v11 = vsel %vm5918_vm3, %v5914_v18, %v5863_v22 }
 0x564   :  { %v5893_v26 = vpop.permute.xlu1 %5892 }
 0x565   :  { %v5931_v47 = vsel %vm5927_vm4, %v5922_v39, %v5893_v26 }
 0x568   :  { %v5891_v4 = vpop.permute.xlu0 %5890  ;;  %v5837_v63 = vpop.permute.xlu1 %5836 }
 0x569   :  { %v5930_v16 = vsel %vm5927_vm4, %v5921_v42, %v5891_v4  ;;  %v5917_v3 = vsel %vm435_vm2, %v9247_v13, %v5837_v63 }
 0x56a   :  { %7508 = vmatprep.mubr.msk.f32.mxu0 %vm142_vm0, %v5930_v16 }
 0x56b   :  { %7509 = vmatmul.mubr.msk.f32.gmra.mrb[74].mxu0 %vm142_vm0, %v5931_v47 }
 0x56c   :  { %v5835_v57 = vpop.permute.xlu0 %5834 }
 0x56d   :  { %v5916_v24 = vsel %vm435_vm2, %v9249_v40, %v5835_v57  ;;  %v6899_v40 = vld [vmem:[%s9558_s6 + $0x3] ss:$0 sm:$0xff] }
 0x599   :  { %v5897_v1 = vpop.permute.xlu1 %5896 }
 0x59a   :  { %v5933_v23 = vsel %vm5927_vm4, %v5924_v50, %v5897_v1 }
 0x59d   :  { %v5895_v15 = vpop.permute.xlu0 %5894  ;;  %v5869_v27 = vpop.permute.xlu1 %5868 }
 0x59e   :  { %v5932_v55 = vsel %vm5927_vm4, %v5923_v11, %v5895_v15  ;;  %v5926_v38 = vsel %vm5918_vm3, %v5917_v3, %v5869_v27 }
 0x59f   :  { %7511 = vmatprep.mubr.msk.f32.mxu0 %vm142_vm0, %v5932_v55 }
 0x5a0   :  { %7512 = vmatmul.mubr.msk.f32.gmra.mrb[76].mxu0 %vm142_vm0, %v5933_v23 }
 0x5a1   :  { %v5867_v32 = vpop.permute.xlu0 %5866  ;;  %v5901_v33 = vpop.permute.xlu1 %5900 }
 0x5a2   :  { %v5925_v60 = vsel %vm5918_vm3, %v5916_v24, %v5867_v32  ;;  %v5935_v14 = vsel %vm5927_vm4, %v5926_v38, %v5901_v33 }
 0x5a5   :  { %v5899_v10 = vpop.permute.xlu0 %5898 }
 0x5a6   :  { %v5934_v49 = vsel %vm5927_vm4, %v5925_v60, %v5899_v10 }
 0x5a7   :  { %7514 = vmatprep.mubr.msk.f32.mxu0 %vm142_vm0, %v5934_v49  ;;  %v6215_v49 = vld [vmem:[#allocation10 + $0x40] sm:$0xff] }
 0x5a8   :  { %7515 = vmatmul.mubr.msk.f32.gmra.mrb[78].mxu0 %vm142_vm0, %v5935_v14  ;;  %v6216_v14 = vld [vmem:[#allocation10 + $0x48] sm:$0xff] }
 0x633   :  { %v7507_v62 = vpop.f32.mrb[72].mxu0 }
 0x634   :  { %v6042_v6 = vadd.f32 %v7507_v62, %v6899_v40  ;;  %v6036_v13 = vpop.f32.mrb[73].mxu0  ;;  %v6217_v62 = vld [vmem:[#allocation10 + $0x50] sm:$0xff] }
 0x635   :  { %v6037_v20 = vadd.f32 %v6899_v40, %v6036_v13 }
 0x636   :  { %v6076_v19 = vadd.f32 %v7822_v37, %v6042_v6  ;;  %v6218_v6 = vld [vmem:[#allocation10 + $0x58] sm:$0xff] }
 0x637   :  { %v6075_v46 = vadd.f32 %v7823_v54, %v6037_v20  ;;  %v7604_v13 = vpack.c.bf16 %v6218_v6, %v6217_v62 }
 0x638   :  { %v6088_v43 = vsel %vm142_vm0, %v6076_v19, 0.0 }
 0x639   :  { %6089 = vadd.xlane.f32.xlu1 %v6088_v43  ;;  %v6085_v17 = vsel %vm142_vm0, %v6075_v46, 0.0 }
 0x63a   :  { %6086 = vadd.xlane.f32.xlu0 %v6085_v17 }
 0x63e   :  { %v7510_v52 = vpop.f32.mrb[74].mxu0 }
 0x63f   :  { %v6046_v31 = vpop.f32.mrb[75].mxu0  ;;  %v6052_v30 = vadd.f32 %v7510_v52, %v6899_v40 }
 0x640   :  { %v6047_v28 = vadd.f32 %v6899_v40, %v6046_v31 }
 0x641   :  { %v6078_v41 = vadd.f32 %v7825_v21, %v6052_v30 }
 0x642   :  { %v6077_v12 = vadd.f32 %v7824_v34, %v6047_v28 }
 0x643   :  { %v6094_v53 = vsel %vm142_vm0, %v6078_v41, 0.0 }
 0x644   :  { %v6091_v51 = vsel %vm142_vm0, %v6077_v12, 0.0 }
 0x645   :  { %6092 = vadd.xlane.f32.xlu0 %v6091_v51 }
 0x649   :  { %6095 = vadd.xlane.f32.xlu0 %v6094_v53 }
 0x673   :  { %v7513_v61 = vpop.f32.mrb[76].mxu0 }
 0x674   :  { %v6062_v18 = vadd.f32 %v7513_v61, %v6899_v40  ;;  %v6056_v45 = vpop.f32.mrb[77].mxu0 }
 0x675   :  { %v6057_v56 = vadd.f32 %v6899_v40, %v6056_v45 }
 0x676   :  { %v6080_v58 = vadd.f32 %v7826_v59, %v6062_v18  ;;  %v6363_v59 = vld [vmem:[#allocation10 + $0x68] sm:$0xff] }
 0x677   :  { %v6079_v8 = vadd.f32 %v7827_v0, %v6057_v56  ;;  %v6362_v56 = vld [vmem:[#allocation10 + $0x60] sm:$0xff] }
 0x678   :  { %v6100_v25 = vsel %vm142_vm0, %v6080_v58, 0.0 }
 0x679   :  { %6101 = vadd.xlane.f32.xlu0 %v6100_v25  ;;  %v6097_v9 = vsel %vm142_vm0, %v6079_v8, 0.0 }
 0x67a   :  { %6098 = vadd.xlane.f32.xlu1 %v6097_v9 }
 0x67b   :  { %v7516_v48 = vpop.f32.mrb[78].mxu0 }
 0x67c   :  { %v6072_v2 = vadd.f32 %v7516_v48, %v6899_v40  ;;  %v6066_v5 = vpop.f32.mrb[79].mxu0 }
 0x67d   :  { %v6067_v44 = vadd.f32 %v6899_v40, %v6066_v5  ;;  %v7600_v40 = vpack.c.bf16 %v6216_v14, %v6215_v49 }
 0x67e   :  { %v6082_v22 = vadd.f32 %v7828_v36, %v6072_v2 }
 0x67f   :  { %v6081_v26 = vadd.f32 %v7829_v29, %v6067_v44  ;;  %7601 = vmatprep.subr.bf16.mxu1 %v7600_v40  ;;  %v6908_v29 = vld [vmem:[%s9558_s6 + $0x4] ss:$0 sm:$0xff] }
 0x680   :  { %v6106_v7 = vsel %vm142_vm0, %v6082_v22, 0.0  ;;  %7603 = vmatpush3.bf16.msra.mxu1 %v7600_v40 }
 0x681   :  { %6107 = vadd.xlane.f32.xlu0 %v6106_v7  ;;  %v6103_v42 = vsel %vm142_vm0, %v6081_v26, 0.0  ;;  %7605 = vmatprep.subr.bf16.mxu1 %v7604_v13 }
 0x682   :  { %6104 = vadd.xlane.f32.xlu1 %v6103_v42 }
 0x684   :  { %7607 = vmatpush3.bf16.msra.mxu1 %v7604_v13 }
 0x6c6   :  { %v6090_v4 = vpop.xlane.xlu1 %6089 }
 0x6c7   :  { %v6111_v39 = vmul.f32 0.03125, %v6090_v4  ;;  %v6087_v16 = vpop.xlane.xlu0 %6086 }
 0x6c8   :  { %v6110_v47 = vmul.f32 0.03125, %v6087_v16  ;;  %v6909_v16 = vld [vmem:[%s9558_s6 + $0x5] ss:$0 sm:$0xff] }
 0x6c9   :  { %v9318_v63 = vsub.f32 %v6076_v19, %v6111_v39 }
 0x6ca   :  { %v9320_v57 = vsub.f32 %v6075_v46, %v6110_v47 }
 0x6cb   :  { %v6127_v1 = vmul.f32 %v9318_v63, %v9318_v63 }
 0x6cc   :  { %v6126_v11 = vmul.f32 %v9320_v57, %v9320_v57 }
 0x6cd   :  { %v6137_v15 = vsel %vm142_vm0, %v6127_v1, 0.0 }
 0x6ce   :  { %6138 = vadd.xlane.f32.xlu0 %v6137_v15  ;;  %v6134_v50 = vsel %vm142_vm0, %v6126_v11, 0.0 }
 0x6cf   :  { %6135 = vadd.xlane.f32.xlu1 %v6134_v50 }
 0x6d2   :  { %v6093_v27 = vpop.xlane.xlu0 %6092 }
 0x6d3   :  { %v6112_v55 = vmul.f32 0.03125, %v6093_v27 }
 0x6d5   :  { %v9328_v23 = vsub.f32 %v6077_v12, %v6112_v55 }
 0x6d6   :  { %v6096_v32 = vpop.xlane.xlu0 %6095 }
 0x6d7   :  { %v6113_v24 = vmul.f32 0.03125, %v6096_v32  ;;  %v6128_v33 = vmul.f32 %v9328_v23, %v9328_v23 }
 0x6d9   :  { %v9332_v3 = vsub.f32 %v6078_v41, %v6113_v24  ;;  %v6140_v60 = vsel %vm142_vm0, %v6128_v33, 0.0 }
 0x6da   :  { %6141 = vadd.xlane.f32.xlu1 %v6140_v60 }
 0x6db   :  { %v6129_v10 = vmul.f32 %v9332_v3, %v9332_v3 }
 0x6dd   :  { %v6143_v38 = vsel %vm142_vm0, %v6129_v10, 0.0 }
 0x6de   :  { %6144 = vadd.xlane.f32.xlu0 %v6143_v38 }
 0x706   :  { %v6102_v20 = vpop.xlane.xlu0 %6101 }
 0x707   :  { %v6115_v37 = vmul.f32 0.03125, %v6102_v20  ;;  %v6099_v19 = vpop.xlane.xlu1 %6098 }
 0x708   :  { %v6114_v54 = vmul.f32 0.03125, %v6099_v19 }
 0x709   :  { %v9338_v46 = vsub.f32 %v6080_v58, %v6115_v37  ;;  %v7608_v58 = vpack.c.bf16 %v6363_v59, %v6362_v56  ;;  %v6364_v56 = vld [vmem:[#allocation10 + $0x70] sm:$0xff]  ;;  %v6365_v59 = vld [vmem:[#allocation10 + $0x78] sm:$0xff] }
 0x70a   :  { %v9340_v43 = vsub.f32 %v6079_v8, %v6114_v54 }
 0x70b   :  { %v6131_v17 = vmul.f32 %v9338_v46, %v9338_v46  ;;  %7609 = vmatprep.subr.bf16.mxu0 %v7608_v58 }
 0x70c   :  { %v6130_v52 = vmul.f32 %v9340_v43, %v9340_v43  ;;  %7611 = vmatpush3.bf16.msra.mxu0 %v7608_v58 }
 0x70d   :  { %v6149_v31 = vsel %vm142_vm0, %v6131_v17, 0.0 }
 0x70e   :  { %6150 = vadd.xlane.f32.xlu0 %v6149_v31  ;;  %v6108_v30 = vpop.xlane.xlu0 %6107  ;;  %v6146_v28 = vsel %vm142_vm0, %v6130_v52, 0.0 }
 0x70f   :  { %v6117_v34 = vmul.f32 0.03125, %v6108_v30  ;;  %v6105_v12 = vpop.xlane.xlu1 %6104  ;;  %6147 = vadd.xlane.f32.xlu1 %v6146_v28 }
 0x710   :  { %v6116_v21 = vmul.f32 0.03125, %v6105_v12 }
 0x711   :  { %v9348_v41 = vsub.f32 %v6082_v22, %v6117_v34 }
 0x712   :  { %v9350_v51 = vsub.f32 %v6081_v26, %v6116_v21 }
 0x713   :  { %v6133_v53 = vmul.f32 %v9348_v41, %v9348_v41 }
 0x714   :  { %v6132_v61 = vmul.f32 %v9350_v51, %v9350_v51 }
 0x715   :  { %v6155_v18 = vsel %vm142_vm0, %v6133_v53, 0.0 }
 0x716   :  { %6156 = vadd.xlane.f32.xlu0 %v6155_v18  ;;  %v6152_v45 = vsel %vm142_vm0, %v6132_v61, 0.0 }
 0x717   :  { %6153 = vadd.xlane.f32.xlu1 %v6152_v45 }
 0x75b   :  { %v6139_v0 = vpop.xlane.xlu0 %6138 }
 0x75c   :  { %v6159_v8 = vmul.f32 0.03125, %v6139_v0  ;;  %v6136_v25 = vpop.xlane.xlu1 %6135 }
 0x75d   :  { %v6158_v9 = vmul.f32 0.03125, %v6136_v25 }
 0x75e   :  { %v6167_v48 = vadd.f32 1e-05, %v6159_v8 }
 0x75f   :  { %v6166_v2 = vadd.f32 1e-05, %v6158_v9 }
 0x760   :  { %7786 = vrsqrt.f32 %v6167_v48 }
 0x761   :  { %7788 = vrsqrt.f32 %v6166_v2 }
 0x767   :  { %v6142_v5 = vpop.xlane.xlu1 %6141 }
 0x768   :  { %v6160_v44 = vmul.f32 0.03125, %v6142_v5 }
 0x76a   :  { %v7787_v36 = vpop.eup %7786  ;;  %v6168_v22 = vadd.f32 1e-05, %v6160_v44 }
 0x76b   :  { %v7789_v26 = vpop.eup %7788  ;;  %v6183_v7 = vmul.f32 %v7787_v36, %v9318_v63  ;;  %v6145_v42 = vpop.xlane.xlu0 %6144 }
 0x76c   :  { %7790 = vrsqrt.f32 %v6168_v22  ;;  %v6161_v4 = vmul.f32 0.03125, %v6145_v42  ;;  %v6182_v39 = vmul.f32 %v7789_v26, %v9320_v57 }
 0x76d   :  { %v6195_v47 = vmul.f32 %v6908_v29, %v6183_v7 }
 0x76e   :  { %v6169_v1 = vadd.f32 1e-05, %v6161_v4  ;;  %v6194_v11 = vmul.f32 %v6908_v29, %v6182_v39 }
 0x76f   :  { %v9368_v50 = vadd.f32 %v6909_v16, %v6195_v47 }
 0x770   :  { %7792 = vrsqrt.f32 %v6169_v1  ;;  %v9366_v15 = vadd.f32 %v6909_v16, %v6194_v11 }
 0x772   :  { %7525 = vmatprep.mubr.msk.f32.mxu1 %vm142_vm0, %v9366_v15 }
 0x773   :  { %7526 = vmatmul.mubr.msk.f32.vlgmr.msra.gmra.mrb[72].mxu1 %vm142_vm0, %v9368_v50 }
 0x776   :  { %v7791_v63 = vpop.eup %7790 }
 0x777   :  { %v6184_v57 = vmul.f32 %v7791_v63, %v9328_v23 }
 0x779   :  { %v6196_v27 = vmul.f32 %v6908_v29, %v6184_v57 }
 0x77a   :  { %v7793_v55 = vpop.eup %7792 }
 0x77b   :  { %v9375_v32 = vadd.f32 %v6909_v16, %v6196_v27  ;;  %v6185_v24 = vmul.f32 %v7793_v55, %v9332_v3  ;;  %v6919_v27 = vld [vmem:[%s9558_s6 + $0x7] ss:$0 sm:$0xff] }
 0x77d   :  { %7528 = vmatprep.mubr.msk.f32.mxu1 %vm142_vm0, %v9375_v32  ;;  %v6197_v33 = vmul.f32 %v6908_v29, %v6185_v24 }
 0x77f   :  { %v9380_v60 = vadd.f32 %v6909_v16, %v6197_v33 }
 0x781   :  { %7529 = vmatmul.mubr.msk.f32.gmra.mrb[74].mxu1 %vm142_vm0, %v9380_v60 }
 0x79b   :  { %v6151_v10 = vpop.xlane.xlu0 %6150 }
 0x79c   :  { %v6163_v38 = vmul.f32 0.03125, %v6151_v10  ;;  %v6148_v49 = vpop.xlane.xlu1 %6147 }
 0x79d   :  { %v6162_v14 = vmul.f32 0.03125, %v6148_v49 }
 0x79e   :  { %v6171_v23 = vadd.f32 1e-05, %v6163_v38 }
 0x79f   :  { %v6170_v40 = vadd.f32 1e-05, %v6162_v14 }
 0x7a0   :  { %7794 = vrsqrt.f32 %v6171_v23 }
 0x7a1   :  { %7796 = vrsqrt.f32 %v6170_v40 }
 0x7a3   :  { %v6157_v62 = vpop.xlane.xlu0 %6156 }
 0x7a4   :  { %v6165_v6 = vmul.f32 0.03125, %v6157_v62  ;;  %v6154_v3 = vpop.xlane.xlu1 %6153 }
 0x7a5   :  { %v6164_v13 = vmul.f32 0.03125, %v6154_v3 }
 0x7a6   :  { %v6173_v20 = vadd.f32 1e-05, %v6165_v6 }
 0x7a7   :  { %v6172_v37 = vadd.f32 1e-05, %v6164_v13 }
 0x7a8   :  { %7798 = vrsqrt.f32 %v6173_v20 }
 0x7a9   :  { %7800 = vrsqrt.f32 %v6172_v37 }
 0x7aa   :  { %v7795_v19 = vpop.eup %7794 }
 0x7ab   :  { %v7797_v54 = vpop.eup %7796  ;;  %v6187_v17 = vmul.f32 %v7795_v19, %v9338_v46 }
 0x7ac   :  { %v6186_v52 = vmul.f32 %v7797_v54, %v9340_v43 }
 0x7ad   :  { %v6199_v31 = vmul.f32 %v6908_v29, %v6187_v17 }
 0x7ae   :  { %v6198_v30 = vmul.f32 %v6908_v29, %v6186_v52 }
 0x7af   :  { %v9388_v34 = vadd.f32 %v6909_v16, %v6199_v31 }
 0x7b0   :  { %v9386_v28 = vadd.f32 %v6909_v16, %v6198_v30 }
 0x7b2   :  { %v7799_v12 = vpop.eup %7798  ;;  %7531 = vmatprep.mubr.msk.f32.mxu1 %vm142_vm0, %v9386_v28 }
 0x7b3   :  { %v7801_v21 = vpop.eup %7800  ;;  %7532 = vmatmul.mubr.msk.f32.gmra.mrb[76].mxu1 %vm142_vm0, %v9388_v34  ;;  %v6189_v53 = vmul.f32 %v7799_v12, %v9348_v41  ;;  %v7612_v41 = vpack.c.bf16 %v6365_v59, %v6364_v56 }
 0x7b4   :  { %v6188_v46 = vmul.f32 %v7801_v21, %v9350_v51  ;;  %v6910_v51 = vld [vmem:[%s9558_s6 + $0x6] ss:$0 sm:$0xff] }
 0x7b5   :  { %v6201_v61 = vmul.f32 %v6908_v29, %v6189_v53  ;;  %7613 = vmatprep.subr.bf16.mxu0 %v7612_v41 }
 0x7b6   :  { %v6200_v43 = vmul.f32 %v6908_v29, %v6188_v46  ;;  %7615 = vmatpush3.bf16.msra.mxu0 %v7612_v41 }
 0x7b7   :  { %v9398_v45 = vadd.f32 %v6909_v16, %v6201_v61 }
 0x7b8   :  { %v9396_v18 = vadd.f32 %v6909_v16, %v6200_v43 }
 0x7ba   :  { %7534 = vmatprep.mubr.msk.f32.mxu1 %vm142_vm0, %v9396_v18 }
 0x7bb   :  { %7535 = vmatmul.mubr.msk.f32.gmra.mrb[78].mxu1 %vm142_vm0, %v9398_v45 }
 0x7bc   :  { %7573 = vmatprep.mubr.msk.f32.mxu1 %vm8027_vm1, %v9574_v35 }
 0x846   :  { %v7527_v58 = vpop.f32.mrb[72].mxu1 }
 0x847   :  { %v6320_v0 = vadd.f32 %v7527_v58, %v6910_v51  ;;  %v6314_v8 = vpop.f32.mrb[73].mxu1 }
 0x848   :  { %v6315_v25 = vadd.f32 %v6910_v51, %v6314_v8 }
 0x849   :  { %v6354_v48 = vmax.f32 %v6320_v0, 0.0 }
 0x84a   :  { %v6353_v9 = vmax.f32 %v6315_v25, 0.0 }
 0x84c   :  { %7545 = vmatprep.mubr.msk.f32.mxu0 %vm142_vm0, %v6353_v9 }
 0x84d   :  { %7546 = vmatmul.mubr.msk.f32.vlgmr.msra.gmra.mrb[80].mxu0 %vm142_vm0, %v6354_v48 }
 0x854   :  { %v7530_v35 = vpop.f32.mrb[74].mxu1 }
 0x855   :  { %v6330_v2 = vadd.f32 %v7530_v35, %v6910_v51  ;;  %v6324_v5 = vpop.f32.mrb[75].mxu1 }
 0x856   :  { %v6325_v44 = vadd.f32 %v6910_v51, %v6324_v5 }
 0x857   :  { %v6356_v22 = vmax.f32 %v6330_v2, 0.0 }
 0x858   :  { %v6355_v36 = vmax.f32 %v6325_v44, 0.0 }
 0x85a   :  { %7548 = vmatprep.mubr.msk.f32.mxu0 %vm142_vm0, %v6355_v36 }
 0x85b   :  { %7549 = vmatmul.mubr.msk.f32.gmra.mrb[82].mxu0 %vm142_vm0, %v6356_v22 }
 0x886   :  { %v7533_v29 = vpop.f32.mrb[76].mxu1 }
 0x887   :  { %v6340_v26 = vadd.f32 %v7533_v29, %v6910_v51  ;;  %v6334_v7 = vpop.f32.mrb[77].mxu1 }
 0x888   :  { %v6335_v42 = vadd.f32 %v6910_v51, %v6334_v7 }
 0x889   :  { %v6358_v39 = vmax.f32 %v6340_v26, 0.0  ;;  %v8038_v26 = vmov 0.0|0.0  }
 0x88a   :  { %v6357_v4 = vmax.f32 %v6335_v42, 0.0  ;;  %7616 = vmatprep.subr.bf16.mxu1 %v8038_v26 }
 0x88c   :  { %7551 = vmatprep.mubr.msk.f32.mxu0 %vm142_vm0, %v6357_v4 }
 0x88d   :  { %7552 = vmatmul.mubr.msk.f32.gmra.mrb[84].mxu0 %vm142_vm0, %v6358_v39 }
 0x88e   :  { %v7536_v16 = vpop.f32.mrb[78].mxu1 }
 0x88f   :  { %v6350_v47 = vadd.f32 %v7536_v16, %v6910_v51  ;;  %v6344_v1 = vpop.f32.mrb[79].mxu1 }
 0x890   :  { %v6345_v11 = vadd.f32 %v6910_v51, %v6344_v1 }
 0x891   :  { %v6360_v57 = vmax.f32 %v6350_v47, 0.0 }
 0x892   :  { %v6359_v63 = vmax.f32 %v6345_v11, 0.0 }
 0x894   :  { %7554 = vmatprep.mubr.msk.f32.mxu0 %vm142_vm0, %v6359_v63 }
 0x895   :  { %7555 = vmatmul.mubr.msk.f32.gmra.mrb[86].mxu0 %vm142_vm0, %v6360_v57 }
 0x920   :  { %v7547_v55 = vpop.f32.mrb[80].mxu0 }
 0x921   :  { %v6467_v24 = vadd.f32 %v7547_v55, %v6919_v27  ;;  %v6461_v33 = vpop.f32.mrb[81].mxu0 }
 0x922   :  { %v6462_v10 = vadd.f32 %v6919_v27, %v6461_v33 }
 0x923   :  { %v6501_v38 = vadd.f32 %v6467_v24, %v9368_v50 }
 0x924   :  { %v6500_v49 = vadd.f32 %v6462_v10, %v9366_v15 }
 0x925   :  { %v6513_v14 = vsel %vm142_vm0, %v6501_v38, 0.0 }
 0x926   :  { %6514 = vadd.xlane.f32.xlu0 %v6513_v14  ;;  %v6510_v23 = vsel %vm142_vm0, %v6500_v49, 0.0 }
 0x927   :  { %6511 = vadd.xlane.f32.xlu1 %v6510_v23 }
 0x92e   :  { %v7550_v40 = vpop.f32.mrb[82].mxu0 }
 0x92f   :  { %v6477_v62 = vadd.f32 %v7550_v40, %v6919_v27  ;;  %v6471_v6 = vpop.f32.mrb[83].mxu0 }
 0x930   :  { %v6472_v3 = vadd.f32 %v6919_v27, %v6471_v6  ;;  %v8039_v6 = vmov 0  }
 0x931   :  { %v6503_v13 = vadd.f32 %v6477_v62, %v9380_v60  ;;  %v6639_v62 = vld [vmem:[%s9558_s6 + $0xb] sm:$0x1]  ;;  %7656 = vset.pattern.permute.xlu1 %v8039_v6  ;;  %7657 = vset.pattern.permute.xlu0 %v8039_v6 }
 0x932   :  { %v6502_v20 = vadd.f32 %v6472_v3, %v9375_v32 }
 0x933   :  { %v6519_v37 = vsel %vm142_vm0, %v6503_v13, 0.0 }
 0x934   :  { %6520 = vadd.xlane.f32.xlu0 %v6519_v37  ;;  %v6516_v50 = vsel %vm142_vm0, %v6502_v20, 0.0 }
 0x935   :  { %6517 = vadd.xlane.f32.xlu1 %v6516_v50 }
 0x960   :  { %v7553_v15 = vpop.f32.mrb[84].mxu0 }
 0x961   :  { %v6487_v19 = vadd.f32 %v7553_v15, %v6919_v27  ;;  %v6481_v54 = vpop.f32.mrb[85].mxu0 }
 0x962   :  { %v6482_v17 = vadd.f32 %v6919_v27, %v6481_v54 }
 0x963   :  { %v6505_v52 = vadd.f32 %v6487_v19, %v9388_v34 }
 0x964   :  { %v6504_v31 = vadd.f32 %v6482_v17, %v9386_v28  ;;  %v9483_v17 = vld [vmem:[%s9558_s6 + $0x8] ss:$0 sm:$0xff] }
 0x965   :  { %v6525_v30 = vsel %vm142_vm0, %v6505_v52, 0.0 }
 0x966   :  { %6526 = vadd.xlane.f32.xlu0 %v6525_v30  ;;  %v6522_v60 = vsel %vm142_vm0, %v6504_v31, 0.0 }
 0x967   :  { %6523 = vadd.xlane.f32.xlu1 %v6522_v60 }
 0x968   :  { %v7556_v32 = vpop.f32.mrb[86].mxu0 }
 0x969   :  { %v6497_v12 = vadd.f32 %v7556_v32, %v6919_v27  ;;  %v6491_v21 = vpop.f32.mrb[87].mxu0 }
 0x96a   :  { %v6492_v53 = vadd.f32 %v6919_v27, %v6491_v21 }
 0x96b   :  { %v6507_v46 = vadd.f32 %v6497_v12, %v9398_v45 }
 0x96c   :  { %v6506_v61 = vadd.f32 %v6492_v53, %v9396_v18  ;;  %v6929_v53 = vld [vmem:[%s9558_s6 + $0x9] ss:$0 sm:$0xff] }
 0x96d   :  { %v6531_v43 = vsel %vm142_vm0, %v6507_v46, 0.0 }
 0x96e   :  { %6532 = vadd.xlane.f32.xlu0 %v6531_v43  ;;  %v6528_v34 = vsel %vm142_vm0, %v6506_v61, 0.0 }
 0x96f   :  { %6529 = vadd.xlane.f32.xlu1 %v6528_v34 }
 0x9b3   :  { %v6515_v28 = vpop.xlane.xlu0 %6514 }
 0x9b4   :  { %v6535_v56 = vmul.f32 0.03125, %v6515_v28  ;;  %v6512_v59 = vpop.xlane.xlu1 %6511 }
 0x9b5   :  { %v6534_v41 = vmul.f32 0.03125, %v6512_v59 }
 0x9b6   :  { %v9436_v51 = vsub.f32 %v6501_v38, %v6535_v56 }
 0x9b7   :  { %v9438_v58 = vsub.f32 %v6500_v49, %v6534_v41 }
 0x9b8   :  { %v6551_v0 = vmul.f32 %v9436_v51, %v9436_v51 }
 0x9b9   :  { %v6550_v18 = vmul.f32 %v9438_v58, %v9438_v58 }
 0x9ba   :  { %v6561_v45 = vsel %vm142_vm0, %v6551_v0, 0.0 }
 0x9bb   :  { %6562 = vadd.xlane.f32.xlu0 %v6561_v45  ;;  %v6558_v8 = vsel %vm142_vm0, %v6550_v18, 0.0 }
 0x9bc   :  { %6559 = vadd.xlane.f32.xlu1 %v6558_v8 }
 0x9c1   :  { %v6521_v25 = vpop.xlane.xlu0 %6520 }
 0x9c2   :  { %v6537_v9 = vmul.f32 0.03125, %v6521_v25  ;;  %v6518_v48 = vpop.xlane.xlu1 %6517 }
 0x9c3   :  { %v6536_v35 = vmul.f32 0.03125, %v6518_v48 }
 0x9c4   :  { %v9446_v2 = vsub.f32 %v6503_v13, %v6537_v9 }
 0x9c5   :  { %v9448_v5 = vsub.f32 %v6502_v20, %v6536_v35 }
 0x9c6   :  { %v6553_v44 = vmul.f32 %v9446_v2, %v9446_v2 }
 0x9c7   :  { %v6552_v36 = vmul.f32 %v9448_v5, %v9448_v5 }
 0x9c8   :  { %v6567_v22 = vsel %vm142_vm0, %v6553_v44, 0.0 }
 0x9c9   :  { %6568 = vadd.xlane.f32.xlu0 %v6567_v22  ;;  %v6564_v29 = vsel %vm142_vm0, %v6552_v36, 0.0 }
 0x9ca   :  { %6565 = vadd.xlane.f32.xlu1 %v6564_v29 }
 0x9f3   :  { %v6527_v7 = vpop.xlane.xlu0 %6526 }
 0x9f4   :  { %v6539_v42 = vmul.f32 0.03125, %v6527_v7  ;;  %v6524_v4 = vpop.xlane.xlu1 %6523 }
 0x9f5   :  { %v6538_v39 = vmul.f32 0.03125, %v6524_v4 }
 0x9f6   :  { %v9457_v16 = vsub.f32 %v6505_v52, %v6539_v42 }
 0x9f7   :  { %v9459_v47 = vsub.f32 %v6504_v31, %v6538_v39 }
 0x9f8   :  { %v6555_v1 = vmul.f32 %v9457_v16, %v9457_v16 }
 0x9f9   :  { %v6554_v11 = vmul.f32 %v9459_v47, %v9459_v47 }
 0x9fa   :  { %v6573_v63 = vsel %vm142_vm0, %v6555_v1, 0.0 }
 0x9fb   :  { %6574 = vadd.xlane.f32.xlu0 %v6573_v63  ;;  %v6533_v57 = vpop.xlane.xlu0 %6532  ;;  %v6570_v27 = vsel %vm142_vm0, %v6554_v11, 0.0 }
 0x9fc   :  { %v6541_v55 = vmul.f32 0.03125, %v6533_v57  ;;  %6571 = vadd.xlane.f32.xlu1 %v6570_v27  ;;  %v6530_v24 = vpop.xlane.xlu1 %6529 }
 0x9fd   :  { %v6540_v33 = vmul.f32 0.03125, %v6530_v24 }
 0x9fe   :  { %v9467_v10 = vsub.f32 %v6507_v46, %v6541_v55 }
 0x9ff   :  { %v9469_v38 = vsub.f32 %v6506_v61, %v6540_v33 }
 0xa00   :  { %v6557_v49 = vmul.f32 %v9467_v10, %v9467_v10 }
 0xa01   :  { %v6556_v14 = vmul.f32 %v9469_v38, %v9469_v38 }
 0xa02   :  { %v6579_v23 = vsel %vm142_vm0, %v6557_v49, 0.0 }
 0xa03   :  { %6580 = vadd.xlane.f32.xlu0 %v6579_v23  ;;  %v6576_v40 = vsel %vm142_vm0, %v6556_v14, 0.0 }
 0xa04   :  { %6577 = vadd.xlane.f32.xlu1 %v6576_v40 }
 0xa15   :  { %6642 = vperm.xlu1 %7656, %v6639_v62  }
 0xa48   :  { %v6563_v3 = vpop.xlane.xlu0 %6562 }
 0xa49   :  { %v6583_v13 = vmul.f32 0.03125, %v6563_v3  ;;  %v6560_v20 = vpop.xlane.xlu1 %6559 }
 0xa4a   :  { %v6582_v37 = vmul.f32 0.03125, %v6560_v20 }
 0xa4b   :  { %v6591_v50 = vadd.f32 1e-05, %v6583_v13 }
 0xa4c   :  { %v6590_v15 = vadd.f32 1e-05, %v6582_v37 }
 0xa4d   :  { %7802 = vrsqrt.f32 %v6591_v50 }
 0xa4e   :  { %7804 = vrsqrt.f32 %v6590_v15 }
 0xa56   :  { %v6569_v19 = vpop.xlane.xlu0 %6568 }
 0xa57   :  { %v7803_v54 = vpop.eup %7802  ;;  %v6585_v52 = vmul.f32 0.03125, %v6569_v19  ;;  %v6566_v31 = vpop.xlane.xlu1 %6565 }
 0xa58   :  { %v7805_v30 = vpop.eup %7804  ;;  %v6607_v60 = vmul.f32 %v7803_v54, %v9436_v51  ;;  %v6584_v32 = vmul.f32 0.03125, %v6566_v31 }
 0xa59   :  { %v6606_v12 = vmul.f32 %v7805_v30, %v9438_v58  ;;  %v6593_v21 = vadd.f32 1e-05, %v6585_v52 }
 0xa5a   :  { %v6619_v46 = vmul.f32 %v9483_v17, %v6607_v60  ;;  %v6592_v61 = vadd.f32 1e-05, %v6584_v32 }
 0xa5b   :  { %v6618_v43 = vmul.f32 %v9483_v17, %v6606_v12  ;;  %7806 = vrsqrt.f32 %v6593_v21 }
 0xa5c   :  { %7808 = vrsqrt.f32 %v6592_v61  ;;  %v6631_v34 = vadd.f32 %v6929_v53, %v6619_v46 }
 0xa5d   :  { %v6630_v28 = vadd.f32 %v6929_v53, %v6618_v43 }
 0xa5f   :  { %v7617_v59 = vpack.c.bf16 %v6631_v34, %v6630_v28 }
 0xa61   :  { %7619 = vmatpush3.bf16.xpose.msk.msra.mxu1 %vm9494_vm5, %v7617_v59 }
 0xa62   :  { %7620 = vmatprep.subr.bf16.mxu1 %v8038_v26 }
 0xa65   :  { %v7807_v41 = vpop.eup %7806 }
 0xa66   :  { %v7809_v51 = vpop.eup %7808  ;;  %v6609_v58 = vmul.f32 %v7807_v41, %v9446_v2 }
 0xa67   :  { %v6608_v0 = vmul.f32 %v7809_v51, %v9448_v5 }
 0xa68   :  { %v6621_v18 = vmul.f32 %v9483_v17, %v6609_v58 }
 0xa69   :  { %v6620_v45 = vmul.f32 %v9483_v17, %v6608_v0 }
 0xa6a   :  { %v6633_v8 = vadd.f32 %v6929_v53, %v6621_v18 }
 0xa6b   :  { %v6632_v25 = vadd.f32 %v6929_v53, %v6620_v45 }
 0xa6d   :  { %v7621_v9 = vpack.c.bf16 %v6633_v8, %v6632_v25 }
 0xa6f   :  { %7623 = vmatpush3.bf16.xpose.msk.msra.mxu1 %vm9494_vm5, %v7621_v9 }
 0xa70   :  { %7624 = vmatprep.subr.bf16.mxu1 %v8038_v26 }
 0xa88   :  { %v6575_v48 = vpop.xlane.xlu0 %6574 }
 0xa89   :  { %v6587_v35 = vmul.f32 0.03125, %v6575_v48  ;;  %v6572_v44 = vpop.xlane.xlu1 %6571 }
 0xa8a   :  { %v6586_v36 = vmul.f32 0.03125, %v6572_v44 }
 0xa8b   :  { %v6595_v22 = vadd.f32 1e-05, %v6587_v35 }
 0xa8c   :  { %v6594_v2 = vadd.f32 1e-05, %v6586_v36 }
 0xa8d   :  { %7810 = vrsqrt.f32 %v6595_v22 }
 0xa8e   :  { %7812 = vrsqrt.f32 %v6594_v2 }
 0xa90   :  { %v6581_v5 = vpop.xlane.xlu0 %6580 }
 0xa91   :  { %v6589_v29 = vmul.f32 0.03125, %v6581_v5  ;;  %v6578_v7 = vpop.xlane.xlu1 %6577 }
 0xa92   :  { %v6588_v42 = vmul.f32 0.03125, %v6578_v7 }
 0xa93   :  { %v6597_v4 = vadd.f32 1e-05, %v6589_v29 }
 0xa94   :  { %v6596_v39 = vadd.f32 1e-05, %v6588_v42 }
 0xa95   :  { %7814 = vrsqrt.f32 %v6597_v4 }
 0xa96   :  { %7816 = vrsqrt.f32 %v6596_v39 }
 0xa97   :  { %v7811_v1 = vpop.eup %7810 }
 0xa98   :  { %v7813_v11 = vpop.eup %7812  ;;  %v6611_v63 = vmul.f32 %v7811_v1, %v9457_v16 }
 0xa99   :  { %v6610_v57 = vmul.f32 %v7813_v11, %v9459_v47 }
 0xa9a   :  { %v6623_v27 = vmul.f32 %v9483_v17, %v6611_v63 }
 0xa9b   :  { %v6622_v55 = vmul.f32 %v9483_v17, %v6610_v57 }
 0xa9c   :  { %v6635_v24 = vadd.f32 %v6929_v53, %v6623_v27 }
 0xa9d   :  { %v6634_v33 = vadd.f32 %v6929_v53, %v6622_v55 }
 0xa9f   :  { %v7815_v49 = vpop.eup %7814  ;;  %v7625_v14 = vpack.c.bf16 %v6635_v24, %v6634_v33 }
 0xaa0   :  { %v7817_v23 = vpop.eup %7816  ;;  %v6613_v40 = vmul.f32 %v7815_v49, %v9467_v10  ;;  %v6638_v10 = vld [vmem:[%s9558_s6 + $0xa] sm:$0x1] }
 0xaa1   :  { %v6612_v62 = vmul.f32 %v7817_v23, %v9469_v38  ;;  %7627 = vmatpush3.bf16.xpose.msk.msra.mxu1 %vm9494_vm5, %v7625_v14 }
 0xaa2   :  { %v6625_v16 = vmul.f32 %v9483_v17, %v6613_v40  ;;  %7628 = vmatprep.subr.bf16.mxu1 %v8038_v26 }
 0xaa3   :  { %v6624_v47 = vmul.f32 %v9483_v17, %v6612_v62 }
 0xaa4   :  { %v6637_v6 = vadd.f32 %v6929_v53, %v6625_v16 }
 0xaa5   :  { %v6636_v3 = vadd.f32 %v6929_v53, %v6624_v47 }
 0xaa7   :  { %v7629_v13 = vpack.c.bf16 %v6637_v6, %v6636_v3 }
 0xaa9   :  { %7631 = vmatpush3.bf16.xpose.msk.msra.mxu1 %vm9494_vm5, %v7629_v13 }
 0xab0   :  { %7574 = vmatmul.mubr.msk.f32.vlgmr.msra.gmra.mrb[80].mxu1 %vm142_vm0, %v6638_v10 }
 0xab1   :  { %7973 = shalt.err (!%p7970_p10)
}
 0xab2   :  { %s7974_s2 = scalar_lea.hbm %s9560_s8, 1024 }
 0xab3   :  { %p7975_p11 = scmp.ne.s32.totalorder %s9560_s8, %s7974_s2  ;;  %p7978_p12 = scmp.lt.u32.totalorder %s7974_s2, %s9560_s8 }
 0xab5   :  { %p7980_p13 = pnand %p7978_p12, %p7975_p11 }
 0xab7   :  { %7983 = shalt.err (!%p7980_p13)
}
 0xab8   :  { %6771 = dma.vmem_to_hbm [thread:$0]  %s6766_s20, 1024, %s9560_s8, [#allocation15], %s8020_s17, %s8020_s17, %s8021_s18   ;;  %v6643_v26 = vpop.permute.xlu1 %6642  ;;  %vm6748_vm6 = vcmask 516096  }
 0xab9   :  { %s8041_s26 = smov [#allocation13]  }
 0xaba   :  { %s6756_s27 = sshll.u32 %s8041_s26, 4  ;;  %s6757_s27 = int_to_ptr.vmem [resolvable:$true] %s6756_s27 }
 0xabb   :  { %s7984_s29 = scalar_lea.vmem %s6757_s27, 16  ;;  %s7988_s1 = scalar_lea.vmem %s6757_s27, 32 }
 0xabc   :  { %p7985_p0 = scmp.ne.s32.totalorder %s6757_s27, %s7984_s29  ;;  %p7989_p1 = scmp.lt.s32.totalorder %s6757_s27, %s6757_s27 }
 0xabd   :  { %p7990_p2 = scmp.lt.s32.totalorder %s7988_s1, %s7984_s29 }
 0xabf   :  { %p7991_p3 = por %p7990_p2, %p7989_p1 }
 0xac1   :  { %p7992_p4 = pnand %p7991_p3, %p7985_p0 }
 0xb83   :  { %v6738_v38 = vpop.f32.mrb[80].mxu1 }
 0xb84   :  { %v6739_v20 = vadd.f32 %v6738_v38, %v6643_v26  ;;  %v7575_v37 = vpop.f32.mrb[81].mxu1 }
 0xb86   :  { %v6939_v50 = vmul.f32 -1.442695, %v6739_v20 }
 0xb88   :  { %7818 = vpow2.f32 %v6939_v50 }
 0xb92   :  { %v7819_v15 = vpop.eup %7818 }
 0xb93   :  { %v6745_v19 = vadd.f32 1.0, %v7819_v15 }
 0xb95   :  { %7820 = vrcp.f32 %v6745_v19 }
 0xb9f   :  { %v7821_v54 = vpop.eup %7820 }
 0xba0   :  { %6749 = vst.msk [vmem:[#allocation13] sm:$0x1] %vm6748_vm6, %v7821_v54 }
 0xba1   :  { %7995 = shalt.err (!%p7992_p4)
}
 0xba2   :  { %s7996_s18 = scalar_lea.hbm %s9559_s7, 16 }
 0xba3   :  { %p7997_p5 = scmp.ne.s32.totalorder %s9559_s7, %s7996_s18  ;;  %p8000_p6 = scmp.lt.u32.totalorder %s7996_s18, %s9559_s7 }
 0xba5   :  { %p8002_p7 = pnand %p8000_p6, %p7997_p5 }
 0xba7   :  { %8005 = shalt.err (!%p8002_p7)
}
 0xba8   :  { %6759 = dma.vmem_to_hbm [thread:$0]  %s6757_s27, 16, %s9559_s7, [#allocation4]  }
 0xba9   :  { %8014 = dma.done.wait [#allocation4], 16  }
 0xbaa   :  { %8015 = vsyncadd [#allocation4], 4294967280 }
 0xbab   :  { %8016 = dma.done.wait [#allocation15], 1024  }
 0xbac   :  { %8017 = vsyncadd [#allocation15], 4294966272 }
 0xbad   :  { %6778 = vsyncpa [#allocation3], 1 }
 0xbae   :  { %6779 = vsyncpa [#allocation6], 1 }
 0xbaf   :  { %6780 = vsyncpa [#allocation9], 1 }
 0xbb0   :  { %6781 = vsyncpa [#allocation12], 1 }
 0xbb1   :  { %6782 = vsyncpa [#allocation4], 1 }
 0xbb2   :  { %6783 = vsyncpa [#allocation15], 1 }

</bundles_post_ra>
